<compile_context>
chip_gen: v5e
topology: v5e:2x2
jax: 0.10.0
libtpu: 0.0.40
codegen_flags: <defaults>
</compile_context>

<pallas_src>
import functools

import jax
import jax.numpy as jnp
from jax.experimental import pallas as pl
from jax.experimental.pallas import tpu as pltpu


# ------------------------------- helpers ------------------------------------

def _round_up(x, m):
    return ((x + m - 1) // m) * m


def _vmem_limit(*block_bytes):
    # 2x each streamed block (double buffering) + headroom; 16 MiB floor keeps
    # us within the default scoped budget on all of v5e/v6e/v7x.
    est = int(sum(2 * b for b in block_bytes)) + (4 << 20)
    return max(est, 16 << 20)


# ------------------- kernel 1: matmul + BN + swish (fused) ------------------

def _matmul_bn_swish_kernel(x_ref, w_ref, scale_ref, shift_ref, o_ref, acc_ref):
    @pl.when(pl.program_id(2) == 0)
    def _init():
        acc_ref[...] = jnp.zeros_like(acc_ref)

    acc_ref[...] += jnp.dot(x_ref[...], w_ref[...],
                            preferred_element_type=jnp.float32)

    @pl.when(pl.program_id(2) == pl.num_programs(2) - 1)
    def _finalize():
        y = acc_ref[...] * scale_ref[...] + shift_ref[...]   # inference BN
        o_ref[...] = y * jax.nn.sigmoid(y)                   # swish (EUP slot)


def fused_matmul_bn_swish(x, w, scale, shift, *, tm=128, tn=128, tk=512,
                          keep_padded_n=False):
    """swish(bn(x @ w)).  x:(M,K) f32, w:(K,N) f32, scale/shift:(N,) f32.

    Inputs are lane-padded (N, K -> mult of 128; padded cols are exact zeros)
    and cast to bf16 for the MXU; the accumulator / epilogue stay f32.
    """
    M, K = x.shape
    Kw, N = w.shape
    assert Kw == K

    Mp = _round_up(M, 16)
    tm_e = min(tm, Mp)
    Mp = _round_up(Mp, tm_e)

    Np = _round_up(N, 128)
    tn_e = min(tn, Np)
    Np = _round_up(Np, tn_e)

    Kp = _round_up(K, 128)
    tk_e = min(tk, Kp)
    Kp = _round_up(Kp, tk_e)

    xb = jnp.zeros((Mp, Kp), jnp.bfloat16).at[:M, :K].set(x.astype(jnp.bfloat16))
    wb = jnp.zeros((Kp, Np), jnp.bfloat16).at[:K, :N].set(w.astype(jnp.bfloat16))
    sc = jnp.zeros((1, Np), jnp.float32).at[0, :N].set(scale)
    sh = jnp.zeros((1, Np), jnp.float32).at[0, :N].set(shift)

    grid = (Mp // tm_e, Np // tn_e, Kp // tk_e)
    vmem = _vmem_limit(tm_e * tk_e * 2, tk_e * tn_e * 2,
                       2 * tn_e * 4, tm_e * tn_e * 4, tm_e * tn_e * 4)

    out = pl.pallas_call(
        _matmul_bn_swish_kernel,
        out_shape=jax.ShapeDtypeStruct((Mp, Np), jnp.float32),
        grid_spec=pltpu.PrefetchScalarGridSpec(
            num_scalar_prefetch=0,
            grid=grid,
            in_specs=[
                pl.BlockSpec((tm_e, tk_e), lambda i, j, k: (i, k)),
                pl.BlockSpec((tk_e, tn_e), lambda i, j, k: (k, j)),
                pl.BlockSpec((1, tn_e), lambda i, j, k: (0, j)),
                pl.BlockSpec((1, tn_e), lambda i, j, k: (0, j)),
            ],
            out_specs=pl.BlockSpec((tm_e, tn_e), lambda i, j, k: (i, j)),
            scratch_shapes=[pltpu.VMEM((tm_e, tn_e), jnp.float32)],
        ),
        compiler_params=pltpu.CompilerParams(
            dimension_semantics=("parallel", "parallel", "arbitrary"),
            vmem_limit_bytes=vmem),
    )(xb, wb, sc, sh)

    out = out[:M]
    if not keep_padded_n:
        out = out[:, :N]
    return out


# ------- kernel 2: pointwise conv + BN + swish + global avgpool (fused) -----

def _head_pool_kernel(x_ref, w_ref, scale_ref, shift_ref, o_ref, acc_ref, *,
                      inv_hw):
    h = pl.program_id(1)

    @pl.when(h == 0)
    def _init():
        acc_ref[...] = jnp.zeros_like(acc_ref)

    y = jnp.dot(x_ref[0], w_ref[...], preferred_element_type=jnp.float32)
    y = y * scale_ref[...] + shift_ref[...]
    y = y * jax.nn.sigmoid(y)
    acc_ref[...] += jnp.sum(y, axis=0, keepdims=True)

    @pl.when(h == pl.num_programs(1) - 1)
    def _finalize():
        o_ref[0] = acc_ref[...] * inv_hw


def fused_head_pool(x_bhwc, w, scale, shift, *, thw_target=512):
    """swish(bn(x @ w)) averaged over HW -> (B, Cout).

    x_bhwc: (B, HW, Cin) f32 (Cin already lane-padded), w: (Cin, Cout).
    """
    B, HW, Cin = x_bhwc.shape
    assert w.shape[0] == Cin
    Cout = w.shape[1]
    Np = _round_up(Cout, 128)

    # HW tile must divide HW exactly (padded rows would bias the mean since
    # swish(shift) != 0); fall back to a full-HW block if no tile divides.
    thw = HW
    for cand in (thw_target, 256, 128, 64, 32, 16, 8):
        if cand <= HW and HW % cand == 0:
            thw = cand
            break

    xb = x_bhwc.astype(jnp.bfloat16)
    wb = jnp.zeros((Cin, Np), jnp.bfloat16).at[:, :Cout].set(w.astype(jnp.bfloat16))
    sc = jnp.zeros((1, Np), jnp.float32).at[0, :Cout].set(scale)
    sh = jnp.zeros((1, Np), jnp.float32).at[0, :Cout].set(shift)

    vmem = _vmem_limit(thw * Cin * 2, Cin * Np * 2, 2 * Np * 4, Np * 4, Np * 4)

    out = pl.pallas_call(
        functools.partial(_head_pool_kernel, inv_hw=1.0 / HW),
        out_shape=jax.ShapeDtypeStruct((B, 1, Np), jnp.float32),
        grid_spec=pltpu.PrefetchScalarGridSpec(
            num_scalar_prefetch=0,
            grid=(B, HW // thw),
            in_specs=[
                pl.BlockSpec((1, thw, Cin), lambda b, h: (b, h, 0)),
                pl.BlockSpec((Cin, Np), lambda b, h: (0, 0)),
                pl.BlockSpec((1, Np), lambda b, h: (0, 0)),
                pl.BlockSpec((1, Np), lambda b, h: (0, 0)),
            ],
            out_specs=pl.BlockSpec((1, 1, Np), lambda b, h: (b, 0, 0)),
            scratch_shapes=[pltpu.VMEM((1, Np), jnp.float32)],
        ),
        compiler_params=pltpu.CompilerParams(
            dimension_semantics=("parallel", "arbitrary"),
            vmem_limit_bytes=vmem),
    )(xb, wb, sc, sh)
    return out.reshape(B, Np)[:, :Cout]


# ----------- kernel 3: linear + bias + L2 normalize (fused) -----------------

def _linear_l2norm_kernel(x_ref, w_ref, b_ref, o_ref, acc_ref):
    k = pl.program_id(0)

    @pl.when(k == 0)
    def _init():
        acc_ref[...] = jnp.zeros_like(acc_ref)

    acc_ref[...] += jnp.dot(x_ref[...], w_ref[...],
                            preferred_element_type=jnp.float32)

    @pl.when(k == pl.num_programs(0) - 1)
    def _finalize():
        y = acc_ref[...] + b_ref[...]
        ssq = jnp.sum(y * y, axis=-1, keepdims=True)
        # F.normalize(p=2, dim=1): x / max(||x||, 1e-12)  (rsqrt -> EUP slot)
        o_ref[...] = y * jax.lax.rsqrt(jnp.maximum(ssq, 1e-24))


def fused_linear_l2norm(x, w, b, *, tk=512):
    """L2-normalized rows of (x @ w + b).  x:(M,K), w:(K,N), b:(N,)."""
    M, K = x.shape
    Kw, N = w.shape
    assert Kw == K

    Mp = _round_up(M, 16)
    Np = _round_up(N, 128)       # padded cols have zero weight + zero bias -> 0
    Kp = _round_up(K, 128)
    tk_e = min(tk, Kp)
    Kp = _round_up(Kp, tk_e)

    xb = jnp.zeros((Mp, Kp), jnp.bfloat16).at[:M, :K].set(x.astype(jnp.bfloat16))
    wb = jnp.zeros((Kp, Np), jnp.bfloat16).at[:K, :N].set(w.astype(jnp.bfloat16))
    bb = jnp.zeros((1, Np), jnp.float32).at[0, :N].set(b.reshape(-1))

    vmem = _vmem_limit(Mp * tk_e * 2, tk_e * Np * 2, Np * 4,
                       Mp * Np * 4, Mp * Np * 4)

    out = pl.pallas_call(
        _linear_l2norm_kernel,
        out_shape=jax.ShapeDtypeStruct((Mp, Np), jnp.float32),
        grid_spec=pltpu.PrefetchScalarGridSpec(
            num_scalar_prefetch=0,
            grid=(Kp // tk_e,),
            in_specs=[
                pl.BlockSpec((Mp, tk_e), lambda k: (0, k)),
                pl.BlockSpec((tk_e, Np), lambda k: (k, 0)),
                pl.BlockSpec((1, Np), lambda k: (0, 0)),
            ],
            out_specs=pl.BlockSpec((Mp, Np), lambda k: (0, 0)),
            scratch_shapes=[pltpu.VMEM((Mp, Np), jnp.float32)],
        ),
        compiler_params=pltpu.CompilerParams(
            dimension_semantics=("arbitrary",),
            vmem_limit_bytes=vmem),
    )(xb, wb, bb)
    return out[:M, :N]


# ------------------------------- JAX glue ------------------------------------

def conv_im2col_nhwc(x_nchw, kh, kw, stride, pad):
    """im2col built directly in (B*Ho*Wo, kh*kw*Cin) NHWC row order.

    Only the small input is transposed (once) to NHWC; the kh*kw-expanded cols
    array is produced already in the layout the matmul consumes.
    """
    B, Cin, H, W = x_nchw.shape
    x = jnp.transpose(x_nchw, (0, 2, 3, 1))
    xp = jnp.pad(x, ((0, 0), (pad, pad), (pad, pad), (0, 0)))
    Ho = (H + 2 * pad - kh) // stride + 1
    Wo = (W + 2 * pad - kw) // stride + 1
    taps = [xp[:, i:i + stride * Ho:stride, j:j + stride * Wo:stride, :]
            for i in range(kh) for j in range(kw)]            # (B, Ho, Wo, Cin)
    cols = jnp.concatenate(taps, axis=-1)                     # (B, Ho, Wo, kh*kw*Cin)
    # TODO(synk): for production image sizes, gather the taps inside the Pallas
    # kernel (pl.ds strided reads / Element BlockSpecs) so the kh*kw expansion
    # never materializes in HBM.
    return cols.reshape(B * Ho * Wo, kh * kw * Cin), Ho, Wo


def conv_weight_to_matrix(w_oihw):
    """(Cout, Cin, kh, kw) -> (kh*kw*Cin, Cout), matching conv_im2col_nhwc."""
    Cout, Cin, kh, kw = w_oihw.shape
    return jnp.transpose(w_oihw, (2, 3, 1, 0)).reshape(kh * kw * Cin, Cout)


def bn_to_scale_shift(gamma, beta, mean, var, eps=1e-3):
    # EfficientNet BatchNorm uses eps=1e-3 (vanilla nn.BatchNorm2d uses 1e-5).
    scale = gamma / jnp.sqrt(var + eps)
    shift = beta - mean * scale
    return scale, shift


# ----------------------------- model definition ------------------------------

C_STEM_FACE = 48      # nn.Conv2d(15, 48, 7, stride=2, padding=3, bias=False)
C_STEM_AUDIO = 64     # nn.Conv2d(1, 64, 7, stride=2, padding=3, bias=False)
C_HEAD = 128          # stand-in for efficientnet-b4 conv_head width (1792)
EMB = 32              # stand-in for fc output width (1024)


def init_params(key):
    ks = jax.random.split(key, 16)
    p = {}
    # ----- face encoder -----
    w_face_stem = 0.05 * jax.random.normal(ks[0], (C_STEM_FACE, 15, 7, 7), jnp.float32)
    p["face_stem_wmat"] = conv_weight_to_matrix(w_face_stem)       # pre-transposed
    p["face_bn0"] = bn_to_scale_shift(
        1.0 + 0.1 * jax.random.normal(ks[1], (C_STEM_FACE,), jnp.float32),
        0.1 * jax.random.normal(ks[2], (C_STEM_FACE,), jnp.float32),
        0.1 * jax.random.normal(ks[3], (C_STEM_FACE,), jnp.float32),
        1.0 + 0.1 * jnp.abs(jax.random.normal(ks[4], (C_STEM_FACE,), jnp.float32)))
    p["face_head_w"] = 0.05 * jax.random.normal(ks[5], (C_STEM_FACE, C_HEAD), jnp.float32)
    p["face_bn1"] = bn_to_scale_shift(
        jnp.ones((C_HEAD,), jnp.float32), jnp.zeros((C_HEAD,), jnp.float32),
        jnp.zeros((C_HEAD,), jnp.float32), jnp.ones((C_HEAD,), jnp.float32))
    p["fc_face_w"] = 0.05 * jax.random.normal(ks[6], (C_HEAD, EMB), jnp.float32)
    p["fc_face_b"] = 0.01 * jax.random.normal(ks[7], (EMB,), jnp.float32)
    # ----- audio encoder -----
    w_audio_stem = 0.05 * jax.random.normal(ks[8], (C_STEM_AUDIO, 1, 7, 7), jnp.float32)
    p["audio_stem_wmat"] = conv_weight_to_matrix(w_audio_stem)
    p["audio_bn0"] = bn_to_scale_shift(
        1.0 + 0.1 * jax.random.normal(ks[9], (C_STEM_AUDIO,), jnp.float32),
        0.1 * jax.random.normal(ks[10], (C_STEM_AUDIO,), jnp.float32),
        0.1 * jax.random.normal(ks[11], (C_STEM_AUDIO,), jnp.float32),
        1.0 + 0.1 * jnp.abs(jax.random.normal(ks[12], (C_STEM_AUDIO,), jnp.float32)))
    p["audio_head_w"] = 0.05 * jax.random.normal(ks[13], (C_STEM_AUDIO, C_HEAD), jnp.float32)
    p["audio_bn1"] = bn_to_scale_shift(
        jnp.ones((C_HEAD,), jnp.float32), jnp.zeros((C_HEAD,), jnp.float32),
        jnp.zeros((C_HEAD,), jnp.float32), jnp.ones((C_HEAD,), jnp.float32))
    return p


def init_fc_audio(key, hw, c):
    # Weight rows are generated directly in NHWC-flatten order (h, w, c), so
    # the audio path needs NO activation transpose before the FC.  When loading
    # a PyTorch checkpoint (NCHW flatten), permute rows once at load time:
    # row (hw_idx * c + ch)  <-  row (ch * hw + hw_idx).
    k1, k2 = jax.random.split(key)
    w = 0.01 * jax.random.normal(k1, (hw * c, EMB), jnp.float32)
    b = 0.01 * jax.random.normal(k2, (EMB,), jnp.float32)
    return w, b


def face_encoder_fwd(face_nchw, p):
    B = face_nchw.shape[0]
    cols, Ho, Wo = conv_im2col_nhwc(face_nchw, 7, 7, stride=2, pad=3)
    # stem conv + BN + swish fused; keep channel lanes padded to 128 (padded
    # columns are exact zeros).
    y = fused_matmul_bn_swish(cols, p["face_stem_wmat"], *p["face_bn0"],
                              keep_padded_n=True)                 # (B*HW, 128)
    c_pad = y.shape[1]
    # TODO(synk): EfficientNet-b4 MBConv block stack + conv_head stood in by a
    # single pointwise conv (no pretrained checkpoint available).
    head_w = jnp.zeros((c_pad, C_HEAD), jnp.float32).at[:C_STEM_FACE].set(p["face_head_w"])
    scale1, shift1 = p["face_bn1"]
    # pointwise conv + BN + swish + AdaptiveAvgPool2d((1,1)) fused
    emb = fused_head_pool(y.reshape(B, Ho * Wo, c_pad), head_w, scale1, shift1)
    return emb                                                    # (B, C_HEAD)


def audio_encoder_fwd(audio_nchw, p):
    B = audio_nchw.shape[0]
    cols, Ho, Wo = conv_im2col_nhwc(audio_nchw, 7, 7, stride=2, pad=3)
    y = fused_matmul_bn_swish(cols, p["audio_stem_wmat"], *p["audio_bn0"],
                              keep_padded_n=True)                 # (B*HW, 128)
    c_pad = y.shape[1]
    # TODO(synk): MBConv stack stood in by a single pointwise conv.
    head_w = jnp.zeros((c_pad, C_HEAD), jnp.float32).at[:C_STEM_AUDIO].set(p["audio_head_w"])
    y = fused_matmul_bn_swish(y, head_w, *p["audio_bn1"])         # (B*HW, C_HEAD)
    # NHWC flatten (no transpose): fc_audio weights are row-ordered for this.
    return y.reshape(B, Ho * Wo * C_HEAD)


def efficient_syncnet_color_forward(audio_sequences, face_sequences, p,
                                    fc_audio_w, fc_audio_b):
    # face branch: encoder -> fc_face -> F.normalize   (fc + normalize fused)
    face_emb = face_encoder_fwd(face_sequences, p)
    face_emb = fused_linear_l2norm(face_emb, p["fc_face_w"], p["fc_face_b"])
    # audio branch: encoder -> fc_audio -> F.normalize
    audio_feat = audio_encoder_fwd(audio_sequences, p)
    audio_emb = fused_linear_l2norm(audio_feat, fc_audio_w, fc_audio_b)
    return audio_emb, face_emb          # same return order as the PyTorch module


# ----------------------------------- main ------------------------------------

if __name__ == "__main__":
    key = jax.random.PRNGKey(0)
    k_in_a, k_in_f, k_p, k_fca = jax.random.split(key, 4)

    B, H, W = 2, 16, 16
    audio_sequences = jax.random.normal(k_in_a, (B, 1, H, W), jnp.float32)   # NCHW
    face_sequences = jax.random.normal(k_in_f, (B, 15, H, W), jnp.float32)   # NCHW

    params = init_params(k_p)
    Ho = Wo = H // 2  # stem stride-2 output
    fc_audio_w, fc_audio_b = init_fc_audio(k_fca, Ho * Wo, C_HEAD)

    fwd = jax.jit(efficient_syncnet_color_forward)
    audio_emb, face_emb = fwd(audio_sequences, face_sequences, params,
                              fc_audio_w, fc_audio_b)
    jax.block_until_ready((audio_emb, face_emb))

    assert audio_emb.shape == (B, EMB) and face_emb.shape == (B, EMB)
    # L2-normalized rows -> unit norm
    assert jnp.allclose(jnp.linalg.norm(face_emb, axis=1), 1.0, atol=1e-3)
    assert jnp.allclose(jnp.linalg.norm(audio_emb, axis=1), 1.0, atol=1e-3)
    print("KERNEL_OK")
</pallas_src>

<mosaic_0001>
module attributes {stable_mosaic.version = 11 : i64} {
  func.func @_matmul_bn_swish_kernel(%arg0: i32, %arg1: i32, %arg2: i32, %arg3: memref<128x128xbf16, #tpu.memory_space<vmem>>, %arg4: memref<128x128xbf16, #tpu.memory_space<vmem>>, %arg5: memref<1x128xf32, #tpu.memory_space<vmem>>, %arg6: memref<1x128xf32, #tpu.memory_space<vmem>>, %arg7: memref<128x128xf32, #tpu.memory_space<vmem>>, %arg8: memref<128x128xf32, #tpu.memory_space<vmem>>) attributes {dimension_semantics = [#tpu.dimension_semantics<parallel>, #tpu.dimension_semantics<parallel>, #tpu.dimension_semantics<arbitrary>], iteration_bounds = array<i64: 1, 1, 1>, scalar_prefetch = 0 : i64, scratch_operands = 1 : i64, tpu.core_type = #tpu.core_type<tc>, window_params = [{transform_indices = @transform_0, window_bounds = array<i64: 128, 128>}, {transform_indices = @transform_1, window_bounds = array<i64: 128, 128>}, {transform_indices = @transform_2, window_bounds = array<i64: 1, 128>}, {transform_indices = @transform_3, window_bounds = array<i64: 1, 128>}, {transform_indices = @transform_4, window_bounds = array<i64: 128, 128>}]} {
    %c0_i32 = arith.constant 0 : i32
    %0 = arith.cmpi eq, %arg2, %c0_i32 : i32
    %1 = arith.extui %0 : i1 to i32
    %c0_i32_0 = arith.constant 0 : i32
    %2 = arith.cmpi ne, %1, %c0_i32_0 : i32
    scf.if %2 {
      %cst_10 = arith.constant 0.000000e+00 : f32
      %12 = vector.broadcast %cst_10 : f32 to vector<128x128xf32>
      %c0_11 = arith.constant 0 : index
      %c0_12 = arith.constant 0 : index
      %13 = vector.load %arg8[%c0_11, %c0_12] : memref<128x128xf32, #tpu.memory_space<vmem>>, vector<128x128xf32>
      tpu.vector_store %arg8[%c0_11, %c0_12], %12 {strides = array<i32>} : memref<128x128xf32, #tpu.memory_space<vmem>>, vector<128x128xf32>,
    } else {
    }
    %c0 = arith.constant 0 : index
    %c0_1 = arith.constant 0 : index
    %3 = vector.load %arg8[%c0, %c0_1] : memref<128x128xf32, #tpu.memory_space<vmem>>, vector<128x128xf32>
    %c0_2 = arith.constant 0 : index
    %c0_3 = arith.constant 0 : index
    %4 = vector.load %arg3[%c0_2, %c0_3] : memref<128x128xbf16, #tpu.memory_space<vmem>>, vector<128x128xbf16>
    %c0_4 = arith.constant 0 : index
    %c0_5 = arith.constant 0 : index
    %5 = vector.load %arg4[%c0_4, %c0_5] : memref<128x128xbf16, #tpu.memory_space<vmem>>, vector<128x128xbf16>
    %cst = arith.constant dense<0.000000e+00> : vector<128x128xf32>
    %6 = tpu.matmul %4, %5, %cst {dimension_numbers = #tpu.dot_dimension_numbers<[1], [0], [0], [1], [0, 0, 1, 1], [], []>} : vector<128x128xbf16>, vector<128x128xbf16>, vector<128x128xf32> -> vector<128x128xf32>
    %7 = arith.addf %3, %6 : vector<128x128xf32>
    %c0_6 = arith.constant 0 : index
    %c0_7 = arith.constant 0 : index
    %8 = vector.load %arg8[%c0_6, %c0_7] : memref<128x128xf32, #tpu.memory_space<vmem>>, vector<128x128xf32>
    tpu.vector_store %arg8[%c0_6, %c0_7], %7 {strides = array<i32>} : memref<128x128xf32, #tpu.memory_space<vmem>>, vector<128x128xf32>,
    %c0_i32_8 = arith.constant 0 : i32
    %9 = arith.cmpi eq, %arg2, %c0_i32_8 : i32
    %10 = arith.extui %9 : i1 to i32
    %c0_i32_9 = arith.constant 0 : i32
    %11 = arith.cmpi ne, %10, %c0_i32_9 : i32
    scf.if %11 {
      %c0_10 = arith.constant 0 : index
      %c0_11 = arith.constant 0 : index
      %12 = vector.load %arg8[%c0_10, %c0_11] : memref<128x128xf32, #tpu.memory_space<vmem>>, vector<128x128xf32>
      %c0_12 = arith.constant 0 : index
      %c0_13 = arith.constant 0 : index
      %13 = vector.load %arg5[%c0_12, %c0_13] : memref<1x128xf32, #tpu.memory_space<vmem>>, vector<1x128xf32>
      %14 = vector.broadcast %13 : vector<1x128xf32> to vector<128x128xf32>
      %15 = arith.mulf %12, %14 : vector<128x128xf32>
      %c0_14 = arith.constant 0 : index
      %c0_15 = arith.constant 0 : index
      %16 = vector.load %arg6[%c0_14, %c0_15] : memref<1x128xf32, #tpu.memory_space<vmem>>, vector<1x128xf32>
      %17 = vector.broadcast %16 : vector<1x128xf32> to vector<128x128xf32>
      %18 = arith.addf %15, %17 : vector<128x128xf32>
      %19 = arith.negf %18 : vector<128x128xf32>
      %20 = math.exp %19 : vector<128x128xf32>
      %cst_16 = arith.constant 1.000000e+00 : f32
      %21 = vector.broadcast %cst_16 : f32 to vector<128x128xf32>
      %22 = arith.addf %21, %20 : vector<128x128xf32>
      %23 = arith.divf %21, %22 : vector<128x128xf32>
      %24 = arith.mulf %18, %23 : vector<128x128xf32>
      %c0_17 = arith.constant 0 : index
      %c0_18 = arith.constant 0 : index
      %25 = vector.load %arg7[%c0_17, %c0_18] : memref<128x128xf32, #tpu.memory_space<vmem>>, vector<128x128xf32>
      tpu.vector_store %arg7[%c0_17, %c0_18], %24 {strides = array<i32>} : memref<128x128xf32, #tpu.memory_space<vmem>>, vector<128x128xf32>,
    } else {
    }
    return
  }
  func.func @transform_0(%arg0: i32, %arg1: i32, %arg2: i32) -> (i32, i32) {
    %c0_i32 = arith.constant 0 : i32
    return %arg0, %arg2 : i32, i32
  }
  func.func @transform_1(%arg0: i32, %arg1: i32, %arg2: i32) -> (i32, i32) {
    %c0_i32 = arith.constant 0 : i32
    return %arg2, %arg1 : i32, i32
  }
  func.func @transform_2(%arg0: i32, %arg1: i32, %arg2: i32) -> (i32, i32) {
    %c0_i32 = arith.constant 0 : i32
    %c0_i32_0 = arith.constant 0 : i32
    return %c0_i32, %arg1 : i32, i32
  }
  func.func @transform_3(%arg0: i32, %arg1: i32, %arg2: i32) -> (i32, i32) {
    %c0_i32 = arith.constant 0 : i32
    %c0_i32_0 = arith.constant 0 : i32
    return %c0_i32, %arg1 : i32, i32
  }
  func.func @transform_4(%arg0: i32, %arg1: i32, %arg2: i32) -> (i32, i32) {
    %c0_i32 = arith.constant 0 : i32
    return %arg0, %arg1 : i32, i32
  }
}

module attributes {stable_mosaic.version = 11 : i64} {
  func.func @_linear_l2norm_kernel(%arg0: i32, %arg1: memref<16x512xbf16, #tpu.memory_space<vmem>>, %arg2: memref<512x128xbf16, #tpu.memory_space<vmem>>, %arg3: memref<1x128xf32, #tpu.memory_space<vmem>>, %arg4: memref<16x128xf32, #tpu.memory_space<vmem>>, %arg5: memref<16x128xf32, #tpu.memory_space<vmem>>) attributes {dimension_semantics = [#tpu.dimension_semantics<arbitrary>], iteration_bounds = array<i64: 16>, scalar_prefetch = 0 : i64, scratch_operands = 1 : i64, tpu.core_type = #tpu.core_type<tc>, window_params = [{transform_indices = @transform_0, window_bounds = array<i64: 16, 512>}, {transform_indices = @transform_1, window_bounds = array<i64: 512, 128>}, {pipeline_mode = #tpu.pipeline_mode<synchronous>, transform_indices = @transform_2, window_bounds = array<i64: 1, 128>}, {pipeline_mode = #tpu.pipeline_mode<synchronous>, transform_indices = @transform_3, window_bounds = array<i64: 16, 128>}]} {
    %c0_i32 = arith.constant 0 : i32
    %0 = arith.cmpi eq, %arg0, %c0_i32 : i32
    %1 = arith.extui %0 : i1 to i32
    %c0_i32_0 = arith.constant 0 : i32
    %2 = arith.cmpi ne, %1, %c0_i32_0 : i32
    scf.if %2 {
      %cst_9 = arith.constant 0.000000e+00 : f32
      %12 = vector.broadcast %cst_9 : f32 to vector<16x128xf32>
      %c0_10 = arith.constant 0 : index
      %c0_11 = arith.constant 0 : index
      %13 = vector.load %arg5[%c0_10, %c0_11] : memref<16x128xf32, #tpu.memory_space<vmem>>, vector<16x128xf32>
      tpu.vector_store %arg5[%c0_10, %c0_11], %12 {strides = array<i32>} : memref<16x128xf32, #tpu.memory_space<vmem>>, vector<16x128xf32>,
    } else {
    }
    %c0 = arith.constant 0 : index
    %c0_1 = arith.constant 0 : index
    %3 = vector.load %arg5[%c0, %c0_1] : memref<16x128xf32, #tpu.memory_space<vmem>>, vector<16x128xf32>
    %c0_2 = arith.constant 0 : index
    %c0_3 = arith.constant 0 : index
    %4 = vector.load %arg1[%c0_2, %c0_3] : memref<16x512xbf16, #tpu.memory_space<vmem>>, vector<16x512xbf16>
    %c0_4 = arith.constant 0 : index
    %c0_5 = arith.constant 0 : index
    %5 = vector.load %arg2[%c0_4, %c0_5] : memref<512x128xbf16, #tpu.memory_space<vmem>>, vector<512x128xbf16>
    %cst = arith.constant dense<0.000000e+00> : vector<16x128xf32>
    %6 = tpu.matmul %4, %5, %cst {dimension_numbers = #tpu.dot_dimension_numbers<[1], [0], [0], [1], [0, 0, 1, 1], [], []>} : vector<16x512xbf16>, vector<512x128xbf16>, vector<16x128xf32> -> vector<16x128xf32>
    %7 = arith.addf %3, %6 : vector<16x128xf32>
    %c0_6 = arith.constant 0 : index
    %c0_7 = arith.constant 0 : index
    %8 = vector.load %arg5[%c0_6, %c0_7] : memref<16x128xf32, #tpu.memory_space<vmem>>, vector<16x128xf32>
    tpu.vector_store %arg5[%c0_6, %c0_7], %7 {strides = array<i32>} : memref<16x128xf32, #tpu.memory_space<vmem>>, vector<16x128xf32>,
    %c15_i32 = arith.constant 15 : i32
    %9 = arith.cmpi eq, %arg0, %c15_i32 : i32
    %10 = arith.extui %9 : i1 to i32
    %c0_i32_8 = arith.constant 0 : i32
    %11 = arith.cmpi ne, %10, %c0_i32_8 : i32
    scf.if %11 {
      %c0_9 = arith.constant 0 : index
      %c0_10 = arith.constant 0 : index
      %12 = vector.load %arg5[%c0_9, %c0_10] : memref<16x128xf32, #tpu.memory_space<vmem>>, vector<16x128xf32>
      %c0_11 = arith.constant 0 : index
      %c0_12 = arith.constant 0 : index
      %13 = vector.load %arg3[%c0_11, %c0_12] : memref<1x128xf32, #tpu.memory_space<vmem>>, vector<1x128xf32>
      %14 = vector.broadcast %13 : vector<1x128xf32> to vector<16x128xf32>
      %15 = arith.addf %12, %14 : vector<16x128xf32>
      %16 = arith.mulf %15, %15 : vector<16x128xf32>
      %cst_13 = arith.constant dense<0.000000e+00> : vector<16xf32>
      %17 = vector.multi_reduction <add>, %16, %cst_13 [1] : vector<16x128xf32> to vector<16xf32>
      %18 = vector.shape_cast %17 : vector<16xf32> to vector<16x1xf32>
      %cst_14 = arith.constant 1.000000e-24 : f32
      %19 = vector.broadcast %cst_14 : f32 to vector<16x1xf32>
      %20 = arith.maximumf %18, %19 : vector<16x1xf32>
      %21 = math.rsqrt %20 : vector<16x1xf32>
      %22 = vector.broadcast %21 : vector<16x1xf32> to vector<16x128xf32>
      %23 = arith.mulf %15, %22 : vector<16x128xf32>
      %c0_15 = arith.constant 0 : index
      %c0_16 = arith.constant 0 : index
      %24 = vector.load %arg4[%c0_15, %c0_16] : memref<16x128xf32, #tpu.memory_space<vmem>>, vector<16x128xf32>
      tpu.vector_store %arg4[%c0_15, %c0_16], %23 {strides = array<i32>} : memref<16x128xf32, #tpu.memory_space<vmem>>, vector<16x128xf32>,
    } else {
    }
    return
  }
  func.func @transform_0(%arg0: i32) -> (i32, i32) {
    %c0_i32 = arith.constant 0 : i32
    %c0_i32_0 = arith.constant 0 : i32
    return %c0_i32, %arg0 : i32, i32
  }
  func.func @transform_1(%arg0: i32) -> (i32, i32) {
    %c0_i32 = arith.constant 0 : i32
    %c0_i32_0 = arith.constant 0 : i32
    return %arg0, %c0_i32 : i32, i32
  }
  func.func @transform_2(%arg0: i32) -> (i32, i32) {
    %c0_i32 = arith.constant 0 : i32
    %c0_i32_0 = arith.constant 0 : i32
    %c0_i32_1 = arith.constant 0 : i32
    return %c0_i32, %c0_i32_0 : i32, i32
  }
  func.func @transform_3(%arg0: i32) -> (i32, i32) {
    %c0_i32 = arith.constant 0 : i32
    %c0_i32_0 = arith.constant 0 : i32
    %c0_i32_1 = arith.constant 0 : i32
    return %c0_i32, %c0_i32_0 : i32, i32
  }
}

module attributes {stable_mosaic.version = 11 : i64} {
  func.func @_matmul_bn_swish_kernel(%arg0: i32, %arg1: i32, %arg2: i32, %arg3: memref<128x512xbf16, #tpu.memory_space<vmem>>, %arg4: memref<512x128xbf16, #tpu.memory_space<vmem>>, %arg5: memref<1x128xf32, #tpu.memory_space<vmem>>, %arg6: memref<1x128xf32, #tpu.memory_space<vmem>>, %arg7: memref<128x128xf32, #tpu.memory_space<vmem>>, %arg8: memref<128x128xf32, #tpu.memory_space<vmem>>) attributes {dimension_semantics = [#tpu.dimension_semantics<parallel>, #tpu.dimension_semantics<parallel>, #tpu.dimension_semantics<arbitrary>], iteration_bounds = array<i64: 1, 1, 2>, scalar_prefetch = 0 : i64, scratch_operands = 1 : i64, tpu.core_type = #tpu.core_type<tc>, window_params = [{transform_indices = @transform_0, window_bounds = array<i64: 128, 512>}, {transform_indices = @transform_1, window_bounds = array<i64: 512, 128>}, {transform_indices = @transform_2, window_bounds = array<i64: 1, 128>}, {transform_indices = @transform_3, window_bounds = array<i64: 1, 128>}, {transform_indices = @transform_4, window_bounds = array<i64: 128, 128>}]} {
    %c0_i32 = arith.constant 0 : i32
    %0 = arith.cmpi eq, %arg2, %c0_i32 : i32
    %1 = arith.extui %0 : i1 to i32
    %c0_i32_0 = arith.constant 0 : i32
    %2 = arith.cmpi ne, %1, %c0_i32_0 : i32
    scf.if %2 {
      %cst_9 = arith.constant 0.000000e+00 : f32
      %12 = vector.broadcast %cst_9 : f32 to vector<128x128xf32>
      %c0_10 = arith.constant 0 : index
      %c0_11 = arith.constant 0 : index
      %13 = vector.load %arg8[%c0_10, %c0_11] : memref<128x128xf32, #tpu.memory_space<vmem>>, vector<128x128xf32>
      tpu.vector_store %arg8[%c0_10, %c0_11], %12 {strides = array<i32>} : memref<128x128xf32, #tpu.memory_space<vmem>>, vector<128x128xf32>,
    } else {
    }
    %c0 = arith.constant 0 : index
    %c0_1 = arith.constant 0 : index
    %3 = vector.load %arg8[%c0, %c0_1] : memref<128x128xf32, #tpu.memory_space<vmem>>, vector<128x128xf32>
    %c0_2 = arith.constant 0 : index
    %c0_3 = arith.constant 0 : index
    %4 = vector.load %arg3[%c0_2, %c0_3] : memref<128x512xbf16, #tpu.memory_space<vmem>>, vector<128x512xbf16>
    %c0_4 = arith.constant 0 : index
    %c0_5 = arith.constant 0 : index
    %5 = vector.load %arg4[%c0_4, %c0_5] : memref<512x128xbf16, #tpu.memory_space<vmem>>, vector<512x128xbf16>
    %cst = arith.constant dense<0.000000e+00> : vector<128x128xf32>
    %6 = tpu.matmul %4, %5, %cst {dimension_numbers = #tpu.dot_dimension_numbers<[1], [0], [0], [1], [0, 0, 1, 1], [], []>} : vector<128x512xbf16>, vector<512x128xbf16>, vector<128x128xf32> -> vector<128x128xf32>
    %7 = arith.addf %3, %6 : vector<128x128xf32>
    %c0_6 = arith.constant 0 : index
    %c0_7 = arith.constant 0 : index
    %8 = vector.load %arg8[%c0_6, %c0_7] : memref<128x128xf32, #tpu.memory_space<vmem>>, vector<128x128xf32>
    tpu.vector_store %arg8[%c0_6, %c0_7], %7 {strides = array<i32>} : memref<128x128xf32, #tpu.memory_space<vmem>>, vector<128x128xf32>,
    %c1_i32 = arith.constant 1 : i32
    %9 = arith.cmpi eq, %arg2, %c1_i32 : i32
    %10 = arith.extui %9 : i1 to i32
    %c0_i32_8 = arith.constant 0 : i32
    %11 = arith.cmpi ne, %10, %c0_i32_8 : i32
    scf.if %11 {
      %c0_9 = arith.constant 0 : index
      %c0_10 = arith.constant 0 : index
      %12 = vector.load %arg8[%c0_9, %c0_10] : memref<128x128xf32, #tpu.memory_space<vmem>>, vector<128x128xf32>
      %c0_11 = arith.constant 0 : index
      %c0_12 = arith.constant 0 : index
      %13 = vector.load %arg5[%c0_11, %c0_12] : memref<1x128xf32, #tpu.memory_space<vmem>>, vector<1x128xf32>
      %14 = vector.broadcast %13 : vector<1x128xf32> to vector<128x128xf32>
      %15 = arith.mulf %12, %14 : vector<128x128xf32>
      %c0_13 = arith.constant 0 : index
      %c0_14 = arith.constant 0 : index
      %16 = vector.load %arg6[%c0_13, %c0_14] : memref<1x128xf32, #tpu.memory_space<vmem>>, vector<1x128xf32>
      %17 = vector.broadcast %16 : vector<1x128xf32> to vector<128x128xf32>
      %18 = arith.addf %15, %17 : vector<128x128xf32>
      %19 = arith.negf %18 : vector<128x128xf32>
      %20 = math.exp %19 : vector<128x128xf32>
      %cst_15 = arith.constant 1.000000e+00 : f32
      %21 = vector.broadcast %cst_15 : f32 to vector<128x128xf32>
      %22 = arith.addf %21, %20 : vector<128x128xf32>
      %23 = arith.divf %21, %22 : vector<128x128xf32>
      %24 = arith.mulf %18, %23 : vector<128x128xf32>
      %c0_16 = arith.constant 0 : index
      %c0_17 = arith.constant 0 : index
      %25 = vector.load %arg7[%c0_16, %c0_17] : memref<128x128xf32, #tpu.memory_space<vmem>>, vector<128x128xf32>
      tpu.vector_store %arg7[%c0_16, %c0_17], %24 {strides = array<i32>} : memref<128x128xf32, #tpu.memory_space<vmem>>, vector<128x128xf32>,
    } else {
    }
    return
  }
  func.func @transform_0(%arg0: i32, %arg1: i32, %arg2: i32) -> (i32, i32) {
    %c0_i32 = arith.constant 0 : i32
    return %arg0, %arg2 : i32, i32
  }
  func.func @transform_1(%arg0: i32, %arg1: i32, %arg2: i32) -> (i32, i32) {
    %c0_i32 = arith.constant 0 : i32
    return %arg2, %arg1 : i32, i32
  }
  func.func @transform_2(%arg0: i32, %arg1: i32, %arg2: i32) -> (i32, i32) {
    %c0_i32 = arith.constant 0 : i32
    %c0_i32_0 = arith.constant 0 : i32
    return %c0_i32, %arg1 : i32, i32
  }
  func.func @transform_3(%arg0: i32, %arg1: i32, %arg2: i32) -> (i32, i32) {
    %c0_i32 = arith.constant 0 : i32
    %c0_i32_0 = arith.constant 0 : i32
    return %c0_i32, %arg1 : i32, i32
  }
  func.func @transform_4(%arg0: i32, %arg1: i32, %arg2: i32) -> (i32, i32) {
    %c0_i32 = arith.constant 0 : i32
    return %arg0, %arg1 : i32, i32
  }
}

module attributes {stable_mosaic.version = 11 : i64} {
  func.func @_head_pool_kernel(%arg0: i32, %arg1: i32, %arg2: memref<1x64x128xbf16, #tpu.memory_space<vmem>>, %arg3: memref<128x128xbf16, #tpu.memory_space<vmem>>, %arg4: memref<1x128xf32, #tpu.memory_space<vmem>>, %arg5: memref<1x128xf32, #tpu.memory_space<vmem>>, %arg6: memref<1x1x128xf32, #tpu.memory_space<vmem>>, %arg7: memref<1x128xf32, #tpu.memory_space<vmem>>) attributes {dimension_semantics = [#tpu.dimension_semantics<parallel>, #tpu.dimension_semantics<arbitrary>], iteration_bounds = array<i64: 2, 1>, scalar_prefetch = 0 : i64, scratch_operands = 1 : i64, tpu.core_type = #tpu.core_type<tc>, window_params = [{transform_indices = @transform_0, window_bounds = array<i64: 1, 64, 128>}, {pipeline_mode = #tpu.pipeline_mode<synchronous>, transform_indices = @transform_1, window_bounds = array<i64: 128, 128>}, {pipeline_mode = #tpu.pipeline_mode<synchronous>, transform_indices = @transform_2, window_bounds = array<i64: 1, 128>}, {pipeline_mode = #tpu.pipeline_mode<synchronous>, transform_indices = @transform_3, window_bounds = array<i64: 1, 128>}, {transform_indices = @transform_4, window_bounds = array<i64: 1, 1, 128>}]} {
    %c0_i32 = arith.constant 0 : i32
    %0 = arith.cmpi eq, %arg1, %c0_i32 : i32
    %1 = arith.extui %0 : i1 to i32
    %c0_i32_0 = arith.constant 0 : i32
    %2 = arith.cmpi ne, %1, %c0_i32_0 : i32
    scf.if %2 {
      %cst_17 = arith.constant 0.000000e+00 : f32
      %27 = vector.broadcast %cst_17 : f32 to vector<1x128xf32>
      %c0_18 = arith.constant 0 : index
      %c0_19 = arith.constant 0 : index
      %28 = vector.load %arg7[%c0_18, %c0_19] : memref<1x128xf32, #tpu.memory_space<vmem>>, vector<1x128xf32>
      tpu.vector_store %arg7[%c0_18, %c0_19], %27 {strides = array<i32>} : memref<1x128xf32, #tpu.memory_space<vmem>>, vector<1x128xf32>,
    } else {
    }
    %c0 = arith.constant 0 : index
    %c0_1 = arith.constant 0 : index
    %c0_2 = arith.constant 0 : index
    %3 = vector.load %arg2[%c0, %c0_1, %c0_2] : memref<1x64x128xbf16, #tpu.memory_space<vmem>>, vector<1x64x128xbf16>
    %4 = vector.shape_cast %3 : vector<1x64x128xbf16> to vector<64x128xbf16>
    %c0_3 = arith.constant 0 : index
    %c0_4 = arith.constant 0 : index
    %5 = vector.load %arg3[%c0_3, %c0_4] : memref<128x128xbf16, #tpu.memory_space<vmem>>, vector<128x128xbf16>
    %cst = arith.constant dense<0.000000e+00> : vector<64x128xf32>
    %6 = tpu.matmul %4, %5, %cst {dimension_numbers = #tpu.dot_dimension_numbers<[1], [0], [0], [1], [0, 0, 1, 1], [], []>} : vector<64x128xbf16>, vector<128x128xbf16>, vector<64x128xf32> -> vector<64x128xf32>
    %c0_5 = arith.constant 0 : index
    %c0_6 = arith.constant 0 : index
    %7 = vector.load %arg4[%c0_5, %c0_6] : memref<1x128xf32, #tpu.memory_space<vmem>>, vector<1x128xf32>
    %8 = vector.broadcast %7 : vector<1x128xf32> to vector<64x128xf32>
    %9 = arith.mulf %6, %8 : vector<64x128xf32>
    %c0_7 = arith.constant 0 : index
    %c0_8 = arith.constant 0 : index
    %10 = vector.load %arg5[%c0_7, %c0_8] : memref<1x128xf32, #tpu.memory_space<vmem>>, vector<1x128xf32>
    %11 = vector.broadcast %10 : vector<1x128xf32> to vector<64x128xf32>
    %12 = arith.addf %9, %11 : vector<64x128xf32>
    %13 = arith.negf %12 : vector<64x128xf32>
    %14 = math.exp %13 : vector<64x128xf32>
    %cst_9 = arith.constant 1.000000e+00 : f32
    %15 = vector.broadcast %cst_9 : f32 to vector<64x128xf32>
    %16 = arith.addf %15, %14 : vector<64x128xf32>
    %17 = arith.divf %15, %16 : vector<64x128xf32>
    %18 = arith.mulf %12, %17 : vector<64x128xf32>
    %c0_10 = arith.constant 0 : index
    %c0_11 = arith.constant 0 : index
    %19 = vector.load %arg7[%c0_10, %c0_11] : memref<1x128xf32, #tpu.memory_space<vmem>>, vector<1x128xf32>
    %cst_12 = arith.constant dense<0.000000e+00> : vector<128xf32>
    %20 = vector.multi_reduction <add>, %18, %cst_12 [0] : vector<64x128xf32> to vector<128xf32>
    %21 = vector.shape_cast %20 : vector<128xf32> to vector<1x128xf32>
    %22 = arith.addf %19, %21 : vector<1x128xf32>
    %c0_13 = arith.constant 0 : index
    %c0_14 = arith.constant 0 : index
    %23 = vector.load %arg7[%c0_13, %c0_14] : memref<1x128xf32, #tpu.memory_space<vmem>>, vector<1x128xf32>
    tpu.vector_store %arg7[%c0_13, %c0_14], %22 {strides = array<i32>} : memref<1x128xf32, #tpu.memory_space<vmem>>, vector<1x128xf32>,
    %c0_i32_15 = arith.constant 0 : i32
    %24 = arith.cmpi eq, %arg1, %c0_i32_15 : i32
    %25 = arith.extui %24 : i1 to i32
    %c0_i32_16 = arith.constant 0 : i32
    %26 = arith.cmpi ne, %25, %c0_i32_16 : i32
    scf.if %26 {
      %c0_17 = arith.constant 0 : index
      %c0_18 = arith.constant 0 : index
      %27 = vector.load %arg7[%c0_17, %c0_18] : memref<1x128xf32, #tpu.memory_space<vmem>>, vector<1x128xf32>
      %cst_19 = arith.constant 1.562500e-02 : f32
      %28 = vector.broadcast %cst_19 : f32 to vector<1x128xf32>
      %29 = arith.mulf %27, %28 : vector<1x128xf32>
      %c0_20 = arith.constant 0 : index
      %c0_21 = arith.constant 0 : index
      %c0_22 = arith.constant 0 : index
      %30 = vector.load %arg6[%c0_20, %c0_21, %c0_22] : memref<1x1x128xf32, #tpu.memory_space<vmem>>, vector<1x1x128xf32>
      %31 = vector.shape_cast %30 : vector<1x1x128xf32> to vector<1x128xf32>
      %32 = vector.shape_cast %29 : vector<1x128xf32> to vector<1x1x128xf32>
      tpu.vector_store %arg6[%c0_20, %c0_21, %c0_22], %32 {strides = array<i32>} : memref<1x1x128xf32, #tpu.memory_space<vmem>>, vector<1x1x128xf32>,
    } else {
    }
    return
  }
  func.func @transform_0(%arg0: i32, %arg1: i32) -> (i32, i32, i32) {
    %c0_i32 = arith.constant 0 : i32
    %c0_i32_0 = arith.constant 0 : i32
    return %arg0, %arg1, %c0_i32 : i32, i32, i32
  }
  func.func @transform_1(%arg0: i32, %arg1: i32) -> (i32, i32) {
    %c0_i32 = arith.constant 0 : i32
    %c0_i32_0 = arith.constant 0 : i32
    %c0_i32_1 = arith.constant 0 : i32
    return %c0_i32, %c0_i32_0 : i32, i32
  }
  func.func @transform_2(%arg0: i32, %arg1: i32) -> (i32, i32) {
    %c0_i32 = arith.constant 0 : i32
    %c0_i32_0 = arith.constant 0 : i32
    %c0_i32_1 = arith.constant 0 : i32
    return %c0_i32, %c0_i32_0 : i32, i32
  }
  func.func @transform_3(%arg0: i32, %arg1: i32) -> (i32, i32) {
    %c0_i32 = arith.constant 0 : i32
    %c0_i32_0 = arith.constant 0 : i32
    %c0_i32_1 = arith.constant 0 : i32
    return %c0_i32, %c0_i32_0 : i32, i32
  }
  func.func @transform_4(%arg0: i32, %arg1: i32) -> (i32, i32, i32) {
    %c0_i32 = arith.constant 0 : i32
    %c0_i32_0 = arith.constant 0 : i32
    %c0_i32_1 = arith.constant 0 : i32
    return %arg0, %c0_i32, %c0_i32_0 : i32, i32, i32
  }
}

module attributes {stable_mosaic.version = 11 : i64} {
  func.func @_linear_l2norm_kernel(%arg0: i32, %arg1: memref<16x128xbf16, #tpu.memory_space<vmem>>, %arg2: memref<128x128xbf16, #tpu.memory_space<vmem>>, %arg3: memref<1x128xf32, #tpu.memory_space<vmem>>, %arg4: memref<16x128xf32, #tpu.memory_space<vmem>>, %arg5: memref<16x128xf32, #tpu.memory_space<vmem>>) attributes {dimension_semantics = [#tpu.dimension_semantics<arbitrary>], iteration_bounds = array<i64: 1>, scalar_prefetch = 0 : i64, scratch_operands = 1 : i64, tpu.core_type = #tpu.core_type<tc>, window_params = [{transform_indices = @transform_0, window_bounds = array<i64: 16, 128>}, {transform_indices = @transform_1, window_bounds = array<i64: 128, 128>}, {pipeline_mode = #tpu.pipeline_mode<synchronous>, transform_indices = @transform_2, window_bounds = array<i64: 1, 128>}, {pipeline_mode = #tpu.pipeline_mode<synchronous>, transform_indices = @transform_3, window_bounds = array<i64: 16, 128>}]} {
    %c0_i32 = arith.constant 0 : i32
    %0 = arith.cmpi eq, %arg0, %c0_i32 : i32
    %1 = arith.extui %0 : i1 to i32
    %c0_i32_0 = arith.constant 0 : i32
    %2 = arith.cmpi ne, %1, %c0_i32_0 : i32
    scf.if %2 {
      %cst_10 = arith.constant 0.000000e+00 : f32
      %12 = vector.broadcast %cst_10 : f32 to vector<16x128xf32>
      %c0_11 = arith.constant 0 : index
      %c0_12 = arith.constant 0 : index
      %13 = vector.load %arg5[%c0_11, %c0_12] : memref<16x128xf32, #tpu.memory_space<vmem>>, vector<16x128xf32>
      tpu.vector_store %arg5[%c0_11, %c0_12], %12 {strides = array<i32>} : memref<16x128xf32, #tpu.memory_space<vmem>>, vector<16x128xf32>,
    } else {
    }
    %c0 = arith.constant 0 : index
    %c0_1 = arith.constant 0 : index
    %3 = vector.load %arg5[%c0, %c0_1] : memref<16x128xf32, #tpu.memory_space<vmem>>, vector<16x128xf32>
    %c0_2 = arith.constant 0 : index
    %c0_3 = arith.constant 0 : index
    %4 = vector.load %arg1[%c0_2, %c0_3] : memref<16x128xbf16, #tpu.memory_space<vmem>>, vector<16x128xbf16>
    %c0_4 = arith.constant 0 : index
    %c0_5 = arith.constant 0 : index
    %5 = vector.load %arg2[%c0_4, %c0_5] : memref<128x128xbf16, #tpu.memory_space<vmem>>, vector<128x128xbf16>
    %cst = arith.constant dense<0.000000e+00> : vector<16x128xf32>
    %6 = tpu.matmul %4, %5, %cst {dimension_numbers = #tpu.dot_dimension_numbers<[1], [0], [0], [1], [0, 0, 1, 1], [], []>} : vector<16x128xbf16>, vector<128x128xbf16>, vector<16x128xf32> -> vector<16x128xf32>
    %7 = arith.addf %3, %6 : vector<16x128xf32>
    %c0_6 = arith.constant 0 : index
    %c0_7 = arith.constant 0 : index
    %8 = vector.load %arg5[%c0_6, %c0_7] : memref<16x128xf32, #tpu.memory_space<vmem>>, vector<16x128xf32>
    tpu.vector_store %arg5[%c0_6, %c0_7], %7 {strides = array<i32>} : memref<16x128xf32, #tpu.memory_space<vmem>>, vector<16x128xf32>,
    %c0_i32_8 = arith.constant 0 : i32
    %9 = arith.cmpi eq, %arg0, %c0_i32_8 : i32
    %10 = arith.extui %9 : i1 to i32
    %c0_i32_9 = arith.constant 0 : i32
    %11 = arith.cmpi ne, %10, %c0_i32_9 : i32
    scf.if %11 {
      %c0_10 = arith.constant 0 : index
      %c0_11 = arith.constant 0 : index
      %12 = vector.load %arg5[%c0_10, %c0_11] : memref<16x128xf32, #tpu.memory_space<vmem>>, vector<16x128xf32>
      %c0_12 = arith.constant 0 : index
      %c0_13 = arith.constant 0 : index
      %13 = vector.load %arg3[%c0_12, %c0_13] : memref<1x128xf32, #tpu.memory_space<vmem>>, vector<1x128xf32>
      %14 = vector.broadcast %13 : vector<1x128xf32> to vector<16x128xf32>
      %15 = arith.addf %12, %14 : vector<16x128xf32>
      %16 = arith.mulf %15, %15 : vector<16x128xf32>
      %cst_14 = arith.constant dense<0.000000e+00> : vector<16xf32>
      %17 = vector.multi_reduction <add>, %16, %cst_14 [1] : vector<16x128xf32> to vector<16xf32>
      %18 = vector.shape_cast %17 : vector<16xf32> to vector<16x1xf32>
      %cst_15 = arith.constant 1.000000e-24 : f32
      %19 = vector.broadcast %cst_15 : f32 to vector<16x1xf32>
      %20 = arith.maximumf %18, %19 : vector<16x1xf32>
      %21 = math.rsqrt %20 : vector<16x1xf32>
      %22 = vector.broadcast %21 : vector<16x1xf32> to vector<16x128xf32>
      %23 = arith.mulf %15, %22 : vector<16x128xf32>
      %c0_16 = arith.constant 0 : index
      %c0_17 = arith.constant 0 : index
      %24 = vector.load %arg4[%c0_16, %c0_17] : memref<16x128xf32, #tpu.memory_space<vmem>>, vector<16x128xf32>
      tpu.vector_store %arg4[%c0_16, %c0_17], %23 {strides = array<i32>} : memref<16x128xf32, #tpu.memory_space<vmem>>, vector<16x128xf32>,
    } else {
    }
    return
  }
  func.func @transform_0(%arg0: i32) -> (i32, i32) {
    %c0_i32 = arith.constant 0 : i32
    %c0_i32_0 = arith.constant 0 : i32
    return %c0_i32, %arg0 : i32, i32
  }
  func.func @transform_1(%arg0: i32) -> (i32, i32) {
    %c0_i32 = arith.constant 0 : i32
    %c0_i32_0 = arith.constant 0 : i32
    return %arg0, %c0_i32 : i32, i32
  }
  func.func @transform_2(%arg0: i32) -> (i32, i32) {
    %c0_i32 = arith.constant 0 : i32
    %c0_i32_0 = arith.constant 0 : i32
    %c0_i32_1 = arith.constant 0 : i32
    return %c0_i32, %c0_i32_0 : i32, i32
  }
  func.func @transform_3(%arg0: i32) -> (i32, i32) {
    %c0_i32 = arith.constant 0 : i32
    %c0_i32_0 = arith.constant 0 : i32
    %c0_i32_1 = arith.constant 0 : i32
    return %c0_i32, %c0_i32_0 : i32, i32
  }
}

</mosaic_0001>

<bundles_post_ra>
// kernel: efficient_syncnet_color_forward.9
= control target key start
LH: loop header
LB: loop body
LE: loop exit
PB: predicated region body
PF: predicated region fallthrough
CT: control target
= control target key end

     0   :  { %s1233_s1 = inlined_call_operand.vmem [shape: bf16[128,128], index: 1, kind: input, shape index: {}]   ;;  %s1234_s2 = inlined_call_operand.vmem [shape: f32[1,128], index: 2, kind: input, shape index: {}]   ;;  %s1235_s3 = inlined_call_operand.vmem [shape: f32[1,128], index: 3, kind: input, shape index: {}]   ;;  %s1236_s0 = inlined_call_operand.vmem [shape: bf16[128,128], index: 0, kind: input, shape index: {}]   ;;  %s1237_s4 = inlined_call_operand.vmem [shape: f32[128,128], index: 4, kind: output, shape index: {}]  }
   0x1   :  { %v756_v0 = vld [vmem:[%s1233_s1 + $0x38] sm:$0xff]  ;;  %v755_v1 = vld [vmem:[%s1233_s1 + $0x30] sm:$0xff]  ;;  %v754_v2 = vld [vmem:[%s1233_s1 + $0x28] sm:$0xff] }
   0x2   :  { %181 = vmatpush.bf16.msra.mxu0 %v756_v0  ;;  %757 = vmatpush.bf16.msra.mxu1 %v756_v0  ;;  %v753_v3 = vld [vmem:[%s1233_s1 + $0x20] sm:$0xff]  ;;  %v752_v4 = vld [vmem:[%s1233_s1 + $0x18] sm:$0xff]  ;;  %v751_v5 = vld [vmem:[%s1233_s1 + $0x10] sm:$0xff] }
   0x3   :  { %758 = vmatpush.bf16.msra.mxu2 %v756_v0  ;;  %759 = vmatpush.bf16.msra.mxu3 %v756_v0  ;;  %v750_v6 = vld [vmem:[%s1233_s1 + $0x8] sm:$0xff]  ;;  %v749_v7 = vld [vmem:[%s1233_s1] sm:$0xff]  ;;  %v743_v9 = vld [vmem:[%s1236_s0 + $0x10] sm:$0xff] }
   0x4   :  { %v741_v8 = vld [vmem:[%s1236_s0] sm:$0xff]  ;;  %v747_v11 = vld [vmem:[%s1236_s0 + $0x30] sm:$0xff]  ;;  %v742_v12 = vld [vmem:[%s1236_s0 + $0x8] sm:$0xff] }
   0x5   :  { %v745_v10 = vld [vmem:[%s1236_s0 + $0x20] sm:$0xff]  ;;  %v744_v13 = vld [vmem:[%s1236_s0 + $0x18] sm:$0xff]  ;;  %v746_v14 = vld [vmem:[%s1236_s0 + $0x28] sm:$0xff] }
   0x6   :  { %182 = vmatpush.bf16.msra.mxu0 %v755_v1  ;;  %760 = vmatpush.bf16.msra.mxu1 %v755_v1  ;;  %v748_v15 = vld [vmem:[%s1236_s0 + $0x38] sm:$0xff]  ;;  %v923_v16 = vld [vmem:[%s1234_s2] ss:$0 sm:$0xff] }
   0x7   :  { %761 = vmatpush.bf16.msra.mxu2 %v755_v1  ;;  %762 = vmatpush.bf16.msra.mxu3 %v755_v1  ;;  %v928_v17 = vld [vmem:[%s1235_s3] ss:$0 sm:$0xff] }
   0xa   :  { %183 = vmatpush.bf16.msra.mxu0 %v754_v2  ;;  %763 = vmatpush.bf16.msra.mxu1 %v754_v2 }
   0xb   :  { %764 = vmatpush.bf16.msra.mxu2 %v754_v2  ;;  %765 = vmatpush.bf16.msra.mxu3 %v754_v2 }
   0xe   :  { %184 = vmatpush.bf16.msra.mxu0 %v753_v3  ;;  %766 = vmatpush.bf16.msra.mxu1 %v753_v3 }
   0xf   :  { %767 = vmatpush.bf16.msra.mxu2 %v753_v3  ;;  %768 = vmatpush.bf16.msra.mxu3 %v753_v3 }
  0x12   :  { %185 = vmatpush.bf16.msra.mxu0 %v752_v4  ;;  %769 = vmatpush.bf16.msra.mxu1 %v752_v4 }
  0x13   :  { %770 = vmatpush.bf16.msra.mxu2 %v752_v4  ;;  %771 = vmatpush.bf16.msra.mxu3 %v752_v4 }
  0x16   :  { %186 = vmatpush.bf16.msra.mxu0 %v751_v5  ;;  %772 = vmatpush.bf16.msra.mxu1 %v751_v5 }
  0x17   :  { %773 = vmatpush.bf16.msra.mxu2 %v751_v5  ;;  %774 = vmatpush.bf16.msra.mxu3 %v751_v5 }
  0x1a   :  { %187 = vmatpush.bf16.msra.mxu0 %v750_v6  ;;  %775 = vmatpush.bf16.msra.mxu1 %v750_v6 }
  0x1b   :  { %776 = vmatpush.bf16.msra.mxu2 %v750_v6  ;;  %777 = vmatpush.bf16.msra.mxu3 %v750_v6 }
  0x1e   :  { %188 = vmatpush.bf16.msra.mxu0 %v749_v7  ;;  %778 = vmatpush.bf16.msra.mxu1 %v749_v7 }
  0x1f   :  { %779 = vmatpush.bf16.msra.mxu2 %v749_v7  ;;  %780 = vmatpush.bf16.msra.mxu3 %v749_v7 }
  0x21   :  { %189 = vmatmul.bf16.vlgmr.msra.gmra.mxu0 %v741_v8  ;;  %199 = vmatmul.bf16.vlgmr.msra.gmra.mxu1 %v743_v9 }
  0x22   :  { %209 = vmatmul.bf16.vlgmr.msra.gmra.mxu2 %v745_v10  ;;  %219 = vmatmul.bf16.vlgmr.msra.gmra.mxu3 %v747_v11 }
  0x31   :  { %194 = vmatmul.bf16.gmra.mxu0 %v742_v12  ;;  %204 = vmatmul.bf16.gmra.mxu1 %v744_v13 }
  0x32   :  { %214 = vmatmul.bf16.gmra.mxu2 %v746_v14  ;;  %224 = vmatmul.bf16.gmra.mxu3 %v748_v15 }
  0x9e   :  { %v190_v18 = vpop.f32.mrf.mxu0  ;;  %v200_v19 = vpop.f32.mrf.mxu1 }
  0x9f   :  { %v285_v20 = vmul.f32 %v923_v16, %v190_v18  ;;  %v289_v21 = vmul.f32 %v923_v16, %v200_v19 }
  0xa1   :  { %v933_v22 = vadd.f32 %v928_v17, %v285_v20  ;;  %v936_v23 = vadd.f32 %v928_v17, %v289_v21 }
  0xa3   :  { %v725_v24 = vmul.f32 -1.442695, %v933_v22  ;;  %v729_v25 = vmul.f32 -1.442695, %v936_v23 }
  0xa5   :  { %783 = vpow2.f32 %v725_v24  ;;  %v210_v26 = vpop.f32.mrf.mxu2  ;;  %v220_v27 = vpop.f32.mrf.mxu3 }
  0xa6   :  { %785 = vpow2.f32 %v729_v25  ;;  %v293_v28 = vmul.f32 %v923_v16, %v210_v26  ;;  %v297_v29 = vmul.f32 %v923_v16, %v220_v27  ;;  %v192_v30 = vpop.f32.mrf.mxu0  ;;  %v202_v31 = vpop.f32.mrf.mxu1 }
  0xa7   :  { %v286_v32 = vmul.f32 %v923_v16, %v192_v30  ;;  %v290_v33 = vmul.f32 %v923_v16, %v202_v31 }
  0xa8   :  { %v945_v34 = vadd.f32 %v928_v17, %v293_v28  ;;  %v948_v35 = vadd.f32 %v928_v17, %v297_v29 }
  0xa9   :  { %v951_v36 = vadd.f32 %v928_v17, %v286_v32  ;;  %v954_v37 = vadd.f32 %v928_v17, %v290_v33 }
  0xaa   :  { %v733_v38 = vmul.f32 -1.442695, %v945_v34  ;;  %v737_v39 = vmul.f32 -1.442695, %v948_v35 }
  0xab   :  { %v784_v40 = vpop.eup %783  ;;  %v726_v43 = vmul.f32 -1.442695, %v951_v36  ;;  %v730_v45 = vmul.f32 -1.442695, %v954_v37 }
  0xac   :  { %v786_v41 = vpop.eup %785  ;;  %v369_v42 = vadd.f32 1.0, %v784_v40  ;;  %787 = vpow2.f32 %v733_v38 }
  0xad   :  { %v959_v44 = vadd.f32 1.0, %v786_v41  ;;  %789 = vpow2.f32 %v737_v39  ;;  %v212_v46 = vpop.f32.mrf.mxu2  ;;  %v222_v48 = vpop.f32.mrf.mxu3 }
  0xae   :  { %791 = vrcp.f32 %v369_v42  ;;  %v294_v47 = vmul.f32 %v923_v16, %v212_v46  ;;  %v394_v49 = vand.u32 2147483647, %v369_v42  ;;  %v396_v50 = vand.u32 2147483648, %v369_v42  ;;  %v195_v51 = vpop.f32.mrf.mxu0  ;;  %v205_v59 = vpop.f32.mrf.mxu1 }
  0xaf   :  { %793 = vrcp.f32 %v959_v44  ;;  %v454_v53 = vand.u32 2147483647, %v959_v44  ;;  %v456_v56 = vand.u32 2147483648, %v959_v44  ;;  %v298_v58 = vmul.f32 %v923_v16, %v222_v48 }
  0xb0   :  { %795 = vpow2.f32 %v726_v43  ;;  %v966_v54 = vadd.f32 %v928_v17, %v294_v47  ;;  %vm390_vm0 = vweird.f32 %v369_v42  ;;  %vm450_vm1 = vweird.f32 %v959_v44 }
  0xb1   :  { %797 = vpow2.f32 %v730_v45  ;;  %v287_v62 = vmul.f32 %v923_v16, %v195_v51  ;;  %vm976_vm2 = vcmp.eq.f32.partialorder %v394_v49, 8.507059e+37  ;;  %v397_v2 = vor.u32 1.1754944e-38, %v396_v50 }
  0xb2   :  { %v788_v52 = vpop.eup %787  ;;  %vm982_vm3 = vcmp.eq.f32.partialorder %v454_v53, 8.507059e+37  ;;  %v734_v6 = vmul.f32 -1.442695, %v966_v54  ;;  %v291_v7 = vmul.f32 %v923_v16, %v205_v59  ;;  %v457_v10 = vor.u32 1.1754944e-38, %v456_v56 }
  0xb3   :  { %v790_v55 = vpop.eup %789  ;;  %v969_v57 = vadd.f32 1.0, %v788_v52  ;;  %v990_v11 = vadd.f32 %v928_v17, %v298_v58  ;;  %v995_v15 = vadd.f32 %v928_v17, %v287_v62 }
  0xb4   :  { %v792_v60 = vpop.eup %791  ;;  %v973_v61 = vadd.f32 1.0, %v790_v55  ;;  %v1002_v24 = vadd.f32 %v928_v17, %v291_v7 }
  0xb5   :  { %v794_v63 = vpop.eup %793  ;;  %v386_v0 = vmul.f32 %v792_v60, %v369_v42  ;;  %799 = vrcp.f32 %v969_v57  ;;  %v514_v13 = vand.u32 2147483647, %v969_v57  ;;  %v516_v14 = vand.u32 2147483648, %v969_v57 }
  0xb6   :  { %v796_v3 = vpop.eup %795  ;;  %v446_v4 = vmul.f32 %v794_v63, %v959_v44  ;;  %801 = vrcp.f32 %v973_v61  ;;  %vm391_vm4 = vweird.f32 %v792_v60  ;;  %vm451_vm5 = vweird.f32 %v794_v63 }
  0xb7   :  { %v798_v8 = vpop.eup %797  ;;  %v387_v9 = vsub.f32 1.0, %v386_v0  ;;  %v997_v19 = vadd.f32 1.0, %v796_v3  ;;  %803 = vpow2.f32 %v734_v6  ;;  %vm510_vm6 = vweird.f32 %v969_v57  ;;  %vm392_vm7 = vmor %vm390_vm0, %vm391_vm4 }
  0xb8   :  { %v447_v12 = vsub.f32 1.0, %v446_v4  ;;  %v999_v20 = vadd.f32 1.0, %v798_v8  ;;  %v574_v27 = vand.u32 2147483647, %v973_v61  ;;  %vm1009_vm8 = vcmp.eq.f32.partialorder %v514_v13, 8.507059e+37  ;;  %vm452_vm10 = vmor %vm450_vm1, %vm451_vm5 }
  0xb9   :  { %v388_v18 = vmul.f32 %v792_v60, %v387_v9  ;;  %805 = vrcp.f32 %v997_v19  ;;  %v517_v31 = vor.u32 1.1754944e-38, %v516_v14  ;;  %vm570_vm9 = vweird.f32 %v973_v61  ;;  %v215_v9 = vpop.f32.mrf.mxu2 }
  0xba   :  { %v448_v21 = vmul.f32 %v794_v63, %v447_v12  ;;  %v576_v38 = vand.u32 2147483648, %v973_v61  ;;  %807 = vrcp.f32 %v999_v20  ;;  %v738_v39 = vmul.f32 -1.442695, %v990_v11 }
  0xbb   :  { %v800_v25 = vpop.eup %799  ;;  %v389_v26 = vadd.f32 %v792_v60, %v388_v18  ;;  %vm1026_vm11 = vcmp.eq.f32.partialorder %v574_v27, 8.507059e+37  ;;  %v409_v47 = vand.u32 2147483647, %v997_v19  ;;  %vm405_vm13 = vweird.f32 %v997_v19  ;;  %v225_v18 = vpop.f32.mrf.mxu3 }
  0xbc   :  { %v449_v28 = vadd.f32 %v794_v63, %v448_v21  ;;  %v506_v29 = vmul.f32 %v800_v25, %v969_v57  ;;  %v802_v32 = vpop.eup %801  ;;  %vm511_vm12 = vweird.f32 %v800_v25  ;;  %809 = vpow2.f32 %v738_v39  ;;  %v197_v21 = vpop.f32.mrf.mxu0 }
  0xbd   :  { %v393_v33 = vsel %vm392_vm7, %v792_v60, %v389_v26  ;;  %v566_v43 = vmul.f32 %v802_v32, %v973_v61  ;;  %v804_v48 = vpop.eup %803  ;;  %vm571_vm14 = vweird.f32 %v802_v32  ;;  %vm512_vm15 = vmor %vm510_vm6, %vm511_vm12  ;;  %vm1044_vm0 = vcmp.eq.f32.partialorder %v409_v47, 8.507059e+37 }
  0xbe   :  { %v398_v40 = vsel %vm976_vm2, %v397_v2, %v393_v33  ;;  %v453_v41 = vsel %vm452_vm10, %v794_v63, %v449_v28  ;;  %v507_v42 = vsub.f32 1.0, %v506_v29  ;;  %v1036_v53 = vadd.f32 1.0, %v804_v48  ;;  %vm572_vm1 = vmor %vm570_vm9, %vm571_vm14 }
  0xbf   :  { %v625_v45 = vmul.f32 %v398_v40, %v933_v22  ;;  %v458_v46 = vsel %vm982_vm3, %v457_v10, %v453_v41  ;;  %v567_v51 = vsub.f32 1.0, %v566_v43  ;;  %v806_v52 = vpop.eup %805  ;;  %v577_v22 = vor.u32 1.1754944e-38, %v576_v38  ;;  %v207_v43 = vpop.f32.mrf.mxu1 }
  0xc0   :  { %v629_v49 = vmul.f32 %v458_v46, %v936_v23  ;;  %v508_v50 = vmul.f32 %v800_v25, %v507_v42  ;;  %v401_v56 = vmul.f32 %v806_v52, %v997_v19  ;;  %v808_v58 = vpop.eup %807  ;;  %v411_v60 = vand.u32 2147483648, %v997_v19 }
  0xc1   :  { %641 = vst [vmem:[%s1237_s4] sm:$0xff] %v625_v45  ;;  %v568_v23 = vmul.f32 %v802_v32, %v567_v51  ;;  %811 = vrcp.f32 %v1036_v53  ;;  %v727_v62 = vmul.f32 -1.442695, %v995_v15  ;;  %v461_v2 = vmul.f32 %v808_v58, %v999_v20 }
  0xc2   :  { %645 = vst [vmem:[%s1237_s4 + $0x20] sm:$0xff] %v629_v49  ;;  %v509_v55 = vadd.f32 %v800_v25, %v508_v50  ;;  %v402_v1 = vsub.f32 1.0, %v401_v56  ;;  %vm406_vm2 = vweird.f32 %v806_v52  ;;  %v469_v57 = vand.u32 2147483647, %v999_v20  ;;  %v810_v10 = vpop.eup %809 }
  0xc3   :  { %v569_v0 = vadd.f32 %v802_v32, %v568_v23  ;;  %v471_v4 = vand.u32 2147483648, %v999_v20  ;;  %v462_v8 = vsub.f32 1.0, %v461_v2  ;;  %vm465_vm3 = vweird.f32 %v999_v20  ;;  %vm407_vm5 = vmor %vm405_vm13, %vm406_vm2  ;;  %v217_v2 = vpop.f32.mrf.mxu2 }
  0xc4   :  { %v513_v63 = vsel %vm512_vm15, %v800_v25, %v509_v55  ;;  %v403_v7 = vmul.f32 %v806_v52, %v402_v1  ;;  %vm466_vm4 = vweird.f32 %v808_v58  ;;  %813 = vpow2.f32 %v727_v62  ;;  %v227_v62 = vpop.f32.mrf.mxu3 }
  0xc5   :  { %v518_v3 = vsel %vm1009_vm8, %v517_v31, %v513_v63  ;;  %v573_v6 = vsel %vm572_vm1, %v802_v32, %v569_v0  ;;  %v1066_v14 = vadd.f32 1.0, %v810_v10  ;;  %v412_v26 = vor.u32 1.1754944e-38, %v411_v60  ;;  %vm467_vm7 = vmor %vm465_vm3, %vm466_vm4 }
  0xc6   :  { %v633_v5 = vmul.f32 %v518_v3, %v945_v34  ;;  %v578_v12 = vsel %vm1026_vm11, %v577_v22, %v573_v6  ;;  %v404_v13 = vadd.f32 %v806_v52, %v403_v7  ;;  %v463_v34 = vmul.f32 %v808_v58, %v462_v8 }
  0xc7   :  { %v637_v61 = vmul.f32 %v578_v12, %v948_v35  ;;  %v812_v25 = vpop.eup %811  ;;  %vm1071_vm6 = vcmp.eq.f32.partialorder %v469_v57, 8.507059e+37  ;;  %v731_v28 = vmul.f32 -1.442695, %v1002_v24  ;;  %v295_v35 = vmul.f32 %v923_v16, %v215_v9 }
  0xc8   :  { %649 = vst [vmem:[%s1237_s4 + $0x40] sm:$0xff] %v633_v5  ;;  %v408_v29 = vsel %vm407_vm5, %v806_v52, %v404_v13  ;;  %v464_v30 = vadd.f32 %v808_v58, %v463_v34  ;;  %v472_v31 = vor.u32 1.1754944e-38, %v471_v4  ;;  %v521_v32 = vmul.f32 %v812_v25, %v1036_v53 }
  0xc9   :  { %653 = vst [vmem:[%s1237_s4 + $0x60] sm:$0xff] %v637_v61  ;;  %v413_v19 = vsel %vm1044_vm0, %v412_v26, %v408_v29  ;;  %815 = vrcp.f32 %v1066_v14  ;;  %v299_v33 = vmul.f32 %v923_v16, %v225_v18  ;;  %v288_v38 = vmul.f32 %v923_v16, %v197_v21 }
  0xca   :  { %v626_v39 = vmul.f32 %v413_v19, %v951_v36  ;;  %v468_v40 = vsel %vm467_vm7, %v808_v58, %v464_v30  ;;  %v522_v41 = vsub.f32 1.0, %v521_v32  ;;  %v529_v42 = vand.u32 2147483647, %v1036_v53  ;;  %v814_v45 = vpop.eup %813 }
  0xcb   :  { %v473_v46 = vsel %vm1071_vm6, %v472_v31, %v468_v40  ;;  %v531_v20 = vand.u32 2147483648, %v1036_v53  ;;  %817 = vpow2.f32 %v731_v28  ;;  %v1095_v44 = vadd.f32 %v928_v17, %v295_v35 }
  0xcc   :  { %642 = vst [vmem:[%s1237_s4 + $0x8] sm:$0xff] %v626_v39  ;;  %v630_v36 = vmul.f32 %v473_v46, %v954_v37  ;;  %v523_v47 = vmul.f32 %v812_v25, %v522_v41  ;;  %vm526_vm8 = vweird.f32 %v812_v25  ;;  %v1101_v48 = vadd.f32 1.0, %v814_v45 }
  0xcd   :  { %v735_v49 = vmul.f32 -1.442695, %v1095_v44  ;;  %v1105_v50 = vadd.f32 %v928_v17, %v299_v33  ;;  %v1108_v51 = vadd.f32 %v928_v17, %v288_v38  ;;  %v292_v52 = vmul.f32 %v923_v16, %v207_v43 }
  0xce   :  { %646 = vst [vmem:[%s1237_s4 + $0x28] sm:$0xff] %v630_v36  ;;  %v524_v22 = vadd.f32 %v812_v25, %v523_v47  ;;  %vm525_vm9 = vweird.f32 %v1036_v53  ;;  %819 = vrcp.f32 %v1101_v48  ;;  %v532_v55 = vor.u32 1.1754944e-38, %v531_v20 }
  0xcf   :  { %v816_v37 = vpop.eup %815  ;;  %vm527_vm10 = vmor %vm525_vm9, %vm526_vm8  ;;  %821 = vpow2.f32 %v735_v49  ;;  %v739_v23 = vmul.f32 -1.442695, %v1105_v50  ;;  %v728_v56 = vmul.f32 -1.442695, %v1108_v51  ;;  %vm530_vm11 = vcmp.eq.f32.partialorder %v529_v42, 8.507059e+37 }
  0xd0   :  { %v528_v58 = vsel %vm527_vm10, %v812_v25, %v524_v22  ;;  %v581_v59 = vmul.f32 %v816_v37, %v1066_v14  ;;  %v589_v60 = vand.u32 2147483647, %v1066_v14  ;;  %v591_v53 = vand.u32 2147483648, %v1066_v14 }
  0xd1   :  { %v818_v63 = vpop.eup %817  ;;  %v533_v0 = vsel %vm530_vm11, %v532_v55, %v528_v58  ;;  %823 = vpow2.f32 %v739_v23  ;;  %v1122_v1 = vadd.f32 %v928_v17, %v292_v52  ;;  %v300_v6 = vmul.f32 %v923_v16, %v227_v62 }
  0xd2   :  { %v634_v3 = vmul.f32 %v533_v0, %v966_v54  ;;  %v582_v57 = vsub.f32 1.0, %v581_v59  ;;  %v1125_v4 = vadd.f32 1.0, %v818_v63  ;;  %825 = vpow2.f32 %v728_v56 }
  0xd3   :  { %v732_v5 = vmul.f32 -1.442695, %v1122_v1  ;;  %vm586_vm12 = vweird.f32 %v816_v37  ;;  %v296_v9 = vmul.f32 %v923_v16, %v217_v2  ;;  %vm585_vm13 = vweird.f32 %v1066_v14 }
  0xd4   :  { %v820_v7 = vpop.eup %819  ;;  %650 = vst [vmem:[%s1237_s4 + $0x48] sm:$0xff] %v634_v3  ;;  %v583_v8 = vmul.f32 %v816_v37, %v582_v57  ;;  %827 = vrcp.f32 %v1125_v4  ;;  %vm1135_vm14 = vcmp.eq.f32.partialorder %v589_v60, 8.507059e+37  ;;  %v592_v13 = vor.u32 1.1754944e-38, %v591_v53  ;;  %vm587_vm0 = vmor %vm585_vm13, %vm586_vm12 }
  0xd5   :  { %v822_v54 = vpop.eup %821  ;;  %v416_v12 = vmul.f32 %v820_v7, %v1101_v48  ;;  %vm420_vm15 = vweird.f32 %v1101_v48  ;;  %v424_v16 = vand.u32 2147483647, %v1101_v48  ;;  %829 = vpow2.f32 %v732_v5 }
  0xd6   :  { %v584_v61 = vadd.f32 %v816_v37, %v583_v8  ;;  %v1141_v34 = vadd.f32 1.0, %v822_v54  ;;  %v1145_v14 = vadd.f32 %v928_v17, %v300_v6  ;;  %v426_v27 = vand.u32 2147483648, %v1101_v48 }
  0xd7   :  { %v824_v18 = vpop.eup %823  ;;  %v417_v21 = vsub.f32 1.0, %v416_v12  ;;  %v1150_v28 = vadd.f32 %v928_v17, %v296_v9  ;;  %vm421_vm1 = vweird.f32 %v820_v7  ;;  %vm425_vm2 = vcmp.eq.f32.partialorder %v424_v16, 8.507059e+37 }
  0xd8   :  { %v826_v25 = vpop.eup %825  ;;  %v588_v26 = vsel %vm587_vm0, %v816_v37, %v584_v61  ;;  %831 = vrcp.f32 %v1141_v34  ;;  %v1154_v30 = vadd.f32 1.0, %v824_v18  ;;  %vm422_vm3 = vmor %vm420_vm15, %vm421_vm1  ;;  %v427_v17 = vor.u32 1.1754944e-38, %v426_v27 }
  0xd9   :  { %v593_v35 = vsel %vm1135_vm14, %v592_v13, %v588_v26  ;;  %v418_v29 = vmul.f32 %v820_v7, %v417_v21  ;;  %v1157_v19 = vadd.f32 1.0, %v826_v25  ;;  %v484_v39 = vand.u32 2147483647, %v1125_v4 }
  0xda   :  { %v828_v31 = vpop.eup %827  ;;  %v638_v32 = vmul.f32 %v593_v35, %v990_v11  ;;  %833 = vrcp.f32 %v1154_v30  ;;  %v736_v11 = vmul.f32 -1.442695, %v1150_v28  ;;  %v486_v43 = vand.u32 2147483648, %v1125_v4 }
  0xdb   :  { %v419_v33 = vadd.f32 %v820_v7, %v418_v29  ;;  %v476_v38 = vmul.f32 %v828_v31, %v1125_v4  ;;  %v830_v40 = vpop.eup %829  ;;  %835 = vrcp.f32 %v1157_v19  ;;  %vm480_vm4 = vweird.f32 %v1125_v4 }
  0xdc   :  { %654 = vst [vmem:[%s1237_s4 + $0x68] sm:$0xff] %v638_v32  ;;  %v544_v20 = vand.u32 2147483647, %v1141_v34  ;;  %vm481_vm5 = vweird.f32 %v828_v31  ;;  %v546_v49 = vand.u32 2147483648, %v1141_v34  ;;  %v1175_v52 = vadd.f32 1.0, %v830_v40 }
  0xdd   :  { %v423_v41 = vsel %vm422_vm3, %v820_v7, %v419_v33  ;;  %v477_v42 = vsub.f32 1.0, %v476_v38  ;;  %837 = vpow2.f32 %v736_v11  ;;  %vm485_vm6 = vcmp.eq.f32.partialorder %v484_v39, 8.507059e+37  ;;  %vm482_vm7 = vmor %vm480_vm4, %vm481_vm5 }
  0xde   :  { %v832_v45 = vpop.eup %831  ;;  %v428_v46 = vsel %vm425_vm2, %v427_v17, %v423_v41  ;;  %v487_v37 = vor.u32 1.1754944e-38, %v486_v43  ;;  %vm540_vm8 = vweird.f32 %v1141_v34  ;;  %vm1183_vm9 = vcmp.eq.f32.partialorder %v544_v20, 8.507059e+37 }
  0xdf   :  { %v627_v36 = vmul.f32 %v428_v46, %v995_v15  ;;  %v478_v47 = vmul.f32 %v828_v31, %v477_v42  ;;  %v536_v48 = vmul.f32 %v832_v45, %v1141_v34  ;;  %839 = vrcp.f32 %v1175_v52 }
  0xe0   :  { %v834_v23 = vpop.eup %833  ;;  %v740_v56 = vmul.f32 -1.442695, %v1145_v14  ;;  %vm541_vm10 = vweird.f32 %v832_v45  ;;  %v547_v0 = vor.u32 1.1754944e-38, %v546_v49  ;;  %v604_v53 = vand.u32 2147483647, %v1154_v30 }
  0xe1   :  { %643 = vst [vmem:[%s1237_s4 + $0x10] sm:$0xff] %v627_v36  ;;  %v479_v22 = vadd.f32 %v828_v31, %v478_v47  ;;  %v537_v55 = vsub.f32 1.0, %v536_v48  ;;  %v836_v58 = vpop.eup %835  ;;  %v596_v62 = vmul.f32 %v834_v23, %v1154_v30  ;;  %v606_v5 = vand.u32 2147483648, %v1154_v30  ;;  %vm542_vm11 = vmor %vm540_vm8, %vm541_vm10 }
  0xe2   :  { %v431_v2 = vmul.f32 %v836_v58, %v1157_v19  ;;  %v439_v8 = vand.u32 2147483647, %v1157_v19  ;;  %v441_v9 = vand.u32 2147483648, %v1157_v19  ;;  %841 = vpow2.f32 %v740_v56 }
  0xe3   :  { %v483_v59 = vsel %vm482_vm7, %v828_v31, %v479_v22  ;;  %v538_v60 = vmul.f32 %v832_v45, %v537_v55  ;;  %v597_v4 = vsub.f32 1.0, %v596_v62  ;;  %v838_v6 = vpop.eup %837  ;;  %vm601_vm12 = vweird.f32 %v834_v23 }
  0xe4   :  { %v488_v63 = vsel %vm485_vm6, %v487_v37, %v483_v59  ;;  %v432_v7 = vsub.f32 1.0, %v431_v2  ;;  %v380_v10 = vadd.f32 1.0, %v838_v6  ;;  %vm600_vm13 = vweird.f32 %v1154_v30 }
  0xe5   :  { %v631_v3 = vmul.f32 %v488_v63, %v1002_v24  ;;  %v539_v57 = vadd.f32 %v832_v45, %v538_v60  ;;  %v598_v24 = vmul.f32 %v834_v23, %v597_v4  ;;  %v840_v12 = vpop.eup %839  ;;  %vm436_vm14 = vweird.f32 %v836_v58  ;;  %vm602_vm0 = vmor %vm600_vm13, %vm601_vm12 }
  0xe6   :  { %v433_v13 = vmul.f32 %v836_v58, %v432_v7  ;;  %vm435_vm15 = vweird.f32 %v1157_v19  ;;  %v491_v21 = vmul.f32 %v840_v12, %v1175_v52  ;;  %vm605_vm1 = vcmp.eq.f32.partialorder %v604_v53, 8.507059e+37 }
  0xe7   :  { %647 = vst [vmem:[%s1237_s4 + $0x30] sm:$0xff] %v631_v3  ;;  %v543_v54 = vsel %vm542_vm11, %v832_v45, %v539_v57  ;;  %v599_v18 = vadd.f32 %v834_v23, %v598_v24  ;;  %v607_v16 = vor.u32 1.1754944e-38, %v606_v5  ;;  %843 = vrcp.f32 %v380_v10  ;;  %vm437_vm2 = vmor %vm435_vm15, %vm436_vm14 }
  0xe8   :  { %v548_v61 = vsel %vm1183_vm9, %v547_v0, %v543_v54  ;;  %v434_v25 = vadd.f32 %v836_v58, %v433_v13  ;;  %vm440_vm3 = vcmp.eq.f32.partialorder %v439_v8, 8.507059e+37  ;;  %v442_v27 = vor.u32 1.1754944e-38, %v441_v9 }
  0xe9   :  { %v635_v34 = vmul.f32 %v548_v61, %v1095_v44  ;;  %v603_v26 = vsel %vm602_vm0, %v834_v23, %v599_v18  ;;  %v492_v35 = vsub.f32 1.0, %v491_v21  ;;  %v842_v44 = vpop.eup %841  ;;  %v499_v31 = vand.u32 2147483647, %v1175_v52 }
  0xea   :  { %v608_v29 = vsel %vm605_vm1, %v607_v16, %v603_v26  ;;  %v438_v30 = vsel %vm437_vm2, %v836_v58, %v434_v25  ;;  %v501_v32 = vand.u32 2147483648, %v1175_v52  ;;  %vm496_vm4 = vweird.f32 %v840_v12 }
  0xeb   :  { %651 = vst [vmem:[%s1237_s4 + $0x50] sm:$0xff] %v635_v34  ;;  %v639_v19 = vmul.f32 %v608_v29, %v1105_v50  ;;  %v443_v33 = vsel %vm440_vm3, %v442_v27, %v438_v30  ;;  %v493_v38 = vmul.f32 %v840_v12, %v492_v35  ;;  %v384_v39 = vadd.f32 1.0, %v842_v44 }
  0xec   :  { %v628_v17 = vmul.f32 %v443_v33, %v1108_v51  ;;  %vm495_vm5 = vweird.f32 %v1175_v52  ;;  %v502_v50 = vor.u32 1.1754944e-38, %v501_v32  ;;  %vm500_vm7 = vcmp.eq.f32.partialorder %v499_v31, 8.507059e+37 }
  0xed   :  { %655 = vst [vmem:[%s1237_s4 + $0x70] sm:$0xff] %v639_v19  ;;  %v494_v11 = vadd.f32 %v840_v12, %v493_v38  ;;  %v844_v40 = vpop.eup %843  ;;  %vm497_vm6 = vmor %vm495_vm5, %vm496_vm4  ;;  %845 = vrcp.f32 %v384_v39  ;;  %v561_v46 = vand.u32 2147483648, %v380_v10  ;;  %v559_v36 = vand.u32 2147483647, %v380_v10 }
  0xee   :  { %644 = vst [vmem:[%s1237_s4 + $0x18] sm:$0xff] %v628_v17  ;;  %v551_v42 = vmul.f32 %v844_v40, %v380_v10  ;;  %vm556_vm8 = vweird.f32 %v844_v40  ;;  %vm555_vm9 = vweird.f32 %v380_v10  ;;  %v619_v56 = vand.u32 2147483647, %v384_v39 }
  0xef   :  { %v498_v41 = vsel %vm497_vm6, %v840_v12, %v494_v11  ;;  %vm557_vm10 = vmor %vm555_vm9, %vm556_vm8  ;;  %v562_v52 = vor.u32 1.1754944e-38, %v561_v46  ;;  %vm560_vm11 = vcmp.eq.f32.partialorder %v559_v36, 8.507059e+37  ;;  %vm615_vm13 = vweird.f32 %v384_v39 }
  0xf0   :  { %v503_v51 = vsel %vm500_vm7, %v502_v50, %v498_v41  ;;  %v552_v45 = vsub.f32 1.0, %v551_v42  ;;  %vm620_vm15 = vcmp.eq.f32.partialorder %v619_v56, 8.507059e+37 }
  0xf1   :  { %v632_v43 = vmul.f32 %v503_v51, %v1122_v1  ;;  %v621_v1 = vand.u32 2147483648, %v384_v39 }
  0xf2   :  { %v553_v20 = vmul.f32 %v844_v40, %v552_v45 }
  0xf3   :  { %648 = vst [vmem:[%s1237_s4 + $0x38] sm:$0xff] %v632_v43  ;;  %v846_v47 = vpop.eup %845  ;;  %v622_v59 = vor.u32 1.1754944e-38, %v621_v1 }
  0xf4   :  { %v554_v48 = vadd.f32 %v844_v40, %v553_v20  ;;  %v611_v49 = vmul.f32 %v846_v47, %v384_v39  ;;  %vm616_vm12 = vweird.f32 %v846_v47 }
  0xf5   :  { %vm617_vm14 = vmor %vm615_vm13, %vm616_vm12 }
  0xf6   :  { %v558_v22 = vsel %vm557_vm10, %v844_v40, %v554_v48  ;;  %v612_v37 = vsub.f32 1.0, %v611_v49 }
  0xf7   :  { %v563_v55 = vsel %vm560_vm11, %v562_v52, %v558_v22 }
  0xf8   :  { %v636_v23 = vmul.f32 %v563_v55, %v1150_v28  ;;  %v613_v15 = vmul.f32 %v846_v47, %v612_v37 }
  0xfa   :  { %652 = vst [vmem:[%s1237_s4 + $0x58] sm:$0xff] %v636_v23  ;;  %v614_v58 = vadd.f32 %v846_v47, %v613_v15 }
  0xfc   :  { %v618_v60 = vsel %vm617_vm14, %v846_v47, %v614_v58 }
  0xfd   :  { %v623_v62 = vsel %vm620_vm15, %v622_v59, %v618_v60 }
  0xfe   :  { %v640_v63 = vmul.f32 %v623_v62, %v1145_v14 }
 0x100   :  { %656 = vst [vmem:[%s1237_s4 + $0x78] sm:$0xff] %v640_v63 }

// kernel: efficient_syncnet_color_forward.11
= control target key start
LH: loop header
LB: loop body
LE: loop exit
PB: predicated region body
PF: predicated region fallthrough
CT: control target
= control target key end

     0   :  { %s913_s12 = smov 0   ;;  %s915_s13 = smov 0   ;;  %s1021_s0 = inlined_call_operand.vmem [shape: bf16[16,8192], index: 0, kind: input, shape index: {}]   ;;  %s1022_s1 = inlined_call_operand.vmem [shape: bf16[8192,128], index: 1, kind: input, shape index: {}]   ;;  %s1023_s2 = inlined_call_operand.vmem [shape: f32[1,128], index: 2, kind: input, shape index: {}]   ;;  %s1024_s3 = inlined_call_operand.vmem [shape: f32[16,128], index: 3, kind: output, shape index: {}]  }
   0x1   :  { %s917_s14 = smov 0  }
   0x2 LB: > { %s929_s15 = sadd.s32 4294967295, %s890_s14   ;;  %s932_s16 = sadd.s32 1, %s890_s14   ;;  %s890_s14 = sphi %s917_s14, %s1027_s14   ;;  %s886_s13 = sphi %s915_s13, %s1026_s13   ;;  %s882_s12 = sphi %s913_s12, %s1025_s12  }
   0x3   : > { %s17_s17 = ssub.s32 %s890_s14, %s932_s16  ;;  %s20_s18 = sadd.s32 1, %s886_s13 }
   0x4   : > { %p18_p0 = scmp.eq.s32.totalorder %s17_s17, 0  ;;  %p27_p1 = scmp.ne.s32.totalorder %s886_s13, %s882_s12 }
   0x5   : > { %p28_p2 = scmp.eq.s32.totalorder %s890_s14, 0  ;;  %p645_p4 = scmp.ge.s32.totalorder %s890_s14, 16 }
   0x6   : > { %s941_s19 = scalar_select %p18_p0, %s886_s13, %s20_s18  }
   0x7   : > { %p29_p3 = por %p28_p2, %p27_p1  ;;  %124 = sbr.rel (%p645_p4) target bundleno = 20 (0x14), region = 20 }
   0xc   : > { %127 = sbr.rel (!%p29_p3) target bundleno = 20 (0x14), region = 24  ;;  %s129_s20 = sand.u32 (%p29_p3), 1, %s886_s13  }
   0xd   : > { %s801_s21 = sshll.u32 (%p29_p3), %s890_s14, 4  ;;  %s646_s22 = sshll.u32 (%p29_p3), %s129_s20, 5 }
   0xe   : > { %s134_s25 = scalar_lea.vmem (%p29_p3), %s1021_s0, %s801_s21  ;;  %s131_s26 = scalar_lea.vmem (%p29_p3), [#allocation3], %s646_s22 }
   0xf   : > { %v147_v0 = vld [vmem:[%s134_s25] sm:$0xff] (%p29_p3)  ;;  %v149_v1 = vld [vmem:[%s134_s25 + $0x8] sm:$0xff] (%p29_p3) }
  0x10   : > { %v151_v2 = vld [vmem:[%s134_s25 + $0x100] sm:$0xff] (%p29_p3)  ;;  %148 = vst [vmem:[%s131_s26] sm:$0xff] (%p29_p3), %v147_v0  ;;  %v153_v3 = vld [vmem:[%s134_s25 + $0x108] sm:$0xff] (%p29_p3) }
  0x11   : > { %150 = vst [vmem:[%s131_s26 + $0x8] sm:$0xff] %v149_v1 }
  0x12   : > { %152 = vst [vmem:[%s131_s26 + $0x10] sm:$0xff] %v151_v2 }
  0x13   : > { %154 = vst [vmem:[%s131_s26 + $0x18] sm:$0xff] %v153_v3 }
  0x14 PF: > { %p649_p5 = scmp.ge.s32.totalorder %s890_s14, 1  ;;  %p168_p6 = scmp.lt.s32.totalorder %s890_s14, 17 }
  0x16   : > { %p169_p7 = pnand %p649_p5, %p168_p6 }
  0x17   : > { %s175_s27 = sand.u32 (!%p169_p7), 1, %s882_s12   ;;  %s651_s28 = sshll.u32 (!%p169_p7), %s929_s15, 6 }
  0x18   : > { %172 = sbr.rel (%p169_p7) target bundleno = 371 (0x173), region = 51  ;;  %s650_s29 = sshll.u32 (!%p169_p7), %s175_s27, 5 }
  0x19   : > { %p200_p8 = scmp.lt.s32.totalorder (!%p169_p7), %s651_s28, 1023  ;;  %s958_s7 = scalar_lea.vmem (!%p169_p7), [#allocation3], %s650_s29 }
  0x1a   : > { %p653_p9 = scmp.ne.s32.totalorder (!%p169_p7), %s929_s15, 0 }
  0x1d   : > { %s1029_s28 = smov (!%p200_p8, %s651_s28), 1023  ;;  %208 = sbr.rel (%p653_p9) target bundleno = 37 (0x25), region = 59 }
  0x1e   : > { %s652_s30 = sshll.u32 %s1029_s28, 2 }
  0x1f   : > { %s956_s6 = scalar_lea.vmem %s1022_s1, %s652_s30 }
  0x22   : > { %v892_v4 = vmov 0.0  }
  0x23   : > { %209 = vst [vmem:[#allocation2] sm:$0xff] %v892_v4 }
  0x24   : > { %210 = vst [vmem:[#allocation2 + $0x8] sm:$0xff] %v892_v4 }
  0x25 PF: > { %v813_v5 = vld [vmem:[%s956_s6 + $0x38] sm:$0xff]  ;;  %v812_v9 = vld [vmem:[%s956_s6 + $0x30] sm:$0xff]  ;;  %v811_v13 = vld [vmem:[%s956_s6 + $0x28] sm:$0xff]  ;;  %p798_p10 = scmp.ne.s32.totalorder %s929_s15, 15 }
  0x26   : > { %v821_v6 = vld [vmem:[%s956_s6 + $0x78] sm:$0xff]  ;;  %493 = vmatpush.bf16.msra.mxu0 %v813_v5  ;;  %v820_v10 = vld [vmem:[%s956_s6 + $0x70] sm:$0xff]  ;;  %v819_v14 = vld [vmem:[%s956_s6 + $0x68] sm:$0xff] }
  0x27   : > { %v829_v7 = vld [vmem:[%s956_s6 + $0xb8] sm:$0xff]  ;;  %507 = vmatpush.bf16.msra.mxu1 %v821_v6  ;;  %v828_v11 = vld [vmem:[%s956_s6 + $0xb0] sm:$0xff]  ;;  %v827_v15 = vld [vmem:[%s956_s6 + $0xa8] sm:$0xff] }
  0x28   : > { %v837_v8 = vld [vmem:[%s956_s6 + $0xf8] sm:$0xff]  ;;  %521 = vmatpush.bf16.msra.mxu2 %v829_v7  ;;  %v836_v12 = vld [vmem:[%s956_s6 + $0xf0] sm:$0xff]  ;;  %v835_v16 = vld [vmem:[%s956_s6 + $0xe8] sm:$0xff] }
  0x29   : > { %535 = vmatpush.bf16.msra.mxu3 %v837_v8  ;;  %v810_v17 = vld [vmem:[%s956_s6 + $0x20] sm:$0xff]  ;;  %v809_v21 = vld [vmem:[%s956_s6 + $0x18] sm:$0xff]  ;;  %v808_v25 = vld [vmem:[%s956_s6 + $0x10] sm:$0xff] }
  0x2a   : > { %494 = vmatpush.bf16.msra.mxu0 %v812_v9  ;;  %v818_v18 = vld [vmem:[%s956_s6 + $0x60] sm:$0xff]  ;;  %v817_v22 = vld [vmem:[%s956_s6 + $0x58] sm:$0xff]  ;;  %v816_v26 = vld [vmem:[%s956_s6 + $0x50] sm:$0xff] }
  0x2b   : > { %508 = vmatpush.bf16.msra.mxu1 %v820_v10  ;;  %v826_v19 = vld [vmem:[%s956_s6 + $0xa0] sm:$0xff]  ;;  %v825_v23 = vld [vmem:[%s956_s6 + $0x98] sm:$0xff]  ;;  %v824_v27 = vld [vmem:[%s956_s6 + $0x90] sm:$0xff] }
  0x2c   : > { %522 = vmatpush.bf16.msra.mxu2 %v828_v11  ;;  %v834_v20 = vld [vmem:[%s956_s6 + $0xe0] sm:$0xff]  ;;  %v833_v24 = vld [vmem:[%s956_s6 + $0xd8] sm:$0xff]  ;;  %v832_v28 = vld [vmem:[%s956_s6 + $0xd0] sm:$0xff] }
  0x2d   : > { %536 = vmatpush.bf16.msra.mxu3 %v836_v12  ;;  %v807_v29 = vld [vmem:[%s956_s6 + $0x8] sm:$0xff]  ;;  %v806_v33 = vld [vmem:[%s956_s6] sm:$0xff]  ;;  %v656_v37 = vld [vmem:[%s958_s7] sm:$0xf] }
  0x2e   : > { %495 = vmatpush.bf16.msra.mxu0 %v811_v13  ;;  %v815_v30 = vld [vmem:[%s956_s6 + $0x48] sm:$0xff]  ;;  %v814_v34 = vld [vmem:[%s956_s6 + $0x40] sm:$0xff]  ;;  %v802_v39 = vld [vmem:[%s958_s7 + $0x4] sm:$0xf] }
  0x2f   : > { %509 = vmatpush.bf16.msra.mxu1 %v819_v14  ;;  %v823_v31 = vld [vmem:[%s956_s6 + $0x88] sm:$0xff]  ;;  %v822_v35 = vld [vmem:[%s956_s6 + $0x80] sm:$0xff]  ;;  %v664_v41 = vld [vmem:[%s958_s7 + $0x8] sm:$0xf] }
  0x30   : > { %523 = vmatpush.bf16.msra.mxu2 %v827_v15  ;;  %v831_v32 = vld [vmem:[%s956_s6 + $0xc8] sm:$0xff]  ;;  %v830_v36 = vld [vmem:[%s956_s6 + $0xc0] sm:$0xff]  ;;  %v803_v43 = vld [vmem:[%s958_s7 + $0xc] sm:$0xf] }
  0x31   : > { %537 = vmatpush.bf16.msra.mxu3 %v835_v16  ;;  %v804_v38 = vld [vmem:[%s958_s7 + $0xc] sm:$0xf0]  ;;  %v658_v40 = vld [vmem:[%s958_s7 + $0x10] sm:$0xf0]  ;;  %v805_v42 = vld [vmem:[%s958_s7 + $0x14] sm:$0xf0] }
  0x32   : > { %496 = vmatpush.bf16.msra.mxu0 %v810_v17  ;;  %v666_v44 = vld [vmem:[%s958_s7 + $0x18] sm:$0xf0]  ;;  %v657_v45 = vor.u32 %v804_v38, %v656_v37  ;;  %v661_v46 = vor.u32 %v802_v39, %v658_v40  ;;  %v665_v47 = vor.u32 %v805_v42, %v664_v41  ;;  %v211_v55 = vld [vmem:[#allocation2] sm:$0xff] }
  0x33   : > { %510 = vmatpush.bf16.msra.mxu1 %v818_v18  ;;  %v669_v48 = vor.u32 %v803_v43, %v666_v44  ;;  %v212_v63 = vld [vmem:[#allocation2 + $0x8] sm:$0xff] }
  0x34   : > { %524 = vmatpush.bf16.msra.mxu2 %v826_v19 }
  0x35   : > { %538 = vmatpush.bf16.msra.mxu3 %v834_v20 }
  0x36   : > { %497 = vmatpush.bf16.msra.mxu0 %v809_v21 }
  0x37   : > { %511 = vmatpush.bf16.msra.mxu1 %v817_v22 }
  0x38   : > { %525 = vmatpush.bf16.msra.mxu2 %v825_v23 }
  0x39   : > { %539 = vmatpush.bf16.msra.mxu3 %v833_v24 }
  0x3a   : > { %498 = vmatpush.bf16.msra.mxu0 %v808_v25 }
  0x3b   : > { %512 = vmatpush.bf16.msra.mxu1 %v816_v26 }
  0x3c   : > { %526 = vmatpush.bf16.msra.mxu2 %v824_v27 }
  0x3d   : > { %540 = vmatpush.bf16.msra.mxu3 %v832_v28 }
  0x3e   : > { %499 = vmatpush.bf16.msra.mxu0 %v807_v29 }
  0x3f   : > { %513 = vmatpush.bf16.msra.mxu1 %v815_v30 }
  0x40   : > { %527 = vmatpush.bf16.msra.mxu2 %v823_v31 }
  0x41   : > { %541 = vmatpush.bf16.msra.mxu3 %v831_v32 }
  0x42   : > { %500 = vmatpush.bf16.msra.mxu0 %v806_v33 }
  0x43   : > { %514 = vmatpush.bf16.msra.mxu1 %v814_v34 }
  0x44   : > { %528 = vmatpush.bf16.msra.mxu2 %v822_v35 }
  0x45   : > { %542 = vmatpush.bf16.msra.mxu3 %v830_v36  ;;  %501 = vmatmul.bf16.vlgmr.msra.gmra.mxu0 %v657_v45 }
  0x46   : > { %515 = vmatmul.bf16.vlgmr.msra.gmra.mxu1 %v661_v46 }
  0x47   : > { %529 = vmatmul.bf16.vlgmr.msra.gmra.mxu2 %v665_v47 }
  0x48   : > { %543 = vmatmul.bf16.vlgmr.msra.gmra.mxu3 %v669_v48 }
  0xc2   : > { %v502_v49 = vpop.f32.mrf.mxu0 }
  0xc3   : > { %v516_v50 = vpop.f32.mrf.mxu1 }
  0xc4   : > { %v517_v51 = vadd.f32 %v516_v50, %v502_v49 }
  0xca   : > { %v530_v52 = vpop.f32.mrf.mxu2  ;;  %v504_v57 = vpop.f32.mrf.mxu0 }
  0xcb   : > { %v544_v53 = vpop.f32.mrf.mxu3  ;;  %v531_v54 = vadd.f32 %v530_v52, %v517_v51  ;;  %v518_v58 = vpop.f32.mrf.mxu1 }
  0xcc   : > { %v519_v60 = vadd.f32 %v518_v58, %v504_v57 }
  0xcd   : > { %v545_v56 = vadd.f32 %v544_v53, %v531_v54 }
  0xcf   : > { %v549_v59 = vadd.f32 %v545_v56, %v211_v55 }
  0xd1   : > { %551 = vst [vmem:[#allocation2] sm:$0xff] %v549_v59 }
  0xd2   : > { %v532_v61 = vpop.f32.mrf.mxu2 }
  0xd3   : > { %v533_v62 = vadd.f32 %v532_v61, %v519_v60  ;;  %v546_v0 = vpop.f32.mrf.mxu3 }
  0xd5   : > { %v547_v1 = vadd.f32 %v546_v0, %v533_v62  ;;  %556 = sbr.rel (%p798_p10) target bundleno = 371 (0x173), region = 63 }
  0xd7   : > { %v550_v2 = vadd.f32 %v547_v1, %v212_v63 }
  0xd9   : > { %552 = vst [vmem:[#allocation2 + $0x8] sm:$0xff] %v550_v2 }
  0xda   : > { %v557_v3 = vld [vmem:[#allocation2] sm:$0xff] }
  0xdb   : > { %v863_v4 = vld [vmem:[%s1023_s2] ss:$0 sm:$0xff] }
  0xdc   : > { %v563_v5 = vadd.f32 %v863_v4, %v557_v3 }
  0xde   : > { %v565_v7 = vmul.f32 %v563_v5, %v563_v5 }
  0xe0   : > { %v558_v6 = vld [vmem:[#allocation2 + $0x8] sm:$0xff]  ;;  %567 = vadd.xlane.f32.xlu0 %v565_v7 }
  0xe1   : > { %v564_v8 = vadd.f32 %v863_v4, %v558_v6 }
  0xe3   : > { %v566_v9 = vmul.f32 %v564_v8, %v564_v8 }
  0xe8   : > { %569 = vadd.xlane.f32.xlu0 %v566_v9 }
 0x153   : > { %v568_v10 = vpop.xlane.xlu0 %567 }
 0x154   : > { %v571_v11 = vmax.f32 %v568_v10, 1e-24 }
 0x156   : > { %864 = vrsqrt.f32 %v571_v11  ;;  %vm579_vm1 = vweird.f32 %v571_v11 }
 0x15b   : > { %v570_v12 = vpop.xlane.xlu0 %569 }
 0x15c   : > { %v865_v13 = vpop.eup %864  ;;  %v572_v14 = vmax.f32 %v570_v12, 1e-24 }
 0x15d   : > { %v574_v15 = vmul.f32 %v865_v13, %v571_v11  ;;  %vm580_vm0 = vweird.f32 %v865_v13 }
 0x15e   : > { %866 = vrsqrt.f32 %v572_v14  ;;  %vm581_vm2 = vmor %vm579_vm1, %vm580_vm0  ;;  %vm589_vm4 = vweird.f32 %v572_v14 }
 0x15f   : > { %v575_v16 = vmul.f32 %v865_v13, %v574_v15 }
 0x161   : > { %v576_v17 = vmul.f32 0.5, %v575_v16 }
 0x163   : > { %v577_v18 = vsub.f32 1.5, %v576_v17 }
 0x164   : > { %v867_v19 = vpop.eup %866 }
 0x165   : > { %v578_v20 = vmul.f32 %v865_v13, %v577_v18  ;;  %v584_v21 = vmul.f32 %v867_v19, %v572_v14  ;;  %vm590_vm3 = vweird.f32 %v867_v19 }
 0x166   : > { %vm591_vm5 = vmor %vm589_vm4, %vm590_vm3 }
 0x167   : > { %v582_v22 = vsel %vm581_vm2, %v865_v13, %v578_v20  ;;  %v585_v23 = vmul.f32 %v867_v19, %v584_v21 }
 0x168   : > { %v593_v24 = vmul.f32 %v582_v22, %v563_v5 }
 0x169   : > { %v586_v25 = vmul.f32 0.5, %v585_v23 }
 0x16a   : > { %595 = vst [vmem:[%s1024_s3] sm:$0xff] %v593_v24 }
 0x16b   : > { %v587_v26 = vsub.f32 1.5, %v586_v25 }
 0x16d   : > { %v588_v27 = vmul.f32 %v867_v19, %v587_v26 }
 0x16f   : > { %v592_v28 = vsel %vm591_vm5, %v867_v19, %v588_v27 }
 0x170   : > { %v594_v29 = vmul.f32 %v592_v28, %v564_v8 }
 0x172   : > { %596 = vst [vmem:[%s1024_s3 + $0x8] sm:$0xff] %v594_v29 }
 0x173 PF: > { %p10_p11 = scmp.ge.s32.totalorder %s932_s16, 18   ;;  %s1025_s12 = smov %s886_s13 }
 0x174   : > { %s1026_s13 = smov %s941_s19  ;;  %s1027_s14 = smov %s932_s16 }
 0x175   :  { %12 = sbr.rel (!%p10_p11) target bundleno = 2 (0x2), region = 97 }

// kernel: efficient_syncnet_color_forward.7
= control target key start
LH: loop header
LB: loop body
LE: loop exit
PB: predicated region body
PF: predicated region fallthrough
CT: control target
= control target key end

     0   :  { %s830_s15 = smov 0   ;;  %s832_s16 = smov 0   ;;  %s1055_s0 = inlined_call_operand.vmem [shape: bf16[2,64,128], index: 0, kind: input, shape index: {}]   ;;  %s1056_s1 = inlined_call_operand.vmem [shape: bf16[128,128], index: 1, kind: input, shape index: {}]   ;;  %s1057_s2 = inlined_call_operand.vmem [shape: f32[1,128], index: 2, kind: input, shape index: {}]   ;;  %s1058_s3 = inlined_call_operand.vmem [shape: f32[1,128], index: 3, kind: input, shape index: {}]   ;;  %s1059_s4 = inlined_call_operand.vmem [shape: f32[2,1,128], index: 4, kind: output, shape index: {}]  }
   0x1   :  { %s834_s17 = smov 0  }
   0x2 LB: > { %s26_s18 = sadd.s32 1, %s798_s16  ;;  %p623_p0 = scmp.ge.s32.totalorder %s802_s17, 1  ;;  %s802_s17 = sphi %s834_s17, %s14_s17   ;;  %s798_s16 = sphi %s832_s16, %s1071_s16   ;;  %s794_s15 = sphi %s830_s15, %s1070_s15  }
   0x3   : > { %p28_p1 = scmp.ge.s32.totalorder %s26_s18, 2  ;;  %p181_p2 = scmp.lt.s32.totalorder %s802_s17, 3 }
   0x5   : > { %s1073_s18 = smov (%p28_p1, %s26_s18), 0  ;;  %p182_p3 = pnand %p623_p0, %p181_p2 }
   0x6   : > { %p210_p4 = scmp.lt.s32.totalorder (!%p182_p3), %s794_s15, 1 }
   0x7   : > { %185 = sbr.rel (%p182_p3) target bundleno = 258 (0x102), region = 36 }
   0xc   : > { %v696_v0 = vld [vmem:[%s1056_s1 + $0x38] sm:$0xff]  ;;  %v695_v1 = vld [vmem:[%s1056_s1 + $0x30] sm:$0xff]  ;;  %v694_v2 = vld [vmem:[%s1056_s1 + $0x28] sm:$0xff]  ;;  %s1075_s15 = smov (!%p210_p4, %s794_s15), 1  ;;  %v804_v62 = vmov 0.0  }
   0xd   : > { %323 = vmatpush.bf16.msra.mxu0 %v696_v0  ;;  %697 = vmatpush.bf16.msra.mxu1 %v696_v0  ;;  %v693_v3 = vld [vmem:[%s1056_s1 + $0x20] sm:$0xff]  ;;  %v692_v4 = vld [vmem:[%s1056_s1 + $0x18] sm:$0xff]  ;;  %v691_v5 = vld [vmem:[%s1056_s1 + $0x10] sm:$0xff]  ;;  %s684_s7 = sshll.u32 %s1075_s15, 5  ;;  %226 = vst [vmem:[#allocation2] sm:$0x1] %v804_v62  ;;  %s221_s23 = scalar_lea.vmem %s1059_s4, %s1075_s15 }
   0xe   : > { %698 = vmatpush.bf16.msra.mxu2 %v696_v0  ;;  %699 = vmatpush.bf16.msra.mxu3 %v696_v0  ;;  %v690_v6 = vld [vmem:[%s1056_s1 + $0x8] sm:$0xff]  ;;  %v689_v7 = vld [vmem:[%s1056_s1] sm:$0xff]  ;;  %s217_s12 = scalar_lea.vmem %s1055_s0, %s684_s7 }
   0xf   : > { %v685_v8 = vld [vmem:[%s217_s12] sm:$0xff]  ;;  %v686_v9 = vld [vmem:[%s217_s12 + $0x8] sm:$0xff]  ;;  %v687_v10 = vld [vmem:[%s217_s12 + $0x10] sm:$0xff] }
  0x10   : > { %v688_v11 = vld [vmem:[%s217_s12 + $0x18] sm:$0xff]  ;;  %v885_v12 = vld [vmem:[%s1057_s2] ss:$0 sm:$0xff] }
  0x11   : > { %324 = vmatpush.bf16.msra.mxu0 %v695_v1  ;;  %700 = vmatpush.bf16.msra.mxu1 %v695_v1  ;;  %v890_v13 = vld [vmem:[%s1058_s3] ss:$0 sm:$0xff] }
  0x12   : > { %701 = vmatpush.bf16.msra.mxu2 %v695_v1  ;;  %702 = vmatpush.bf16.msra.mxu3 %v695_v1 }
  0x15   : > { %325 = vmatpush.bf16.msra.mxu0 %v694_v2  ;;  %703 = vmatpush.bf16.msra.mxu1 %v694_v2 }
  0x16   : > { %704 = vmatpush.bf16.msra.mxu2 %v694_v2  ;;  %705 = vmatpush.bf16.msra.mxu3 %v694_v2 }
  0x19   : > { %326 = vmatpush.bf16.msra.mxu0 %v693_v3  ;;  %706 = vmatpush.bf16.msra.mxu1 %v693_v3 }
  0x1a   : > { %707 = vmatpush.bf16.msra.mxu2 %v693_v3  ;;  %708 = vmatpush.bf16.msra.mxu3 %v693_v3 }
  0x1d   : > { %327 = vmatpush.bf16.msra.mxu0 %v692_v4  ;;  %709 = vmatpush.bf16.msra.mxu1 %v692_v4 }
  0x1e   : > { %710 = vmatpush.bf16.msra.mxu2 %v692_v4  ;;  %711 = vmatpush.bf16.msra.mxu3 %v692_v4 }
  0x21   : > { %328 = vmatpush.bf16.msra.mxu0 %v691_v5  ;;  %712 = vmatpush.bf16.msra.mxu1 %v691_v5 }
  0x22   : > { %713 = vmatpush.bf16.msra.mxu2 %v691_v5  ;;  %714 = vmatpush.bf16.msra.mxu3 %v691_v5 }
  0x25   : > { %329 = vmatpush.bf16.msra.mxu0 %v690_v6  ;;  %715 = vmatpush.bf16.msra.mxu1 %v690_v6 }
  0x26   : > { %716 = vmatpush.bf16.msra.mxu2 %v690_v6  ;;  %717 = vmatpush.bf16.msra.mxu3 %v690_v6 }
  0x29   : > { %330 = vmatpush.bf16.msra.mxu0 %v689_v7  ;;  %718 = vmatpush.bf16.msra.mxu1 %v689_v7 }
  0x2a   : > { %719 = vmatpush.bf16.msra.mxu2 %v689_v7  ;;  %720 = vmatpush.bf16.msra.mxu3 %v689_v7 }
  0x2c   : > { %331 = vmatmul.bf16.vlgmr.msra.gmra.mxu0 %v685_v8  ;;  %336 = vmatmul.bf16.vlgmr.msra.gmra.mxu1 %v686_v9 }
  0x2d   : > { %341 = vmatmul.bf16.vlgmr.msra.gmra.mxu2 %v687_v10  ;;  %346 = vmatmul.bf16.vlgmr.msra.gmra.mxu3 %v688_v11 }
  0xa9   : > { %v332_v14 = vpop.f32.mrf.mxu0  ;;  %v337_v15 = vpop.f32.mrf.mxu1 }
  0xaa   : > { %v356_v16 = vmul.f32 %v885_v12, %v332_v14  ;;  %v358_v17 = vmul.f32 %v885_v12, %v337_v15 }
  0xac   : > { %v895_v18 = vadd.f32 %v890_v13, %v356_v16  ;;  %v898_v19 = vadd.f32 %v890_v13, %v358_v17 }
  0xae   : > { %v674_v20 = vmul.f32 -1.442695, %v895_v18  ;;  %v676_v21 = vmul.f32 -1.442695, %v898_v19 }
  0xb0   : > { %748 = vpow2.f32 %v674_v20  ;;  %v342_v22 = vpop.f32.mrf.mxu2  ;;  %v347_v23 = vpop.f32.mrf.mxu3 }
  0xb1   : > { %750 = vpow2.f32 %v676_v21  ;;  %v360_v24 = vmul.f32 %v885_v12, %v342_v22  ;;  %v362_v25 = vmul.f32 %v885_v12, %v347_v23  ;;  %v334_v26 = vpop.f32.mrf.mxu0  ;;  %v339_v27 = vpop.f32.mrf.mxu1 }
  0xb2   : > { %v357_v28 = vmul.f32 %v885_v12, %v334_v26  ;;  %v359_v29 = vmul.f32 %v885_v12, %v339_v27 }
  0xb3   : > { %v907_v30 = vadd.f32 %v890_v13, %v360_v24  ;;  %v910_v31 = vadd.f32 %v890_v13, %v362_v25 }
  0xb4   : > { %v913_v32 = vadd.f32 %v890_v13, %v357_v28  ;;  %v916_v33 = vadd.f32 %v890_v13, %v359_v29 }
  0xb5   : > { %v678_v34 = vmul.f32 -1.442695, %v907_v30  ;;  %v680_v35 = vmul.f32 -1.442695, %v910_v31 }
  0xb6   : > { %v749_v36 = vpop.eup %748  ;;  %v675_v39 = vmul.f32 -1.442695, %v913_v32  ;;  %v677_v41 = vmul.f32 -1.442695, %v916_v33 }
  0xb7   : > { %v751_v37 = vpop.eup %750  ;;  %v400_v38 = vadd.f32 1.0, %v749_v36  ;;  %752 = vpow2.f32 %v678_v34 }
  0xb8   : > { %v921_v40 = vadd.f32 1.0, %v751_v37  ;;  %754 = vpow2.f32 %v680_v35  ;;  %v344_v42 = vpop.f32.mrf.mxu2  ;;  %v349_v56 = vpop.f32.mrf.mxu3 }
  0xb9   : > { %756 = vrcp.f32 %v400_v38  ;;  %v361_v43 = vmul.f32 %v885_v12, %v344_v42  ;;  %v363_v63 = vmul.f32 %v885_v12, %v349_v56  ;;  %v417_v1 = vand.u32 2147483647, %v400_v38 }
  0xba   : > { %758 = vrcp.f32 %v921_v40  ;;  %v419_v2 = vand.u32 2147483648, %v400_v38  ;;  %v447_v4 = vand.u32 2147483647, %v921_v40  ;;  %vm413_vm1 = vweird.f32 %v400_v38 }
  0xbb   : > { %760 = vpow2.f32 %v675_v39  ;;  %v927_v45 = vadd.f32 %v890_v13, %v361_v43  ;;  %v954_v7 = vadd.f32 %v890_v13, %v363_v63  ;;  %v449_v9 = vand.u32 2147483648, %v921_v40 }
  0xbc   : > { %762 = vpow2.f32 %v677_v41  ;;  %vm957_vm2 = vcmp.eq.f32.partialorder %v417_v1, 8.507059e+37  ;;  %v420_v12 = vor.u32 1.1754944e-38, %v419_v2  ;;  %vm443_vm3 = vweird.f32 %v921_v40 }
  0xbd   : > { %v753_v44 = vpop.eup %752  ;;  %v679_v53 = vmul.f32 -1.442695, %v927_v45  ;;  %vm970_vm6 = vcmp.eq.f32.partialorder %v447_v4, 8.507059e+37  ;;  %v681_v23 = vmul.f32 -1.442695, %v954_v7  ;;  %v450_v25 = vor.u32 1.1754944e-38, %v449_v9 }
  0xbe   : > { %v755_v46 = vpop.eup %754  ;;  %v929_v47 = vadd.f32 1.0, %v753_v44 }
  0xbf   : > { %v757_v48 = vpop.eup %756  ;;  %v941_v60 = vadd.f32 1.0, %v755_v46 }
  0xc0   : > { %v931_v49 = vpop.eup %758  ;;  %v409_v50 = vmul.f32 %v757_v48, %v400_v38  ;;  %764 = vrcp.f32 %v929_v47  ;;  %vm414_vm0 = vweird.f32 %v757_v48  ;;  %v479_v26 = vand.u32 2147483648, %v929_v47 }
  0xc1   : > { %v761_v51 = vpop.eup %760  ;;  %v439_v52 = vmul.f32 %v931_v49, %v921_v40  ;;  %766 = vpow2.f32 %v679_v53  ;;  %vm964_vm4 = vmor %vm413_vm1, %vm414_vm0  ;;  %vm444_vm5 = vweird.f32 %v931_v49  ;;  %vm473_vm0 = vweird.f32 %v929_v47 }
  0xc2   : > { %v763_v54 = vpop.eup %762  ;;  %v410_v55 = vsub.f32 1.0, %v409_v50  ;;  %v937_v57 = vadd.f32 1.0, %v761_v51  ;;  %vm993_vm9 = vmor %vm443_vm3, %vm444_vm5  ;;  %v477_v2 = vand.u32 2147483647, %v929_v47 }
  0xc3   : > { %v939_v58 = vadd.f32 1.0, %v763_v54  ;;  %v440_v59 = vsub.f32 1.0, %v439_v52 }
  0xc4   : > { %v411_v61 = vmul.f32 %v757_v48, %v410_v55  ;;  %768 = vrcp.f32 %v937_v57  ;;  %vm428_vm8 = vweird.f32 %v937_v57  ;;  %v432_v29 = vand.u32 2147483647, %v937_v57 }
  0xc5   : > { %770 = vrcp.f32 %v939_v58  ;;  %v441_v3 = vmul.f32 %v931_v49, %v440_v59  ;;  %v434_v34 = vand.u32 2147483648, %v937_v57  ;;  %v464_v40 = vand.u32 2147483648, %v939_v58 }
  0xc6   : > { %v945_v0 = vpop.eup %764  ;;  %772 = vrcp.f32 %v941_v60  ;;  %v412_v5 = vadd.f32 %v757_v48, %v411_v61  ;;  %vm433_vm13 = vcmp.eq.f32.partialorder %v432_v29, 8.507059e+37  ;;  %vm458_vm14 = vweird.f32 %v939_v58 }
  0xc7   : > { %v469_v6 = vmul.f32 %v945_v0, %v929_v47  ;;  %v767_v8 = vpop.eup %766  ;;  %v442_v13 = vadd.f32 %v931_v49, %v441_v3  ;;  %vm474_vm7 = vweird.f32 %v945_v0  ;;  %v465_v62 = vor.u32 1.1754944e-38, %v464_v40 }
  0xc8   : > { %v962_v14 = vadd.f32 1.0, %v767_v8  ;;  %v416_v21 = vsel %vm964_vm4, %v757_v48, %v412_v5  ;;  %v435_v48 = vor.u32 1.1754944e-38, %v434_v34  ;;  %vm478_vm4 = vcmp.eq.f32.partialorder %v477_v2, 8.507059e+37 }
  0xc9   : > { %v470_v22 = vsub.f32 1.0, %v469_v6  ;;  %v421_v35 = vsel %vm957_vm2, %v420_v12, %v416_v21  ;;  %v446_v39 = vsel %vm993_vm9, %v931_v49, %v442_v13  ;;  %v462_v49 = vand.u32 2147483647, %v939_v58  ;;  %vm1020_vm2 = vmor %vm473_vm0, %vm474_vm7 }
  0xca   : > { %v769_v10 = vpop.eup %768  ;;  %774 = vrcp.f32 %v962_v14  ;;  %v451_v50 = vsel %vm970_vm6, %v450_v25, %v446_v39  ;;  %v528_v54 = vmul.f32 %v421_v35, %v895_v18  ;;  %vm488_vm5 = vweird.f32 %v962_v14 }
  0xcb   : > { %v424_v17 = vmul.f32 %v769_v10, %v937_v57  ;;  %v771_v20 = vpop.eup %770  ;;  %vm429_vm10 = vweird.f32 %v769_v10  ;;  %v471_v41 = vmul.f32 %v945_v0, %v470_v22  ;;  %776 = vpow2.f32 %v681_v23 }
  0xcc   : > { %v979_v24 = vpop.eup %772  ;;  %v454_v28 = vmul.f32 %v771_v20, %v939_v58  ;;  %vm459_vm11 = vweird.f32 %v771_v20  ;;  %vm430_vm12 = vmor %vm428_vm8, %vm429_vm10  ;;  %v530_v1 = vmul.f32 %v451_v50, %v898_v19  ;;  %vm463_vm1 = vcmp.eq.f32.partialorder %v462_v49, 8.507059e+37  ;;  %v536_v50 = vld [vmem:[#allocation2] sm:$0x1] }
  0xcd   : > { %v425_v27 = vsub.f32 1.0, %v424_v17  ;;  %v499_v42 = vmul.f32 %v979_v24, %v941_v60  ;;  %v472_v55 = vadd.f32 %v945_v0, %v471_v41  ;;  %vm460_vm15 = vmor %vm458_vm14, %vm459_vm11  ;;  %v480_v19 = vor.u32 1.1754944e-38, %v479_v26 }
  0xce   : > { %v455_v38 = vsub.f32 1.0, %v454_v28  ;;  %v492_v12 = vand.u32 2147483647, %v962_v14  ;;  %vm503_vm6 = vweird.f32 %v941_v60  ;;  %vm504_vm8 = vweird.f32 %v979_v24 }
  0xcf   : > { %v426_v37 = vmul.f32 %v769_v10, %v425_v27  ;;  %v500_v56 = vsub.f32 1.0, %v499_v42  ;;  %v476_v6 = vsel %vm1020_vm2, %v945_v0, %v472_v55  ;;  %v509_v17 = vand.u32 2147483648, %v941_v60  ;;  %vm505_vm10 = vmor %vm503_vm6, %vm504_vm8 }
  0xd0   : > { %v456_v44 = vmul.f32 %v771_v20, %v455_v38  ;;  %v775_v46 = vpop.eup %774  ;;  %v481_v15 = vsel %vm478_vm4, %v480_v19, %v476_v6  ;;  %vm493_vm9 = vcmp.eq.f32.partialorder %v492_v12, 8.507059e+37 }
  0xd1   : > { %v427_v43 = vadd.f32 %v769_v10, %v426_v37  ;;  %v484_v53 = vmul.f32 %v775_v46, %v962_v14  ;;  %v777_v63 = vpop.eup %776  ;;  %v501_v8 = vmul.f32 %v979_v24, %v500_v56  ;;  %vm489_vm3 = vweird.f32 %v775_v46 }
  0xd2   : > { %v457_v52 = vadd.f32 %v771_v20, %v456_v44  ;;  %v407_v5 = vadd.f32 1.0, %v777_v63  ;;  %vm490_vm7 = vmor %vm488_vm5, %vm489_vm3  ;;  %v532_v21 = vmul.f32 %v481_v15, %v907_v30  ;;  %v510_v27 = vor.u32 1.1754944e-38, %v509_v17 }
  0xd3   : > { %v431_v51 = vsel %vm430_vm12, %v769_v10, %v427_v43  ;;  %v485_v58 = vsub.f32 1.0, %v484_v53  ;;  %v494_v10 = vand.u32 2147483648, %v962_v14  ;;  %v502_v0 = vadd.f32 %v979_v24, %v501_v8 }
  0xd4   : > { %v436_v57 = vsel %vm433_vm13, %v435_v48, %v431_v51  ;;  %v461_v61 = vsel %vm460_vm15, %v771_v20, %v457_v52  ;;  %778 = vrcp.f32 %v407_v5  ;;  %v524_v35 = vand.u32 2147483648, %v407_v5 }
  0xd5   : > { %v529_v59 = vmul.f32 %v436_v57, %v913_v32  ;;  %v466_v4 = vsel %vm463_vm1, %v465_v62, %v461_v61  ;;  %v486_v32 = vmul.f32 %v775_v46, %v485_v58  ;;  %v495_v20 = vor.u32 1.1754944e-38, %v494_v10 }
  0xd6   : > { %v531_v11 = vmul.f32 %v466_v4, %v916_v33  ;;  %v507_v33 = vand.u32 2147483647, %v941_v60  ;;  %v506_v23 = vsel %vm505_vm10, %v979_v24, %v502_v0  ;;  %v522_v30 = vand.u32 2147483647, %v407_v5 }
  0xd7   : > { %v537_v3 = vadd.f32 %v529_v59, %v528_v54  ;;  %v487_v9 = vadd.f32 %v775_v46, %v486_v32  ;;  %vm518_vm13 = vweird.f32 %v407_v5  ;;  %v525_v39 = vor.u32 1.1754944e-38, %v524_v35 }
  0xd8   : > { %vm508_vm11 = vcmp.eq.f32.partialorder %v507_v33, 8.507059e+37  ;;  %vm523_vm15 = vcmp.eq.f32.partialorder %v522_v30, 8.507059e+37 }
  0xd9   : > { %v538_v47 = vadd.f32 %v537_v3, %v530_v1  ;;  %v491_v16 = vsel %vm490_vm7, %v775_v46, %v487_v9  ;;  %v511_v34 = vsel %vm508_vm11, %v510_v27, %v506_v23 }
  0xda   : > { %v779_v22 = vpop.eup %778  ;;  %v496_v14 = vsel %vm493_vm9, %v495_v20, %v491_v16  ;;  %v534_v60 = vmul.f32 %v511_v34, %v910_v31 }
  0xdb   : > { %v539_v13 = vadd.f32 %v538_v47, %v531_v11  ;;  %v514_v26 = vmul.f32 %v779_v22, %v407_v5  ;;  %v533_v28 = vmul.f32 %v496_v14, %v927_v45  ;;  %vm519_vm12 = vweird.f32 %v779_v22 }
  0xdc   : > { %vm520_vm14 = vmor %vm518_vm13, %vm519_vm12 }
  0xdd   : > { %v540_v25 = vadd.f32 %v539_v13, %v532_v21  ;;  %v515_v29 = vsub.f32 1.0, %v514_v26 }
  0xdf   : > { %v541_v36 = vadd.f32 %v540_v25, %v533_v28  ;;  %v516_v37 = vmul.f32 %v779_v22, %v515_v29 }
  0xe1   : > { %v517_v38 = vadd.f32 %v779_v22, %v516_v37  ;;  %v542_v41 = vadd.f32 %v541_v36, %v534_v60 }
  0xe3   : > { %v521_v24 = vsel %vm520_vm14, %v779_v22, %v517_v38 }
  0xe4   : > { %v526_v42 = vsel %vm523_vm15, %v525_v39, %v521_v24 }
  0xe5   : > { %v535_v45 = vmul.f32 %v526_v42, %v954_v7 }
  0xe7   : > { %v543_v43 = vadd.f32 %v542_v41, %v535_v45 }
  0xe9   : > { %v544_v44 = vrot.slane %v543_v43, 4 }
  0xeb   : > { %v545_v40 = vadd.f32 %v544_v44, %v543_v43 }
  0xed   : > { %v546_v46 = vrot.slane %v545_v40, 2 }
  0xef   : > { %v547_v48 = vadd.f32 %v546_v46, %v545_v40 }
  0xf1   : > { %v548_v49 = vrot.slane %v547_v48, 1 }
  0xf3   : > { %v549_v51 = vadd.f32 %v548_v49, %v547_v48 }
  0xf5   : > { %v550_v31 = vadd.f32 %v549_v51, %v536_v50 }
  0xf7   : > { %551 = vst [vmem:[#allocation2] sm:$0x1] %v550_v31 }
  0xfe   : > { %v555_v52 = vld [vmem:[#allocation2] sm:$0x1] }
  0xff   : > { %v556_v53 = vmul.f32 0.015625, %v555_v52 }
 0x101   : > { %557 = vst [vmem:[%s221_s23] sm:$0x1] %v556_v53 }
 0x102 PF: > { %s14_s17 = sadd.s32 1, %s802_s17   ;;  %s1070_s15 = smov %s798_s16 }
 0x103   : > { %p11_p5 = scmp.ge.s32.totalorder %s14_s17, 4   ;;  %s1071_s16 = smov %s1073_s18 }
 0x105   :  { %13 = sbr.rel (!%p11_p5) target bundleno = 2 (0x2), region = 74 }

// kernel: efficient_syncnet_color_forward.8
= control target key start
LH: loop header
LB: loop body
LE: loop exit
PB: predicated region body
PF: predicated region fallthrough
CT: control target
= control target key end

     0   :  { %s265_s1 = inlined_call_operand.vmem [shape: bf16[128,128], index: 1, kind: input, shape index: {}]   ;;  %s266_s2 = inlined_call_operand.vmem [shape: f32[1,128], index: 2, kind: input, shape index: {}]   ;;  %s267_s0 = inlined_call_operand.vmem [shape: bf16[16,128], index: 0, kind: input, shape index: {}]   ;;  %s268_s3 = inlined_call_operand.vmem [shape: f32[16,128], index: 3, kind: output, shape index: {}]  }
   0x1   :  { %v203_v0 = vld [vmem:[%s265_s1 + $0x38] sm:$0xff]  ;;  %v202_v1 = vld [vmem:[%s265_s1 + $0x30] sm:$0xff]  ;;  %v201_v2 = vld [vmem:[%s265_s1 + $0x28] sm:$0xff] }
   0x2   :  { %94 = vmatpush.bf16.msra.mxu0 %v203_v0  ;;  %v200_v3 = vld [vmem:[%s265_s1 + $0x20] sm:$0xff]  ;;  %v199_v4 = vld [vmem:[%s265_s1 + $0x18] sm:$0xff]  ;;  %v198_v5 = vld [vmem:[%s265_s1 + $0x10] sm:$0xff] }
   0x3   :  { %v197_v6 = vld [vmem:[%s265_s1 + $0x8] sm:$0xff]  ;;  %v196_v7 = vld [vmem:[%s265_s1] sm:$0xff] }
   0x4   :  { %v195_v8 = vld [vmem:[%s267_s0] sm:$0xff] }
   0x5   :  { %v204_v9 = vld [vmem:[%s266_s2] ss:$0 sm:$0xff] }
   0x6   :  { %95 = vmatpush.bf16.msra.mxu0 %v202_v1 }
   0xa   :  { %96 = vmatpush.bf16.msra.mxu0 %v201_v2 }
   0xe   :  { %97 = vmatpush.bf16.msra.mxu0 %v200_v3 }
  0x12   :  { %98 = vmatpush.bf16.msra.mxu0 %v199_v4 }
  0x16   :  { %99 = vmatpush.bf16.msra.mxu0 %v198_v5 }
  0x1a   :  { %100 = vmatpush.bf16.msra.mxu0 %v197_v6 }
  0x1e   :  { %101 = vmatpush.bf16.msra.mxu0 %v196_v7 }
  0x21   :  { %102 = vmatmul.bf16.vlgmr.msra.gmra.mxu0 %v195_v8 }
  0x9e   :  { %v103_v10 = vpop.f32.mrf.mxu0 }
  0x9f   :  { %v121_v11 = vadd.f32 %v204_v9, %v103_v10 }
  0xa1   :  { %v123_v12 = vmul.f32 %v121_v11, %v121_v11 }
  0xa3   :  { %125 = vadd.xlane.f32.xlu0 %v123_v12 }
  0xa6   :  { %v105_v13 = vpop.f32.mrf.mxu0 }
  0xa7   :  { %v122_v14 = vadd.f32 %v204_v9, %v105_v13 }
  0xa9   :  { %v124_v15 = vmul.f32 %v122_v14, %v122_v14 }
  0xab   :  { %127 = vadd.xlane.f32.xlu0 %v124_v15 }
 0x116   :  { %v126_v16 = vpop.xlane.xlu0 %125 }
 0x117   :  { %v129_v17 = vmax.f32 %v126_v16, 1e-24 }
 0x119   :  { %205 = vrsqrt.f32 %v129_v17  ;;  %vm137_vm1 = vweird.f32 %v129_v17 }
 0x11e   :  { %v128_v18 = vpop.xlane.xlu0 %127 }
 0x11f   :  { %v206_v19 = vpop.eup %205  ;;  %v130_v20 = vmax.f32 %v128_v18, 1e-24 }
 0x120   :  { %v132_v21 = vmul.f32 %v206_v19, %v129_v17  ;;  %vm138_vm0 = vweird.f32 %v206_v19 }
 0x121   :  { %207 = vrsqrt.f32 %v130_v20  ;;  %vm139_vm2 = vmor %vm137_vm1, %vm138_vm0  ;;  %vm147_vm4 = vweird.f32 %v130_v20 }
 0x122   :  { %v133_v22 = vmul.f32 %v206_v19, %v132_v21 }
 0x124   :  { %v134_v23 = vmul.f32 0.5, %v133_v22 }
 0x126   :  { %v135_v24 = vsub.f32 1.5, %v134_v23 }
 0x127   :  { %v208_v25 = vpop.eup %207 }
 0x128   :  { %v136_v26 = vmul.f32 %v206_v19, %v135_v24  ;;  %v142_v27 = vmul.f32 %v208_v25, %v130_v20  ;;  %vm148_vm3 = vweird.f32 %v208_v25 }
 0x129   :  { %vm149_vm5 = vmor %vm147_vm4, %vm148_vm3 }
 0x12a   :  { %v140_v28 = vsel %vm139_vm2, %v206_v19, %v136_v26  ;;  %v143_v29 = vmul.f32 %v208_v25, %v142_v27 }
 0x12b   :  { %v151_v30 = vmul.f32 %v140_v28, %v121_v11 }
 0x12c   :  { %v144_v31 = vmul.f32 0.5, %v143_v29 }
 0x12d   :  { %153 = vst [vmem:[%s268_s3] sm:$0xff] %v151_v30 }
 0x12e   :  { %v145_v32 = vsub.f32 1.5, %v144_v31 }
 0x130   :  { %v146_v33 = vmul.f32 %v208_v25, %v145_v32 }
 0x132   :  { %v150_v34 = vsel %vm149_vm5, %v208_v25, %v146_v33 }
 0x133   :  { %v152_v35 = vmul.f32 %v150_v34, %v122_v14 }
 0x135   :  { %154 = vst [vmem:[%s268_s3 + $0x8] sm:$0xff] %v152_v35 }

// kernel: efficient_syncnet_color_forward.6
= control target key start
LH: loop header
LB: loop body
LE: loop exit
PB: predicated region body
PF: predicated region fallthrough
CT: control target
= control target key end

     0   :  { %s2135_s15 = smov 0   ;;  %s2137_s16 = smov 0   ;;  %s2819_s0 = inlined_call_operand.vmem [shape: bf16[128,1024], index: 0, kind: input, shape index: {}]   ;;  %s2820_s1 = inlined_call_operand.vmem [shape: bf16[1024,128], index: 1, kind: input, shape index: {}]   ;;  %s2821_s2 = inlined_call_operand.vmem [shape: f32[1,128], index: 2, kind: input, shape index: {}]   ;;  %s2822_s3 = inlined_call_operand.vmem [shape: f32[1,128], index: 3, kind: input, shape index: {}]   ;;  %s2823_s4 = inlined_call_operand.vmem [shape: f32[128,128], index: 4, kind: output, shape index: {}]  }
   0x1   :  { %s2139_s17 = smov 0   ;;  %s2141_s18 = smov 0  }
   0x2   :  { %s2143_s19 = smov 0  }
   0x3 LB: > { %s26_s20 = sadd.s32 1, %s2103_s18  ;;  %p49_p1 = scmp.ne.s32.totalorder %s2095_s16, %s2091_s15  ;;  %s2107_s19 = sphi %s2143_s19, %s14_s19   ;;  %s2103_s18 = sphi %s2141_s18, %s2878_s18   ;;  %s2099_s17 = sphi %s2139_s17, %s2877_s17   ;;  %s2095_s16 = sphi %s2137_s16, %s2876_s16   ;;  %s2091_s15 = sphi %s2135_s15, %s2875_s15  }
   0x4   : > { %p27_p0 = scmp.ge.s32.totalorder %s26_s20, 2  ;;  %p50_p2 = scmp.eq.s32.totalorder %s2107_s19, 0 }
   0x5   : > { %s42_s22 = sadd.s32 1, %s2095_s16  ;;  %p1611_p5 = scmp.ge.s32.totalorder %s2107_s19, 2 }
   0x6   : > { %s2880_s20 = smov (%p27_p0, %s26_s20), 0  ;;  %p51_p3 = por %p50_p2, %p49_p1 }
   0x7   : > { %s38_s21 = ssub.s32 %s2103_s18, %s2880_s20  ;;  %195 = sbr.rel (%p1611_p5) target bundleno = 48 (0x30), region = 24 }
   0x8   : > { %p40_p4 = scmp.eq.s32.totalorder %s38_s21, 0 }
   0xa   : > { %s2170_s23 = scalar_select %p40_p4, %s2095_s16, %s42_s22  }
   0xc   : > { %198 = sbr.rel (!%p51_p3) target bundleno = 48 (0x30), region = 28  ;;  %s200_s24 = sand.u32 (%p51_p3), 1, %s2095_s16  }
   0xd   : > { %s1897_s25 = sshll.u32 (%p51_p3), %s2103_s18, 4  ;;  %s1612_s26 = sshll.u32 (%p51_p3), %s200_s24, 8 }
   0xe   : > { %s2178_s29 = scalar_lea.vmem (%p51_p3), %s2819_s0, %s1897_s25  ;;  %s2183_s30 = scalar_lea.vmem (%p51_p3), [#allocation3], %s1612_s26 }
   0xf   : > { %v221_v0 = vld [vmem:[%s2178_s29] sm:$0xff] (%p51_p3)  ;;  %v223_v1 = vld [vmem:[%s2178_s29 + $0x8] sm:$0xff] (%p51_p3) }
  0x10   : > { %v225_v2 = vld [vmem:[%s2178_s29 + $0x20] sm:$0xff] (%p51_p3)  ;;  %222 = vst [vmem:[%s2183_s30] sm:$0xff] (%p51_p3), %v221_v0  ;;  %v227_v3 = vld [vmem:[%s2178_s29 + $0x28] sm:$0xff] (%p51_p3) }
  0x11   : > { %224 = vst [vmem:[%s2183_s30 + $0x8] sm:$0xff] %v223_v1  ;;  %v229_v4 = vld [vmem:[%s2178_s29 + $0x40] sm:$0xff]  ;;  %v231_v5 = vld [vmem:[%s2178_s29 + $0x48] sm:$0xff] }
  0x12   : > { %226 = vst [vmem:[%s2183_s30 + $0x10] sm:$0xff] %v225_v2  ;;  %v233_v6 = vld [vmem:[%s2178_s29 + $0x60] sm:$0xff]  ;;  %v235_v7 = vld [vmem:[%s2178_s29 + $0x68] sm:$0xff] }
  0x13   : > { %228 = vst [vmem:[%s2183_s30 + $0x18] sm:$0xff] %v227_v3  ;;  %v237_v8 = vld [vmem:[%s2178_s29 + $0x80] sm:$0xff]  ;;  %v239_v9 = vld [vmem:[%s2178_s29 + $0x88] sm:$0xff] }
  0x14   : > { %230 = vst [vmem:[%s2183_s30 + $0x20] sm:$0xff] %v229_v4  ;;  %v241_v10 = vld [vmem:[%s2178_s29 + $0xa0] sm:$0xff]  ;;  %v243_v11 = vld [vmem:[%s2178_s29 + $0xa8] sm:$0xff] }
  0x15   : > { %232 = vst [vmem:[%s2183_s30 + $0x28] sm:$0xff] %v231_v5  ;;  %v245_v12 = vld [vmem:[%s2178_s29 + $0xc0] sm:$0xff]  ;;  %v247_v13 = vld [vmem:[%s2178_s29 + $0xc8] sm:$0xff] }
  0x16   : > { %234 = vst [vmem:[%s2183_s30 + $0x30] sm:$0xff] %v233_v6  ;;  %v249_v14 = vld [vmem:[%s2178_s29 + $0xe0] sm:$0xff]  ;;  %v251_v15 = vld [vmem:[%s2178_s29 + $0xe8] sm:$0xff] }
  0x17   : > { %236 = vst [vmem:[%s2183_s30 + $0x38] sm:$0xff] %v235_v7  ;;  %v253_v16 = vld [vmem:[%s2178_s29 + $0x100] sm:$0xff]  ;;  %v255_v17 = vld [vmem:[%s2178_s29 + $0x108] sm:$0xff] }
  0x18   : > { %238 = vst [vmem:[%s2183_s30 + $0x40] sm:$0xff] %v237_v8  ;;  %v257_v18 = vld [vmem:[%s2178_s29 + $0x120] sm:$0xff]  ;;  %v259_v19 = vld [vmem:[%s2178_s29 + $0x128] sm:$0xff] }
  0x19   : > { %240 = vst [vmem:[%s2183_s30 + $0x48] sm:$0xff] %v239_v9  ;;  %v261_v20 = vld [vmem:[%s2178_s29 + $0x140] sm:$0xff]  ;;  %v263_v21 = vld [vmem:[%s2178_s29 + $0x148] sm:$0xff] }
  0x1a   : > { %242 = vst [vmem:[%s2183_s30 + $0x50] sm:$0xff] %v241_v10  ;;  %v265_v22 = vld [vmem:[%s2178_s29 + $0x160] sm:$0xff]  ;;  %v267_v23 = vld [vmem:[%s2178_s29 + $0x168] sm:$0xff] }
  0x1b   : > { %244 = vst [vmem:[%s2183_s30 + $0x58] sm:$0xff] %v243_v11  ;;  %v269_v24 = vld [vmem:[%s2178_s29 + $0x180] sm:$0xff]  ;;  %v271_v25 = vld [vmem:[%s2178_s29 + $0x188] sm:$0xff] }
  0x1c   : > { %246 = vst [vmem:[%s2183_s30 + $0x60] sm:$0xff] %v245_v12  ;;  %v273_v26 = vld [vmem:[%s2178_s29 + $0x1a0] sm:$0xff]  ;;  %v275_v27 = vld [vmem:[%s2178_s29 + $0x1a8] sm:$0xff] }
  0x1d   : > { %248 = vst [vmem:[%s2183_s30 + $0x68] sm:$0xff] %v247_v13  ;;  %v277_v28 = vld [vmem:[%s2178_s29 + $0x1c0] sm:$0xff]  ;;  %v279_v29 = vld [vmem:[%s2178_s29 + $0x1c8] sm:$0xff] }
  0x1e   : > { %250 = vst [vmem:[%s2183_s30 + $0x70] sm:$0xff] %v249_v14  ;;  %v281_v30 = vld [vmem:[%s2178_s29 + $0x1e0] sm:$0xff]  ;;  %v283_v31 = vld [vmem:[%s2178_s29 + $0x1e8] sm:$0xff] }
  0x1f   : > { %252 = vst [vmem:[%s2183_s30 + $0x78] sm:$0xff] %v251_v15 }
  0x20   : > { %254 = vst [vmem:[%s2183_s30 + $0x80] sm:$0xff] %v253_v16 }
  0x21   : > { %256 = vst [vmem:[%s2183_s30 + $0x88] sm:$0xff] %v255_v17 }
  0x22   : > { %258 = vst [vmem:[%s2183_s30 + $0x90] sm:$0xff] %v257_v18 }
  0x23   : > { %260 = vst [vmem:[%s2183_s30 + $0x98] sm:$0xff] %v259_v19 }
  0x24   : > { %262 = vst [vmem:[%s2183_s30 + $0xa0] sm:$0xff] %v261_v20 }
  0x25   : > { %264 = vst [vmem:[%s2183_s30 + $0xa8] sm:$0xff] %v263_v21 }
  0x26   : > { %266 = vst [vmem:[%s2183_s30 + $0xb0] sm:$0xff] %v265_v22 }
  0x27   : > { %268 = vst [vmem:[%s2183_s30 + $0xb8] sm:$0xff] %v267_v23 }
  0x28   : > { %270 = vst [vmem:[%s2183_s30 + $0xc0] sm:$0xff] %v269_v24 }
  0x29   : > { %272 = vst [vmem:[%s2183_s30 + $0xc8] sm:$0xff] %v271_v25 }
  0x2a   : > { %274 = vst [vmem:[%s2183_s30 + $0xd0] sm:$0xff] %v273_v26 }
  0x2b   : > { %276 = vst [vmem:[%s2183_s30 + $0xd8] sm:$0xff] %v275_v27 }
  0x2c   : > { %278 = vst [vmem:[%s2183_s30 + $0xe0] sm:$0xff] %v277_v28 }
  0x2d   : > { %280 = vst [vmem:[%s2183_s30 + $0xe8] sm:$0xff] %v279_v29 }
  0x2e   : > { %282 = vst [vmem:[%s2183_s30 + $0xf0] sm:$0xff] %v281_v30 }
  0x2f   : > { %284 = vst [vmem:[%s2183_s30 + $0xf8] sm:$0xff] %v283_v31 }
  0x30 PF: > { %p1615_p6 = scmp.ge.s32.totalorder %s2107_s19, 1  ;;  %p301_p7 = scmp.lt.s32.totalorder %s2107_s19, 3 }
  0x32   : > { %p302_p8 = pnand %p1615_p6, %p301_p7 }
  0x33   : > { %s308_s5 = sand.u32 (!%p302_p8), 1, %s2091_s15   ;;  %s1617_s6 = sshll.u32 (!%p302_p8), %s2099_s17, 6 }
  0x34   : > { %305 = sbr.rel (%p302_p8) target bundleno = 464 (0x1d0), region = 55  ;;  %s1616_s7 = sshll.u32 (!%p302_p8), %s308_s5, 8 }
  0x35   : > { %p353_p9 = scmp.lt.s32.totalorder (!%p302_p8), %s1617_s6, 127  ;;  %s2255_s12 = scalar_lea.vmem (!%p302_p8), [#allocation3], %s1616_s7 }
  0x36   : > { %p1619_p10 = scmp.ne.s32.totalorder (!%p302_p8), %s2099_s17, 0 }
  0x39   : > { %s2882_s6 = smov (!%p353_p9, %s1617_s6), 127  ;;  %379 = sbr.rel (%p1619_p10) target bundleno = 79 (0x4f), region = 63 }
  0x3a   : > { %s1618_s8 = sshll.u32 %s2882_s6, 2 }
  0x3b   : > { %s2253_s11 = scalar_lea.vmem %s2820_s1, %s1618_s8 }
  0x3e   : > { %v2109_v32 = vmov 0.0  }
  0x3f   : > { %380 = vst [vmem:[#allocation2 + $0x30] sm:$0xff] %v2109_v32 }
  0x40   : > { %381 = vst [vmem:[#allocation2] sm:$0xff] %v2109_v32 }
  0x41   : > { %382 = vst [vmem:[#allocation2 + $0x58] sm:$0xff] %v2109_v32 }
  0x42   : > { %383 = vst [vmem:[#allocation2 + $0x18] sm:$0xff] %v2109_v32 }
  0x43   : > { %384 = vst [vmem:[#allocation2 + $0x50] sm:$0xff] %v2109_v32 }
  0x44   : > { %385 = vst [vmem:[#allocation2 + $0x68] sm:$0xff] %v2109_v32 }
  0x45   : > { %386 = vst [vmem:[#allocation2 + $0x8] sm:$0xff] %v2109_v32 }
  0x46   : > { %387 = vst [vmem:[#allocation2 + $0x48] sm:$0xff] %v2109_v32 }
  0x47   : > { %388 = vst [vmem:[#allocation2 + $0x40] sm:$0xff] %v2109_v32 }
  0x48   : > { %389 = vst [vmem:[#allocation2 + $0x20] sm:$0xff] %v2109_v32 }
  0x49   : > { %390 = vst [vmem:[#allocation2 + $0x10] sm:$0xff] %v2109_v32 }
  0x4a   : > { %391 = vst [vmem:[#allocation2 + $0x38] sm:$0xff] %v2109_v32 }
  0x4b   : > { %392 = vst [vmem:[#allocation2 + $0x60] sm:$0xff] %v2109_v32 }
  0x4c   : > { %393 = vst [vmem:[#allocation2 + $0x70] sm:$0xff] %v2109_v32 }
  0x4d   : > { %394 = vst [vmem:[#allocation2 + $0x78] sm:$0xff] %v2109_v32 }
  0x4e   : > { %395 = vst [vmem:[#allocation2 + $0x28] sm:$0xff] %v2109_v32 }
  0x4f PF: > { %v1937_v33 = vld [vmem:[%s2253_s11 + $0x38] sm:$0xff]  ;;  %v1936_v37 = vld [vmem:[%s2253_s11 + $0x30] sm:$0xff]  ;;  %v1935_v41 = vld [vmem:[%s2253_s11 + $0x28] sm:$0xff]  ;;  %p1876_p11 = scmp.ne.s32.totalorder %s2099_s17, 1 }
  0x50   : > { %v1945_v34 = vld [vmem:[%s2253_s11 + $0x78] sm:$0xff]  ;;  %860 = vmatpush.bf16.msra.mxu0 %v1937_v33  ;;  %v1944_v38 = vld [vmem:[%s2253_s11 + $0x70] sm:$0xff]  ;;  %v1943_v42 = vld [vmem:[%s2253_s11 + $0x68] sm:$0xff] }
  0x51   : > { %v1953_v35 = vld [vmem:[%s2253_s11 + $0xb8] sm:$0xff]  ;;  %909 = vmatpush.bf16.msra.mxu1 %v1945_v34  ;;  %v1952_v39 = vld [vmem:[%s2253_s11 + $0xb0] sm:$0xff]  ;;  %v1951_v43 = vld [vmem:[%s2253_s11 + $0xa8] sm:$0xff] }
  0x52   : > { %v1961_v36 = vld [vmem:[%s2253_s11 + $0xf8] sm:$0xff]  ;;  %958 = vmatpush.bf16.msra.mxu2 %v1953_v35  ;;  %v1960_v40 = vld [vmem:[%s2253_s11 + $0xf0] sm:$0xff]  ;;  %v1959_v44 = vld [vmem:[%s2253_s11 + $0xe8] sm:$0xff] }
  0x53   : > { %1007 = vmatpush.bf16.msra.mxu3 %v1961_v36  ;;  %v1934_v45 = vld [vmem:[%s2253_s11 + $0x20] sm:$0xff]  ;;  %v1933_v49 = vld [vmem:[%s2253_s11 + $0x18] sm:$0xff]  ;;  %v1932_v53 = vld [vmem:[%s2253_s11 + $0x10] sm:$0xff] }
  0x54   : > { %861 = vmatpush.bf16.msra.mxu0 %v1936_v37  ;;  %v1942_v46 = vld [vmem:[%s2253_s11 + $0x60] sm:$0xff]  ;;  %v1941_v50 = vld [vmem:[%s2253_s11 + $0x58] sm:$0xff]  ;;  %v1940_v54 = vld [vmem:[%s2253_s11 + $0x50] sm:$0xff] }
  0x55   : > { %910 = vmatpush.bf16.msra.mxu1 %v1944_v38  ;;  %v1950_v47 = vld [vmem:[%s2253_s11 + $0xa0] sm:$0xff]  ;;  %v1949_v51 = vld [vmem:[%s2253_s11 + $0x98] sm:$0xff]  ;;  %v1948_v55 = vld [vmem:[%s2253_s11 + $0x90] sm:$0xff] }
  0x56   : > { %959 = vmatpush.bf16.msra.mxu2 %v1952_v39  ;;  %v1958_v48 = vld [vmem:[%s2253_s11 + $0xe0] sm:$0xff]  ;;  %v1957_v52 = vld [vmem:[%s2253_s11 + $0xd8] sm:$0xff]  ;;  %v1956_v56 = vld [vmem:[%s2253_s11 + $0xd0] sm:$0xff] }
  0x57   : > { %1008 = vmatpush.bf16.msra.mxu3 %v1960_v40  ;;  %v1931_v57 = vld [vmem:[%s2253_s11 + $0x8] sm:$0xff]  ;;  %v1930_v61 = vld [vmem:[%s2253_s11] sm:$0xff]  ;;  %v1900_v2 = vld [vmem:[%s2255_s12 + $0xc] sm:$0xf0] }
  0x58   : > { %862 = vmatpush.bf16.msra.mxu0 %v1935_v41  ;;  %v1939_v58 = vld [vmem:[%s2253_s11 + $0x48] sm:$0xff]  ;;  %v1938_v62 = vld [vmem:[%s2253_s11 + $0x40] sm:$0xff]  ;;  %v1624_v4 = vld [vmem:[%s2255_s12 + $0x10] sm:$0xf0] }
  0x59   : > { %911 = vmatpush.bf16.msra.mxu1 %v1943_v42  ;;  %v1947_v59 = vld [vmem:[%s2253_s11 + $0x88] sm:$0xff]  ;;  %v1946_v63 = vld [vmem:[%s2253_s11 + $0x80] sm:$0xff]  ;;  %v1901_v6 = vld [vmem:[%s2255_s12 + $0x14] sm:$0xf0] }
  0x5a   : > { %960 = vmatpush.bf16.msra.mxu2 %v1951_v43  ;;  %v1955_v60 = vld [vmem:[%s2253_s11 + $0xc8] sm:$0xff]  ;;  %v1954_v0 = vld [vmem:[%s2253_s11 + $0xc0] sm:$0xff]  ;;  %v1632_v8 = vld [vmem:[%s2255_s12 + $0x18] sm:$0xf0] }
  0x5b   : > { %1009 = vmatpush.bf16.msra.mxu3 %v1959_v44  ;;  %v1622_v1 = vld [vmem:[%s2255_s12] sm:$0xf]  ;;  %v1898_v3 = vld [vmem:[%s2255_s12 + $0x4] sm:$0xf]  ;;  %v1630_v5 = vld [vmem:[%s2255_s12 + $0x8] sm:$0xf] }
  0x5c   : > { %863 = vmatpush.bf16.msra.mxu0 %v1934_v45  ;;  %v1899_v7 = vld [vmem:[%s2255_s12 + $0xc] sm:$0xf]  ;;  %v1623_v9 = vor.u32 %v1900_v2, %v1622_v1  ;;  %v1627_v10 = vor.u32 %v1898_v3, %v1624_v4  ;;  %v1631_v11 = vor.u32 %v1901_v6, %v1630_v5  ;;  %v1638_v13 = vld [vmem:[%s2255_s12 + $0x20] sm:$0xf]  ;;  %v1904_v14 = vld [vmem:[%s2255_s12 + $0x2c] sm:$0xf0] }
  0x5d   : > { %912 = vmatpush.bf16.msra.mxu1 %v1942_v46  ;;  %v1635_v12 = vor.u32 %v1899_v7, %v1632_v8  ;;  %v1902_v15 = vld [vmem:[%s2255_s12 + $0x24] sm:$0xf]  ;;  %v1640_v16 = vld [vmem:[%s2255_s12 + $0x30] sm:$0xf0]  ;;  %v1646_v17 = vld [vmem:[%s2255_s12 + $0x28] sm:$0xf]  ;;  %v1639_v21 = vor.u32 %v1904_v14, %v1638_v13 }
  0x5e   : > { %961 = vmatpush.bf16.msra.mxu2 %v1950_v47  ;;  %v1905_v18 = vld [vmem:[%s2255_s12 + $0x34] sm:$0xf0]  ;;  %v1903_v19 = vld [vmem:[%s2255_s12 + $0x2c] sm:$0xf]  ;;  %v1648_v20 = vld [vmem:[%s2255_s12 + $0x38] sm:$0xf0]  ;;  %v1643_v22 = vor.u32 %v1902_v15, %v1640_v16 }
  0x5f   : > { %1010 = vmatpush.bf16.msra.mxu3 %v1958_v48  ;;  %v1647_v23 = vor.u32 %v1905_v18, %v1646_v17  ;;  %v1651_v24 = vor.u32 %v1903_v19, %v1648_v20  ;;  %v1654_v25 = vld [vmem:[%s2255_s12 + $0x40] sm:$0xf]  ;;  %v1908_v26 = vld [vmem:[%s2255_s12 + $0x4c] sm:$0xf0]  ;;  %v1906_v27 = vld [vmem:[%s2255_s12 + $0x44] sm:$0xf] }
  0x60   : > { %864 = vmatpush.bf16.msra.mxu0 %v1933_v49  ;;  %v1656_v28 = vld [vmem:[%s2255_s12 + $0x50] sm:$0xf0]  ;;  %v1662_v29 = vld [vmem:[%s2255_s12 + $0x48] sm:$0xf]  ;;  %v1909_v30 = vld [vmem:[%s2255_s12 + $0x54] sm:$0xf0]  ;;  %v1655_v33 = vor.u32 %v1908_v26, %v1654_v25 }
  0x61   : > { %913 = vmatpush.bf16.msra.mxu1 %v1941_v50  ;;  %v1907_v31 = vld [vmem:[%s2255_s12 + $0x4c] sm:$0xf]  ;;  %v1664_v32 = vld [vmem:[%s2255_s12 + $0x58] sm:$0xf0]  ;;  %v1659_v34 = vor.u32 %v1906_v27, %v1656_v28  ;;  %v1663_v35 = vor.u32 %v1909_v30, %v1662_v29  ;;  %v1670_v37 = vld [vmem:[%s2255_s12 + $0x60] sm:$0xf] }
  0x62   : > { %962 = vmatpush.bf16.msra.mxu2 %v1949_v51  ;;  %v1667_v36 = vor.u32 %v1907_v31, %v1664_v32  ;;  %v1912_v38 = vld [vmem:[%s2255_s12 + $0x6c] sm:$0xf0]  ;;  %v1910_v39 = vld [vmem:[%s2255_s12 + $0x64] sm:$0xf]  ;;  %v1672_v40 = vld [vmem:[%s2255_s12 + $0x70] sm:$0xf0] }
  0x63   : > { %1011 = vmatpush.bf16.msra.mxu3 %v1957_v52  ;;  %v1678_v41 = vld [vmem:[%s2255_s12 + $0x68] sm:$0xf]  ;;  %v1913_v42 = vld [vmem:[%s2255_s12 + $0x74] sm:$0xf0]  ;;  %v1911_v43 = vld [vmem:[%s2255_s12 + $0x6c] sm:$0xf]  ;;  %v1671_v45 = vor.u32 %v1912_v38, %v1670_v37  ;;  %v1675_v46 = vor.u32 %v1910_v39, %v1672_v40 }
  0x64   : > { %865 = vmatpush.bf16.msra.mxu0 %v1932_v53  ;;  %v1680_v44 = vld [vmem:[%s2255_s12 + $0x78] sm:$0xf0]  ;;  %v1679_v47 = vor.u32 %v1913_v42, %v1678_v41  ;;  %v1686_v49 = vld [vmem:[%s2255_s12 + $0x80] sm:$0xf]  ;;  %v1916_v50 = vld [vmem:[%s2255_s12 + $0x8c] sm:$0xf0] }
  0x65   : > { %914 = vmatpush.bf16.msra.mxu1 %v1940_v54  ;;  %v1683_v48 = vor.u32 %v1911_v43, %v1680_v44  ;;  %v1914_v51 = vld [vmem:[%s2255_s12 + $0x84] sm:$0xf]  ;;  %v1688_v52 = vld [vmem:[%s2255_s12 + $0x90] sm:$0xf0]  ;;  %v1694_v53 = vld [vmem:[%s2255_s12 + $0x88] sm:$0xf] }
  0x66   : > { %963 = vmatpush.bf16.msra.mxu2 %v1948_v55  ;;  %v1917_v54 = vld [vmem:[%s2255_s12 + $0x94] sm:$0xf0]  ;;  %v1915_v55 = vld [vmem:[%s2255_s12 + $0x8c] sm:$0xf]  ;;  %v1710_v1 = vld [vmem:[%s2255_s12 + $0xa8] sm:$0xf] }
  0x67   : > { %1012 = vmatpush.bf16.msra.mxu3 %v1956_v56  ;;  %v1696_v56 = vld [vmem:[%s2255_s12 + $0x98] sm:$0xf0]  ;;  %v1921_v2 = vld [vmem:[%s2255_s12 + $0xb4] sm:$0xf0]  ;;  %v1919_v3 = vld [vmem:[%s2255_s12 + $0xac] sm:$0xf] }
  0x68   : > { %866 = vmatpush.bf16.msra.mxu0 %v1931_v57  ;;  %v1687_v57 = vor.u32 %v1916_v50, %v1686_v49  ;;  %v1712_v4 = vld [vmem:[%s2255_s12 + $0xb8] sm:$0xf0]  ;;  %v1711_v7 = vor.u32 %v1921_v2, %v1710_v1  ;;  %v1726_v13 = vld [vmem:[%s2255_s12 + $0xc8] sm:$0xf]  ;;  %v1925_v14 = vld [vmem:[%s2255_s12 + $0xd4] sm:$0xf0] }
  0x69   : > { %915 = vmatpush.bf16.msra.mxu1 %v1939_v58  ;;  %v1691_v58 = vor.u32 %v1914_v51, %v1688_v52  ;;  %v1715_v8 = vor.u32 %v1919_v3, %v1712_v4  ;;  %v1923_v15 = vld [vmem:[%s2255_s12 + $0xcc] sm:$0xf]  ;;  %v1728_v16 = vld [vmem:[%s2255_s12 + $0xd8] sm:$0xf0]  ;;  %v1727_v19 = vor.u32 %v1925_v14, %v1726_v13  ;;  %v1742_v25 = vld [vmem:[%s2255_s12 + $0xe8] sm:$0xf] }
  0x6a   : > { %964 = vmatpush.bf16.msra.mxu2 %v1947_v59  ;;  %v1695_v59 = vor.u32 %v1917_v54, %v1694_v53  ;;  %v1731_v20 = vor.u32 %v1923_v15, %v1728_v16  ;;  %v1929_v26 = vld [vmem:[%s2255_s12 + $0xf4] sm:$0xf0]  ;;  %v1927_v27 = vld [vmem:[%s2255_s12 + $0xec] sm:$0xf]  ;;  %v1744_v28 = vld [vmem:[%s2255_s12 + $0xf8] sm:$0xf0] }
  0x6b   : > { %1013 = vmatpush.bf16.msra.mxu3 %v1955_v60  ;;  %v1699_v60 = vor.u32 %v1915_v55, %v1696_v56  ;;  %v1743_v31 = vor.u32 %v1929_v26, %v1742_v25  ;;  %v1747_v32 = vor.u32 %v1927_v27, %v1744_v28  ;;  %v396_v41 = vld [vmem:[#allocation2 + $0x30] sm:$0xff]  ;;  %v397_v50 = vld [vmem:[#allocation2] sm:$0xff]  ;;  %v399_v4 = vld [vmem:[#allocation2 + $0x18] sm:$0xff] }
  0x6c   : > { %867 = vmatpush.bf16.msra.mxu0 %v1930_v61  ;;  %v1702_v61 = vld [vmem:[%s2255_s12 + $0xa0] sm:$0xf]  ;;  %v400_v13 = vld [vmem:[#allocation2 + $0x50] sm:$0xff] }
  0x6d   : > { %916 = vmatpush.bf16.msra.mxu1 %v1938_v62  ;;  %v1920_v62 = vld [vmem:[%s2255_s12 + $0xac] sm:$0xf0] }
  0x6e   : > { %965 = vmatpush.bf16.msra.mxu2 %v1946_v63  ;;  %v1918_v63 = vld [vmem:[%s2255_s12 + $0xa4] sm:$0xf]  ;;  %v1703_v5 = vor.u32 %v1920_v62, %v1702_v61 }
  0x6f   : > { %1014 = vmatpush.bf16.msra.mxu3 %v1954_v0  ;;  %868 = vmatmul.bf16.vlgmr.msra.gmra.mxu0 %v1623_v9  ;;  %v1704_v0 = vld [vmem:[%s2255_s12 + $0xb0] sm:$0xf0]  ;;  %v1718_v9 = vld [vmem:[%s2255_s12 + $0xc0] sm:$0xf] }
  0x70   : > { %917 = vmatmul.bf16.vlgmr.msra.gmra.mxu1 %v1627_v10  ;;  %v1707_v6 = vor.u32 %v1918_v63, %v1704_v0  ;;  %v1924_v10 = vld [vmem:[%s2255_s12 + $0xcc] sm:$0xf0] }
  0x71   : > { %966 = vmatmul.bf16.vlgmr.msra.gmra.mxu2 %v1631_v11  ;;  %v1922_v11 = vld [vmem:[%s2255_s12 + $0xc4] sm:$0xf]  ;;  %v1719_v17 = vor.u32 %v1924_v10, %v1718_v9 }
  0x72   : > { %1015 = vmatmul.bf16.vlgmr.msra.gmra.mxu3 %v1635_v12  ;;  %v1720_v12 = vld [vmem:[%s2255_s12 + $0xd0] sm:$0xf0] }
  0x73   : > { %v1723_v18 = vor.u32 %v1922_v11, %v1720_v12 }
  0x7f   : > { %873 = vmatmul.bf16.gmra.mxu0 %v1639_v21  ;;  %v1734_v21 = vld [vmem:[%s2255_s12 + $0xe0] sm:$0xf] }
  0x80   : > { %922 = vmatmul.bf16.gmra.mxu1 %v1643_v22  ;;  %v1928_v22 = vld [vmem:[%s2255_s12 + $0xec] sm:$0xf0] }
  0x81   : > { %971 = vmatmul.bf16.gmra.mxu2 %v1647_v23  ;;  %v1926_v23 = vld [vmem:[%s2255_s12 + $0xe4] sm:$0xf]  ;;  %v1735_v29 = vor.u32 %v1928_v22, %v1734_v21  ;;  %v401_v22 = vld [vmem:[#allocation2 + $0x68] sm:$0xff] }
  0x82   : > { %1020 = vmatmul.bf16.gmra.mxu3 %v1651_v24  ;;  %v1736_v24 = vld [vmem:[%s2255_s12 + $0xf0] sm:$0xf0] }
  0x83   : > { %v1739_v30 = vor.u32 %v1926_v23, %v1736_v24 }
  0x8f   : > { %878 = vmatmul.bf16.gmra.mxu0 %v1655_v33 }
  0x90   : > { %927 = vmatmul.bf16.gmra.mxu1 %v1659_v34 }
  0x91   : > { %976 = vmatmul.bf16.gmra.mxu2 %v1663_v35 }
  0x92   : > { %1025 = vmatmul.bf16.gmra.mxu3 %v1667_v36 }
  0x9f   : > { %883 = vmatmul.bf16.gmra.mxu0 %v1671_v45 }
  0xa0   : > { %932 = vmatmul.bf16.gmra.mxu1 %v1675_v46 }
  0xa1   : > { %981 = vmatmul.bf16.gmra.mxu2 %v1679_v47 }
  0xa2   : > { %1030 = vmatmul.bf16.gmra.mxu3 %v1683_v48 }
  0xaf   : > { %888 = vmatmul.bf16.gmra.mxu0 %v1687_v57 }
  0xb0   : > { %937 = vmatmul.bf16.gmra.mxu1 %v1691_v58 }
  0xb1   : > { %986 = vmatmul.bf16.gmra.mxu2 %v1695_v59  ;;  %v398_v59 = vld [vmem:[#allocation2 + $0x58] sm:$0xff] }
  0xb2   : > { %1035 = vmatmul.bf16.gmra.mxu3 %v1699_v60 }
  0xbf   : > { %893 = vmatmul.bf16.gmra.mxu0 %v1703_v5 }
  0xc0   : > { %942 = vmatmul.bf16.gmra.mxu1 %v1707_v6 }
  0xc1   : > { %991 = vmatmul.bf16.gmra.mxu2 %v1711_v7 }
  0xc2   : > { %1040 = vmatmul.bf16.gmra.mxu3 %v1715_v8 }
  0xcf   : > { %898 = vmatmul.bf16.gmra.mxu0 %v1719_v17 }
  0xd0   : > { %947 = vmatmul.bf16.gmra.mxu1 %v1723_v18 }
  0xd1   : > { %996 = vmatmul.bf16.gmra.mxu2 %v1727_v19 }
  0xd2   : > { %1045 = vmatmul.bf16.gmra.mxu3 %v1731_v20 }
  0xdf   : > { %903 = vmatmul.bf16.gmra.mxu0 %v1735_v29 }
  0xe0   : > { %952 = vmatmul.bf16.gmra.mxu1 %v1739_v30 }
  0xe1   : > { %1001 = vmatmul.bf16.gmra.mxu2 %v1743_v31  ;;  %v402_v31 = vld [vmem:[#allocation2 + $0x8] sm:$0xff] }
  0xe2   : > { %1050 = vmatmul.bf16.gmra.mxu3 %v1747_v32 }
  0xec   : > { %v869_v33 = vpop.f32.mrf.mxu0 }
  0xed   : > { %v918_v34 = vpop.f32.mrf.mxu1 }
  0xee   : > { %v919_v35 = vadd.f32 %v918_v34, %v869_v33 }
  0xf4   : > { %v967_v36 = vpop.f32.mrf.mxu2  ;;  %v871_v39 = vpop.f32.mrf.mxu0 }
  0xf5   : > { %v1016_v37 = vpop.f32.mrf.mxu3  ;;  %v968_v38 = vadd.f32 %v967_v36, %v919_v35  ;;  %v920_v40 = vpop.f32.mrf.mxu1 }
  0xf6   : > { %v921_v44 = vadd.f32 %v920_v40, %v871_v39  ;;  %v403_v40 = vld [vmem:[#allocation2 + $0x48] sm:$0xff] }
  0xf7   : > { %v1017_v42 = vadd.f32 %v1016_v37, %v968_v38 }
  0xf9   : > { %v1056_v43 = vadd.f32 %v1017_v42, %v396_v41 }
  0xfb   : > { %1072 = vst [vmem:[#allocation2 + $0x30] sm:$0xff] %v1056_v43 }
  0xfc   : > { %v969_v45 = vpop.f32.mrf.mxu2  ;;  %v874_v48 = vpop.f32.mrf.mxu0 }
  0xfd   : > { %v1018_v46 = vpop.f32.mrf.mxu3  ;;  %v970_v47 = vadd.f32 %v969_v45, %v921_v44  ;;  %v923_v49 = vpop.f32.mrf.mxu1 }
  0xfe   : > { %v924_v53 = vadd.f32 %v923_v49, %v874_v48  ;;  %v404_v49 = vld [vmem:[#allocation2 + $0x40] sm:$0xff] }
  0xff   : > { %v1019_v51 = vadd.f32 %v1018_v46, %v970_v47 }
 0x101   : > { %v1057_v52 = vadd.f32 %v1019_v51, %v397_v50 }
 0x103   : > { %1073 = vst [vmem:[#allocation2] sm:$0xff] %v1057_v52 }
 0x104   : > { %v972_v54 = vpop.f32.mrf.mxu2  ;;  %v876_v57 = vpop.f32.mrf.mxu0 }
 0x105   : > { %v1021_v55 = vpop.f32.mrf.mxu3  ;;  %v973_v56 = vadd.f32 %v972_v54, %v924_v53  ;;  %v925_v58 = vpop.f32.mrf.mxu1 }
 0x106   : > { %v926_v62 = vadd.f32 %v925_v58, %v876_v57  ;;  %v405_v58 = vld [vmem:[#allocation2 + $0x20] sm:$0xff] }
 0x107   : > { %v1022_v60 = vadd.f32 %v1021_v55, %v973_v56 }
 0x109   : > { %v1058_v61 = vadd.f32 %v1022_v60, %v398_v59 }
 0x10b   : > { %1074 = vst [vmem:[#allocation2 + $0x58] sm:$0xff] %v1058_v61 }
 0x10c   : > { %v974_v63 = vpop.f32.mrf.mxu2  ;;  %v879_v2 = vpop.f32.mrf.mxu0 }
 0x10d   : > { %v1023_v0 = vpop.f32.mrf.mxu3  ;;  %v975_v1 = vadd.f32 %v974_v63, %v926_v62  ;;  %v928_v3 = vpop.f32.mrf.mxu1 }
 0x10e   : > { %v929_v7 = vadd.f32 %v928_v3, %v879_v2  ;;  %v406_v3 = vld [vmem:[#allocation2 + $0x10] sm:$0xff] }
 0x10f   : > { %v1024_v5 = vadd.f32 %v1023_v0, %v975_v1 }
 0x111   : > { %v1059_v6 = vadd.f32 %v1024_v5, %v399_v4 }
 0x113   : > { %1075 = vst [vmem:[#allocation2 + $0x18] sm:$0xff] %v1059_v6 }
 0x114   : > { %v977_v8 = vpop.f32.mrf.mxu2  ;;  %v881_v11 = vpop.f32.mrf.mxu0 }
 0x115   : > { %v1026_v9 = vpop.f32.mrf.mxu3  ;;  %v978_v10 = vadd.f32 %v977_v8, %v929_v7  ;;  %v930_v12 = vpop.f32.mrf.mxu1 }
 0x116   : > { %v931_v16 = vadd.f32 %v930_v12, %v881_v11  ;;  %v407_v12 = vld [vmem:[#allocation2 + $0x38] sm:$0xff] }
 0x117   : > { %v1027_v14 = vadd.f32 %v1026_v9, %v978_v10 }
 0x119   : > { %v1060_v15 = vadd.f32 %v1027_v14, %v400_v13 }
 0x11b   : > { %1076 = vst [vmem:[#allocation2 + $0x50] sm:$0xff] %v1060_v15 }
 0x11c   : > { %v979_v17 = vpop.f32.mrf.mxu2  ;;  %v884_v20 = vpop.f32.mrf.mxu0 }
 0x11d   : > { %v1028_v18 = vpop.f32.mrf.mxu3  ;;  %v980_v19 = vadd.f32 %v979_v17, %v931_v16  ;;  %v933_v21 = vpop.f32.mrf.mxu1 }
 0x11e   : > { %v934_v25 = vadd.f32 %v933_v21, %v884_v20  ;;  %v408_v21 = vld [vmem:[#allocation2 + $0x60] sm:$0xff] }
 0x11f   : > { %v1029_v23 = vadd.f32 %v1028_v18, %v980_v19 }
 0x121   : > { %v1061_v24 = vadd.f32 %v1029_v23, %v401_v22 }
 0x123   : > { %1077 = vst [vmem:[#allocation2 + $0x68] sm:$0xff] %v1061_v24 }
 0x124   : > { %v982_v26 = vpop.f32.mrf.mxu2  ;;  %v886_v29 = vpop.f32.mrf.mxu0 }
 0x125   : > { %v1031_v27 = vpop.f32.mrf.mxu3  ;;  %v983_v28 = vadd.f32 %v982_v26, %v934_v25  ;;  %v935_v30 = vpop.f32.mrf.mxu1 }
 0x126   : > { %v936_v34 = vadd.f32 %v935_v30, %v886_v29 }
 0x127   : > { %v1032_v32 = vadd.f32 %v1031_v27, %v983_v28  ;;  %v409_v28 = vld [vmem:[#allocation2 + $0x70] sm:$0xff] }
 0x129   : > { %v1062_v33 = vadd.f32 %v1032_v32, %v402_v31 }
 0x12b   : > { %1078 = vst [vmem:[#allocation2 + $0x8] sm:$0xff] %v1062_v33 }
 0x12c   : > { %v984_v35 = vpop.f32.mrf.mxu2  ;;  %v889_v38 = vpop.f32.mrf.mxu0 }
 0x12d   : > { %v1033_v36 = vpop.f32.mrf.mxu3  ;;  %v985_v37 = vadd.f32 %v984_v35, %v936_v34  ;;  %v938_v39 = vpop.f32.mrf.mxu1 }
 0x12e   : > { %v939_v43 = vadd.f32 %v938_v39, %v889_v38 }
 0x12f   : > { %v1034_v41 = vadd.f32 %v1033_v36, %v985_v37  ;;  %v410_v37 = vld [vmem:[#allocation2 + $0x78] sm:$0xff] }
 0x131   : > { %v1063_v42 = vadd.f32 %v1034_v41, %v403_v40 }
 0x133   : > { %1079 = vst [vmem:[#allocation2 + $0x48] sm:$0xff] %v1063_v42 }
 0x134   : > { %v987_v44 = vpop.f32.mrf.mxu2  ;;  %v891_v47 = vpop.f32.mrf.mxu0 }
 0x135   : > { %v1036_v45 = vpop.f32.mrf.mxu3  ;;  %v988_v46 = vadd.f32 %v987_v44, %v939_v43  ;;  %v940_v48 = vpop.f32.mrf.mxu1 }
 0x136   : > { %v941_v52 = vadd.f32 %v940_v48, %v891_v47 }
 0x137   : > { %v1037_v50 = vadd.f32 %v1036_v45, %v988_v46  ;;  %v411_v45 = vld [vmem:[#allocation2 + $0x28] sm:$0xff] }
 0x139   : > { %v1064_v51 = vadd.f32 %v1037_v50, %v404_v49 }
 0x13b   : > { %1080 = vst [vmem:[#allocation2 + $0x40] sm:$0xff] %v1064_v51 }
 0x13c   : > { %v989_v53 = vpop.f32.mrf.mxu2  ;;  %v894_v56 = vpop.f32.mrf.mxu0 }
 0x13d   : > { %v1038_v54 = vpop.f32.mrf.mxu3  ;;  %v990_v55 = vadd.f32 %v989_v53, %v941_v52  ;;  %v943_v57 = vpop.f32.mrf.mxu1 }
 0x13e   : > { %v944_v61 = vadd.f32 %v943_v57, %v894_v56 }
 0x13f   : > { %v1039_v59 = vadd.f32 %v1038_v54, %v990_v55 }
 0x141   : > { %v1065_v60 = vadd.f32 %v1039_v59, %v405_v58 }
 0x143   : > { %1081 = vst [vmem:[#allocation2 + $0x20] sm:$0xff] %v1065_v60 }
 0x144   : > { %v992_v62 = vpop.f32.mrf.mxu2  ;;  %v896_v1 = vpop.f32.mrf.mxu0 }
 0x145   : > { %v1041_v63 = vpop.f32.mrf.mxu3  ;;  %v993_v0 = vadd.f32 %v992_v62, %v944_v61  ;;  %v945_v2 = vpop.f32.mrf.mxu1 }
 0x146   : > { %v946_v6 = vadd.f32 %v945_v2, %v896_v1 }
 0x147   : > { %v1042_v4 = vadd.f32 %v1041_v63, %v993_v0 }
 0x149   : > { %v1066_v5 = vadd.f32 %v1042_v4, %v406_v3 }
 0x14b   : > { %1082 = vst [vmem:[#allocation2 + $0x10] sm:$0xff] %v1066_v5 }
 0x14c   : > { %v994_v7 = vpop.f32.mrf.mxu2  ;;  %v899_v10 = vpop.f32.mrf.mxu0 }
 0x14d   : > { %v1043_v8 = vpop.f32.mrf.mxu3  ;;  %v995_v9 = vadd.f32 %v994_v7, %v946_v6  ;;  %v948_v11 = vpop.f32.mrf.mxu1 }
 0x14e   : > { %v949_v15 = vadd.f32 %v948_v11, %v899_v10 }
 0x14f   : > { %v1044_v13 = vadd.f32 %v1043_v8, %v995_v9 }
 0x151   : > { %v1067_v14 = vadd.f32 %v1044_v13, %v407_v12 }
 0x153   : > { %1083 = vst [vmem:[#allocation2 + $0x38] sm:$0xff] %v1067_v14 }
 0x154   : > { %v997_v16 = vpop.f32.mrf.mxu2  ;;  %v901_v19 = vpop.f32.mrf.mxu0 }
 0x155   : > { %v1046_v17 = vpop.f32.mrf.mxu3  ;;  %v998_v18 = vadd.f32 %v997_v16, %v949_v15  ;;  %v950_v20 = vpop.f32.mrf.mxu1 }
 0x156   : > { %v951_v24 = vadd.f32 %v950_v20, %v901_v19 }
 0x157   : > { %v1047_v22 = vadd.f32 %v1046_v17, %v998_v18 }
 0x159   : > { %v1068_v23 = vadd.f32 %v1047_v22, %v408_v21 }
 0x15b   : > { %1084 = vst [vmem:[#allocation2 + $0x60] sm:$0xff] %v1068_v23 }
 0x15c   : > { %v999_v25 = vpop.f32.mrf.mxu2  ;;  %v904_v29 = vpop.f32.mrf.mxu0 }
 0x15d   : > { %v1048_v26 = vpop.f32.mrf.mxu3  ;;  %v1000_v27 = vadd.f32 %v999_v25, %v951_v24  ;;  %v953_v30 = vpop.f32.mrf.mxu1 }
 0x15e   : > { %v954_v33 = vadd.f32 %v953_v30, %v904_v29 }
 0x15f   : > { %v1049_v31 = vadd.f32 %v1048_v26, %v1000_v27 }
 0x161   : > { %v1069_v32 = vadd.f32 %v1049_v31, %v409_v28 }
 0x163   : > { %1085 = vst [vmem:[#allocation2 + $0x70] sm:$0xff] %v1069_v32 }
 0x164   : > { %v1002_v34 = vpop.f32.mrf.mxu2  ;;  %v906_v39 = vpop.f32.mrf.mxu0 }
 0x165   : > { %v1051_v35 = vpop.f32.mrf.mxu3  ;;  %v1003_v36 = vadd.f32 %v1002_v34, %v954_v33  ;;  %v955_v40 = vpop.f32.mrf.mxu1 }
 0x166   : > { %v956_v42 = vadd.f32 %v955_v40, %v906_v39 }
 0x167   : > { %v1052_v38 = vadd.f32 %v1051_v35, %v1003_v36 }
 0x169   : > { %v1070_v41 = vadd.f32 %v1052_v38, %v410_v37 }
 0x16b   : > { %1086 = vst [vmem:[#allocation2 + $0x78] sm:$0xff] %v1070_v41 }
 0x16c   : > { %v1004_v43 = vpop.f32.mrf.mxu2 }
 0x16d   : > { %v1005_v44 = vadd.f32 %v1004_v43, %v956_v42  ;;  %v1053_v46 = vpop.f32.mrf.mxu3 }
 0x16f   : > { %v1054_v47 = vadd.f32 %v1053_v46, %v1005_v44  ;;  %1091 = sbr.rel (%p1876_p11) target bundleno = 464 (0x1d0), region = 67 }
 0x171   : > { %v1071_v48 = vadd.f32 %v1054_v47, %v411_v45 }
 0x173   : > { %1087 = vst [vmem:[#allocation2 + $0x28] sm:$0xff] %v1071_v48 }
 0x174   : > { %v1092_v49 = vld [vmem:[#allocation2 + $0x30] sm:$0xff]  ;;  %v2358_v50 = vld [vmem:[%s2821_s2] ss:$0 sm:$0xff]  ;;  %v1094_v55 = vld [vmem:[#allocation2 + $0x58] sm:$0xff] }
 0x175   : > { %v2363_v51 = vld [vmem:[%s2822_s3] ss:$0 sm:$0xff]  ;;  %v1112_v53 = vmul.f32 %v2358_v50, %v1092_v49  ;;  %v1095_v56 = vld [vmem:[#allocation2 + $0x18] sm:$0xff]  ;;  %v1096_v57 = vld [vmem:[#allocation2 + $0x50] sm:$0xff]  ;;  %v1114_v58 = vmul.f32 %v2358_v50, %v1094_v55 }
 0x176   : > { %v1093_v52 = vld [vmem:[#allocation2] sm:$0xff]  ;;  %v1115_v59 = vmul.f32 %v2358_v50, %v1095_v56  ;;  %v1116_v60 = vmul.f32 %v2358_v50, %v1096_v57  ;;  %v1097_v61 = vld [vmem:[#allocation2 + $0x68] sm:$0xff]  ;;  %v1102_v21 = vld [vmem:[#allocation2 + $0x10] sm:$0xff] }
 0x177   : > { %v1113_v54 = vmul.f32 %v2358_v50, %v1093_v52  ;;  %v1098_v62 = vld [vmem:[#allocation2 + $0x8] sm:$0xff]  ;;  %v2371_v0 = vadd.f32 %v2363_v51, %v1112_v53  ;;  %v1117_v2 = vmul.f32 %v2358_v50, %v1097_v61  ;;  %v2379_v4 = vadd.f32 %v2363_v51, %v1114_v58  ;;  %v1100_v8 = vld [vmem:[#allocation2 + $0x40] sm:$0xff]  ;;  %v1103_v23 = vld [vmem:[#allocation2 + $0x38] sm:$0xff] }
 0x178   : > { %v1099_v63 = vld [vmem:[#allocation2 + $0x48] sm:$0xff]  ;;  %v1118_v3 = vmul.f32 %v2358_v50, %v1098_v62  ;;  %v2382_v5 = vadd.f32 %v2363_v51, %v1115_v59  ;;  %v2385_v6 = vadd.f32 %v2363_v51, %v1116_v60  ;;  %v1101_v15 = vld [vmem:[#allocation2 + $0x20] sm:$0xff]  ;;  %v1120_v18 = vmul.f32 %v2358_v50, %v1100_v8 }
 0x179   : > { %v2374_v1 = vadd.f32 %v2363_v51, %v1113_v54  ;;  %v1119_v7 = vmul.f32 %v2358_v50, %v1099_v63  ;;  %v1877_v9 = vmul.f32 -1.442695, %v2371_v0  ;;  %v2391_v11 = vadd.f32 %v2363_v51, %v1117_v2  ;;  %v1104_v38 = vld [vmem:[#allocation2 + $0x60] sm:$0xff] }
 0x17a   : > { %v1879_v12 = vmul.f32 -1.442695, %v2379_v4  ;;  %v1880_v13 = vmul.f32 -1.442695, %v2382_v5  ;;  %v2396_v14 = vadd.f32 %v2363_v51, %v1118_v3  ;;  %v1881_v16 = vmul.f32 -1.442695, %v2385_v6 }
 0x17b   : > { %v1878_v10 = vmul.f32 -1.442695, %v2374_v1  ;;  %2005 = vpow2.f32 %v1877_v9  ;;  %v2400_v17 = vadd.f32 %v2363_v51, %v1119_v7  ;;  %v1882_v19 = vmul.f32 -1.442695, %v2391_v11 }
 0x17c   : > { %v1121_v20 = vmul.f32 %v2358_v50, %v1101_v15  ;;  %v1883_v22 = vmul.f32 -1.442695, %v2396_v14  ;;  %v2408_v25 = vadd.f32 %v2363_v51, %v1120_v18  ;;  %v1122_v26 = vmul.f32 %v2358_v50, %v1102_v21  ;;  %v1105_v15 = vld [vmem:[#allocation2 + $0x70] sm:$0xff] }
 0x17d   : > { %2007 = vpow2.f32 %v1878_v10  ;;  %v1884_v24 = vmul.f32 -1.442695, %v2400_v17  ;;  %v1123_v29 = vmul.f32 %v2358_v50, %v1103_v23  ;;  %v2443_v49 = vmul.f32 %v2358_v50, %v1104_v38 }
 0x17e   : > { %2009 = vpow2.f32 %v1879_v12  ;;  %v2412_v28 = vadd.f32 %v2363_v51, %v1121_v20  ;;  %v1885_v34 = vmul.f32 -1.442695, %v2408_v25  ;;  %v2423_v37 = vadd.f32 %v2363_v51, %v1122_v26 }
 0x17f   : > { %2011 = vpow2.f32 %v1880_v13  ;;  %v2431_v42 = vadd.f32 %v2363_v51, %v1123_v29 }
 0x180   : > { %2013 = vpow2.f32 %v1881_v16  ;;  %v2428_v41 = vmul.f32 -1.442695, %v2412_v28  ;;  %v1887_v20 = vmul.f32 -1.442695, %v2423_v37 }
 0x181   : > { %2015 = vpow2.f32 %v1882_v19  ;;  %v2006_v27 = vpop.eup %2005 }
 0x182   : > { %v2415_v31 = vadd.f32 1.0, %v2006_v27  ;;  %2017 = vpow2.f32 %v1883_v22  ;;  %v2598_v27 = vadd.f32 %v2363_v51, %v2443_v49 }
 0x183   : > { %v2008_v30 = vpop.eup %2007  ;;  %2019 = vpow2.f32 %v1884_v24 }
 0x184   : > { %v2010_v32 = vpop.eup %2009  ;;  %v2417_v33 = vadd.f32 1.0, %v2008_v30  ;;  %2021 = vrcp.f32 %v2415_v31  ;;  %v1223_v36 = vand.u32 2147483648, %v2415_v31  ;;  %v1221_v40 = vand.u32 2147483647, %v2415_v31 }
 0x185   : > { %v2012_v35 = vpop.eup %2011  ;;  %v2435_v46 = vadd.f32 1.0, %v2010_v32  ;;  %vm1217_vm0 = vweird.f32 %v2415_v31 }
 0x186   : > { %v2014_v39 = vpop.eup %2013  ;;  %2023 = vrcp.f32 %v2417_v33  ;;  %v1236_v44 = vand.u32 2147483647, %v2417_v33  ;;  %v1238_v45 = vand.u32 2147483648, %v2417_v33  ;;  %v2437_v47 = vadd.f32 1.0, %v2012_v35 }
 0x187   : > { %v2016_v43 = vpop.eup %2015  ;;  %v2440_v48 = vadd.f32 1.0, %v2014_v39  ;;  %2025 = vpow2.f32 %v1885_v34  ;;  %v2445_v53 = vor.u32 1.1754944e-38, %v1223_v36  ;;  %vm1232_vm1 = vweird.f32 %v2417_v33 }
 0x188   : > { %v2018_v52 = vpop.eup %2017  ;;  %2027 = vrcp.f32 %v2435_v46  ;;  %v1253_v54 = vand.u32 2147483648, %v2435_v46  ;;  %vm2452_vm2 = vcmp.eq.f32.partialorder %v1221_v40, 8.507059e+37  ;;  %v1251_v57 = vand.u32 2147483647, %v2435_v46 }
 0x189   : > { %v2450_v55 = vpop.eup %2019  ;;  %2029 = vrcp.f32 %v2437_v47  ;;  %v1268_v58 = vand.u32 2147483648, %v2437_v47  ;;  %v2459_v59 = vadd.f32 1.0, %v2016_v43  ;;  %vm2461_vm3 = vcmp.eq.f32.partialorder %v1236_v44, 8.507059e+37 }
 0x18a   : > { %v2022_v60 = vpop.eup %2021  ;;  %v1239_v62 = vor.u32 1.1754944e-38, %v1238_v45  ;;  %v1266_v63 = vand.u32 2147483647, %v2437_v47  ;;  %2031 = vrcp.f32 %v2440_v48  ;;  %vm1247_vm4 = vweird.f32 %v2435_v46 }
 0x18b   : > { %v1213_v3 = vmul.f32 %v2022_v60, %v2415_v31  ;;  %v2469_v7 = vor.u32 1.1754944e-38, %v1253_v54  ;;  %vm1262_vm5 = vweird.f32 %v2437_v47  ;;  %vm1277_vm6 = vweird.f32 %v2440_v48 }
 0x18c   : > { %v2024_v2 = vpop.eup %2023  ;;  %v1281_v9 = vand.u32 2147483647, %v2440_v48  ;;  %v1283_v10 = vand.u32 2147483648, %v2440_v48  ;;  %vm1218_vm7 = vweird.f32 %v2022_v60  ;;  %vm2476_vm8 = vcmp.eq.f32.partialorder %v1251_v57, 8.507059e+37 }
 0x18d   : > { %v1228_v8 = vmul.f32 %v2024_v2, %v2417_v33  ;;  %v2026_v12 = vpop.eup %2025  ;;  %v1214_v13 = vsub.f32 1.0, %v1213_v3  ;;  %v1269_v16 = vor.u32 1.1754944e-38, %v1268_v58  ;;  %2033 = vrcp.f32 %v2459_v59  ;;  %vm2496_vm13 = vmor %vm1217_vm0, %vm1218_vm7 }
 0x18e   : > { %v2028_v18 = vpop.eup %2027  ;;  %vm1233_vm9 = vweird.f32 %v2024_v2  ;;  %vm2481_vm10 = vcmp.eq.f32.partialorder %v1266_v63, 8.507059e+37  ;;  %v1296_v21 = vand.u32 2147483647, %v2459_v59  ;;  %v1298_v22 = vand.u32 2147483648, %v2459_v59 }
 0x18f   : > { %v1229_v19 = vsub.f32 1.0, %v1228_v8  ;;  %v2030_v23 = vpop.eup %2029  ;;  %v1215_v24 = vmul.f32 %v2022_v60, %v1214_v13  ;;  %v1243_v26 = vmul.f32 %v2028_v18, %v2435_v46  ;;  %vm2488_vm11 = vcmp.eq.f32.partialorder %v1281_v9, 8.507059e+37  ;;  %vm2504_vm15 = vmor %vm1232_vm1, %vm1233_vm9 }
 0x190   : > { %v2032_v29 = vpop.eup %2031  ;;  %vm1248_vm14 = vweird.f32 %v2028_v18  ;;  %v1258_v34 = vmul.f32 %v2030_v23, %v2437_v47  ;;  %v1284_v35 = vor.u32 1.1754944e-38, %v1283_v10  ;;  %vm1263_vm12 = vweird.f32 %v2030_v23 }
 0x191   : > { %v1230_v32 = vmul.f32 %v2024_v2, %v1229_v19  ;;  %v1216_v36 = vadd.f32 %v2022_v60, %v1215_v24  ;;  %v1244_v39 = vsub.f32 1.0, %v1243_v26  ;;  %v1273_v31 = vmul.f32 %v2032_v29, %v2440_v48  ;;  %vm2525_vm1 = vmor %vm1247_vm4, %vm1248_vm14 }
 0x192   : > { %v1259_v43 = vsub.f32 1.0, %v1258_v34  ;;  %vm1278_vm0 = vweird.f32 %v2032_v29  ;;  %vm2509_vm7 = vcmp.eq.f32.partialorder %v1296_v21, 8.507059e+37  ;;  %v1299_v45 = vor.u32 1.1754944e-38, %v1298_v22 }
 0x193   : > { %v1231_v40 = vadd.f32 %v2024_v2, %v1230_v32  ;;  %v2034_v54 = vpop.eup %2033  ;;  %v1220_v33 = vsel %vm2496_vm13, %v2022_v60, %v1216_v36  ;;  %v1245_v57 = vmul.f32 %v2028_v18, %v1244_v39  ;;  %v1274_v58 = vsub.f32 1.0, %v1273_v31  ;;  %vm2544_vm4 = vmor %vm1277_vm6, %vm1278_vm0 }
 0x194   : > { %v2515_v63 = vadd.f32 1.0, %v2018_v52  ;;  %v1225_v3 = vsel %vm2452_vm2, %v2445_v53, %v1220_v33  ;;  %v1260_v10 = vmul.f32 %v2030_v23, %v1259_v43  ;;  %v1288_v60 = vmul.f32 %v2034_v54, %v2459_v59  ;;  %vm2536_vm2 = vmor %vm1262_vm5, %vm1263_vm12 }
 0x195   : > { %v1235_v8 = vsel %vm2504_vm15, %v2024_v2, %v1231_v40  ;;  %v1452_v52 = vmul.f32 %v1225_v3, %v2371_v0  ;;  %v1246_v56 = vadd.f32 %v2028_v18, %v1245_v57  ;;  %v1275_v46 = vmul.f32 %v2032_v29, %v1274_v58  ;;  %v1106_v40 = vld [vmem:[#allocation2 + $0x78] sm:$0xff] }
 0x196   : > { %v1240_v13 = vsel %vm2461_vm3, %v1239_v62, %v1235_v8  ;;  %v1261_v19 = vadd.f32 %v2030_v23, %v1260_v10  ;;  %v1289_v61 = vsub.f32 1.0, %v1288_v60  ;;  %vm1293_vm3 = vweird.f32 %v2034_v54 }
 0x197   : > { %v1453_v2 = vmul.f32 %v1240_v13, %v2374_v1  ;;  %1468 = vst [vmem:[%s2823_s4] sm:$0xff] %v1452_v52  ;;  %v1250_v47 = vsel %vm2525_vm1, %v2028_v18, %v1246_v56  ;;  %v1276_v62 = vadd.f32 %v2032_v29, %v1275_v46  ;;  %2035 = vrcp.f32 %v2515_v63 }
 0x198   : > { %v2555_v1 = vadd.f32 1.0, %v2450_v55  ;;  %v1255_v48 = vsel %vm2476_vm8, %v2469_v7, %v1250_v47  ;;  %v1265_v21 = vsel %vm2536_vm2, %v2030_v23, %v1261_v19  ;;  %v1290_v22 = vmul.f32 %v2034_v54, %v1289_v61 }
 0x199   : > { %1469 = vst [vmem:[%s2823_s4 + $0x8] sm:$0xff] %v1453_v2  ;;  %v2565_v24 = vadd.f32 1.0, %v2026_v12  ;;  %v1454_v18 = vmul.f32 %v1255_v48, %v2379_v4  ;;  %v1270_v55 = vsel %vm2481_vm10, %v1269_v16, %v1265_v21  ;;  %v1280_v26 = vsel %vm2544_vm4, %v2032_v29, %v1276_v62 }
 0x19a   : > { %vm2846_vm5 = vweird.f32 %v2459_v59  ;;  %v1311_v7 = vand.u32 2147483647, %v2515_v63  ;;  %v1455_v12 = vmul.f32 %v1270_v55, %v2382_v5  ;;  %v1285_v4 = vsel %vm2488_vm11, %v1284_v35, %v1280_v26 }
 0x19b   : > { %vm2574_vm6 = vmor %vm2846_vm5, %vm1293_vm3  ;;  %v1291_v23 = vadd.f32 %v2034_v54, %v1290_v22  ;;  %v1313_v16 = vand.u32 2147483648, %v2515_v63  ;;  %1470 = vst [vmem:[%s2823_s4 + $0x10] sm:$0xff] %v1454_v18  ;;  %v1456_v59 = vmul.f32 %v1285_v4, %v2385_v6  ;;  %2037 = vrcp.f32 %v2555_v1 }
 0x19c   : > { %v1888_v29 = vmul.f32 -1.442695, %v2431_v42  ;;  %1471 = vst [vmem:[%s2823_s4 + $0x18] sm:$0xff] %v1455_v12  ;;  %2039 = vrcp.f32 %v2565_v24  ;;  %v1125_v6 = vmul.f32 %v2358_v50, %v1105_v15  ;;  %vm1307_vm8 = vweird.f32 %v2515_v63 }
 0x19d   : > { %v1295_v5 = vsel %vm2574_vm6, %v2034_v54, %v1291_v23  ;;  %v2036_v32 = vpop.eup %2035  ;;  %1472 = vst [vmem:[%s2823_s4 + $0x20] sm:$0xff] %v1456_v59  ;;  %vm2607_vm9 = vcmp.eq.f32.partialorder %v1311_v7, 8.507059e+37  ;;  %v1326_v36 = vand.u32 2147483647, %v2555_v1  ;;  %v1314_v39 = vor.u32 1.1754944e-38, %v1313_v16 }
 0x19e   : > { %v1300_v34 = vsel %vm2509_vm7, %v1299_v45, %v1295_v5  ;;  %v1303_v38 = vmul.f32 %v2036_v32, %v2515_v63  ;;  %v1328_v31 = vand.u32 2147483648, %v2555_v1  ;;  %vm1308_vm10 = vweird.f32 %v2036_v32  ;;  %v1107_v45 = vld [vmem:[#allocation2 + $0x28] sm:$0xff] }
 0x19f   : > { %v1457_v49 = vmul.f32 %v1300_v34, %v2391_v11  ;;  %vm1322_vm11 = vweird.f32 %v2555_v1  ;;  %vm1337_vm12 = vweird.f32 %v2565_v24  ;;  %2041 = vpow2.f32 %v2428_v41  ;;  %vm2636_vm14 = vmor %vm1307_vm8, %vm1308_vm10 }
 0x1a0   : > { %v1304_v43 = vsub.f32 1.0, %v1303_v38  ;;  %2043 = vpow2.f32 %v1887_v20  ;;  %v1889_v11 = vmul.f32 -1.442695, %v2598_v27  ;;  %v2623_v44 = vadd.f32 %v2363_v51, %v1125_v6 }
 0x1a1   : > { %1473 = vst [vmem:[%s2823_s4 + $0x28] sm:$0xff] %v1457_v49  ;;  %v2038_v54 = vpop.eup %2037  ;;  %vm2625_vm13 = vcmp.eq.f32.partialorder %v1326_v36, 8.507059e+37  ;;  %v1341_v57 = vand.u32 2147483647, %v2565_v24  ;;  %v1343_v41 = vand.u32 2147483648, %v2565_v24  ;;  %v1126_v58 = vmul.f32 %v2358_v50, %v1106_v40 }
 0x1a2   : > { %v2040_v3 = vpop.eup %2039  ;;  %v1305_v8 = vmul.f32 %v2036_v32, %v1304_v43  ;;  %v1318_v9 = vmul.f32 %v2038_v54, %v2555_v1  ;;  %v1329_v10 = vor.u32 1.1754944e-38, %v1328_v31  ;;  %2045 = vpow2.f32 %v1888_v29 }
 0x1a3   : > { %v1333_v52 = vmul.f32 %v2040_v3, %v2565_v24  ;;  %v1890_v13 = vmul.f32 -1.442695, %v2623_v44  ;;  %v2643_v56 = vadd.f32 %v2363_v51, %v1126_v58  ;;  %v1127_v53 = vmul.f32 %v2358_v50, %v1107_v45 }
 0x1a4   : > { %v1306_v46 = vadd.f32 %v2036_v32, %v1305_v8  ;;  %v1319_v2 = vsub.f32 1.0, %v1318_v9  ;;  %vm1323_vm15 = vweird.f32 %v2038_v54  ;;  %2047 = vpow2.f32 %v1889_v11 }
 0x1a5   : > { %v2042_v19 = vpop.eup %2041  ;;  %v1334_v0 = vsub.f32 1.0, %v1333_v52  ;;  %vm1338_vm0 = vweird.f32 %v2040_v3  ;;  %v1344_v63 = vor.u32 1.1754944e-38, %v1343_v41  ;;  %v1891_v61 = vmul.f32 -1.442695, %v2643_v56  ;;  %vm2653_vm7 = vmor %vm1322_vm11, %vm1323_vm15 }
 0x1a6   : > { %v2044_v47 = vpop.eup %2043  ;;  %v1310_v62 = vsel %vm2636_vm14, %v2036_v32, %v1306_v46  ;;  %v1320_v48 = vmul.f32 %v2038_v54, %v1319_v2  ;;  %v1205_v21 = vadd.f32 1.0, %v2042_v19  ;;  %2049 = vpow2.f32 %v1890_v13  ;;  %vm1339_vm1 = vmor %vm1337_vm12, %vm1338_vm0 }
 0x1a7   : > { %v1315_v50 = vsel %vm2607_vm9, %v1314_v39, %v1310_v62  ;;  %v1335_v18 = vmul.f32 %v2040_v3, %v1334_v0  ;;  %v1206_v55 = vadd.f32 1.0, %v2044_v47  ;;  %2051 = vpow2.f32 %v1891_v61 }
 0x1a8   : > { %v2046_v26 = vpop.eup %2045  ;;  %v1458_v30 = vmul.f32 %v1315_v50, %v2396_v14  ;;  %v1321_v7 = vadd.f32 %v2038_v54, %v1320_v48  ;;  %2053 = vrcp.f32 %v1205_v21  ;;  %v2662_v15 = vadd.f32 %v2363_v51, %v1127_v53 }
 0x1a9   : > { %v1336_v1 = vadd.f32 %v2040_v3, %v1335_v18  ;;  %vm1342_vm2 = vcmp.eq.f32.partialorder %v1341_v57, 8.507059e+37  ;;  %2055 = vrcp.f32 %v1206_v55  ;;  %v1356_v59 = vand.u32 2147483647, %v1205_v21 }
 0x1aa   : > { %v2048_v12 = vpop.eup %2047  ;;  %1474 = vst [vmem:[%s2823_s4 + $0x30] sm:$0xff] %v1458_v30  ;;  %v1325_v14 = vsel %vm2653_vm7, %v2038_v54, %v1321_v7  ;;  %v1892_v20 = vmul.f32 -1.442695, %v2662_v15  ;;  %v2674_v6 = vadd.f32 1.0, %v2046_v26  ;;  %vm1352_vm4 = vweird.f32 %v1205_v21 }
 0x1ab   : > { %v1330_v4 = vsel %vm2625_vm13, %v1329_v10, %v1325_v14  ;;  %v1340_v24 = vsel %vm1339_vm1, %v2040_v3, %v1336_v1  ;;  %v2676_v32 = vadd.f32 1.0, %v2048_v12  ;;  %v1358_v35 = vand.u32 2147483648, %v1205_v21 }
 0x1ac   : > { %v2050_v23 = vpop.eup %2049  ;;  %v1459_v16 = vmul.f32 %v1330_v4, %v2400_v17  ;;  %v1345_v51 = vsel %vm1342_vm2, %v1344_v63, %v1340_v24  ;;  %vm1367_vm3 = vweird.f32 %v1206_v55  ;;  %v1371_v17 = vand.u32 2147483647, %v1206_v55 }
 0x1ad   : > { %v2052_v29 = vpop.eup %2051  ;;  %v1460_v5 = vmul.f32 %v1345_v51, %v2408_v25  ;;  %v1373_v25 = vand.u32 2147483648, %v1206_v55  ;;  %2057 = vrcp.f32 %v2674_v6  ;;  %v2685_v38 = vadd.f32 1.0, %v2050_v23 }
 0x1ae   : > { %v2054_v34 = vpop.eup %2053  ;;  %1475 = vst [vmem:[%s2823_s4 + $0x38] sm:$0xff] %v1459_v16  ;;  %vm2687_vm5 = vcmp.eq.f32.partialorder %v1356_v59, 8.507059e+37  ;;  %v2691_v40 = vadd.f32 1.0, %v2052_v29  ;;  %2059 = vpow2.f32 %v1892_v20  ;;  %v1386_v11 = vand.u32 2147483647, %v2674_v6 }
 0x1af   : > { %v2056_v36 = vpop.eup %2055  ;;  %1476 = vst [vmem:[%s2823_s4 + $0x40] sm:$0xff] %v1460_v5  ;;  %v1348_v49 = vmul.f32 %v2054_v34, %v1205_v21  ;;  %vm1353_vm6 = vweird.f32 %v2054_v34  ;;  %2061 = vrcp.f32 %v2676_v32  ;;  %v1388_v54 = vand.u32 2147483648, %v2674_v6 }
 0x1b0   : > { %v1363_v31 = vmul.f32 %v2056_v36, %v1206_v55  ;;  %vm1368_vm8 = vweird.f32 %v2056_v36  ;;  %v1401_v33 = vand.u32 2147483647, %v2676_v32  ;;  %v1359_v41 = vor.u32 1.1754944e-38, %v1358_v35  ;;  %vm2700_vm9 = vmor %vm1352_vm4, %vm1353_vm6 }
 0x1b1   : > { %v1349_v43 = vsub.f32 1.0, %v1348_v49  ;;  %v1403_v58 = vand.u32 2147483648, %v2676_v32  ;;  %2063 = vrcp.f32 %v2685_v38  ;;  %vm2704_vm10 = vcmp.eq.f32.partialorder %v1371_v17, 8.507059e+37  ;;  %vm2710_vm12 = vmor %vm1367_vm3, %vm1368_vm8 }
 0x1b2   : > { %v1364_v45 = vsub.f32 1.0, %v1363_v31  ;;  %v1374_v10 = vor.u32 1.1754944e-38, %v1373_v25  ;;  %vm1382_vm11 = vweird.f32 %v2674_v6  ;;  %vm2714_vm13 = vcmp.eq.f32.partialorder %v1386_v11, 8.507059e+37 }
 0x1b3   : > { %v1350_v57 = vmul.f32 %v2054_v34, %v1349_v43  ;;  %v2058_v60 = vpop.eup %2057  ;;  %vm1397_vm14 = vweird.f32 %v2676_v32  ;;  %2065 = vrcp.f32 %v2691_v40  ;;  %v1389_v0 = vor.u32 1.1754944e-38, %v1388_v54 }
 0x1b4   : > { %v1365_v8 = vmul.f32 %v2056_v36, %v1364_v45  ;;  %v2060_v46 = vpop.eup %2059  ;;  %v1378_v19 = vmul.f32 %v2058_v60, %v2674_v6  ;;  %vm2721_vm15 = vcmp.eq.f32.partialorder %v1401_v33, 8.507059e+37  ;;  %vm1383_vm0 = vweird.f32 %v2058_v60 }
 0x1b5   : > { %v1351_v52 = vadd.f32 %v2054_v34, %v1350_v57  ;;  %v2062_v61 = vpop.eup %2061  ;;  %v1404_v62 = vor.u32 1.1754944e-38, %v1403_v58  ;;  %vm1412_vm7 = vweird.f32 %v2685_v38  ;;  %v1416_v30 = vand.u32 2147483647, %v2685_v38  ;;  %vm2745_vm2 = vmor %vm1382_vm11, %vm1383_vm0 }
 0x1b6   : > { %v1366_v2 = vadd.f32 %v2056_v36, %v1365_v8  ;;  %v1379_v50 = vsub.f32 1.0, %v1378_v19  ;;  %v1393_v22 = vmul.f32 %v2062_v61, %v2676_v32  ;;  %vm1398_vm1 = vweird.f32 %v2062_v61 }
 0x1b7   : > { %v1355_v47 = vsel %vm2700_vm9, %v2054_v34, %v1351_v52  ;;  %v2064_v18 = vpop.eup %2063  ;;  %v1418_v24 = vand.u32 2147483648, %v2685_v38  ;;  %vm1427_vm3 = vweird.f32 %v2691_v40  ;;  %v1431_v29 = vand.u32 2147483647, %v2691_v40 }
 0x1b8   : > { %v1360_v48 = vsel %vm2687_vm5, %v1359_v41, %v1355_v47  ;;  %v1370_v21 = vsel %vm2710_vm12, %v2056_v36, %v1366_v2  ;;  %v1380_v1 = vmul.f32 %v2058_v60, %v1379_v50  ;;  %v1394_v12 = vsub.f32 1.0, %v1393_v22  ;;  %vm2758_vm5 = vmor %vm1397_vm14, %vm1398_vm1 }
 0x1b9   : > { %v1461_v55 = vmul.f32 %v1360_v48, %v2412_v28  ;;  %v1375_v26 = vsel %vm2704_vm10, %v1374_v10, %v1370_v21  ;;  %v1408_v14 = vmul.f32 %v2064_v18, %v2685_v38  ;;  %v2066_v4 = vpop.eup %2065  ;;  %vm1413_vm4 = vweird.f32 %v2064_v18 }
 0x1ba   : > { %v1462_v7 = vmul.f32 %v1375_v26, %v2423_v37  ;;  %v1211_v37 = vadd.f32 1.0, %v2060_v46  ;;  %v1381_v23 = vadd.f32 %v2058_v60, %v1380_v1  ;;  %v1395_v16 = vmul.f32 %v2062_v61, %v1394_v12  ;;  %vm2771_vm8 = vmor %vm1412_vm7, %vm1413_vm4 }
 0x1bb   : > { %1477 = vst [vmem:[%s2823_s4 + $0x48] sm:$0xff] %v1461_v55  ;;  %v1409_v51 = vsub.f32 1.0, %v1408_v14  ;;  %v1423_v59 = vmul.f32 %v2066_v4, %v2691_v40  ;;  %vm1428_vm6 = vweird.f32 %v2066_v4  ;;  %v1433_v5 = vand.u32 2147483648, %v2691_v40 }
 0x1bc   : > { %1478 = vst [vmem:[%s2823_s4 + $0x50] sm:$0xff] %v1462_v7  ;;  %2067 = vrcp.f32 %v1211_v37  ;;  %v1385_v6 = vsel %vm2745_vm2, %v2058_v60, %v1381_v23  ;;  %v1396_v34 = vadd.f32 %v2062_v61, %v1395_v16  ;;  %vm1417_vm9 = vcmp.eq.f32.partialorder %v1416_v30, 8.507059e+37  ;;  %vm1429_vm10 = vmor %vm1427_vm3, %vm1428_vm6 }
 0x1bd   : > { %v1410_v35 = vmul.f32 %v2064_v18, %v1409_v51  ;;  %v1424_v17 = vsub.f32 1.0, %v1423_v59  ;;  %v1390_v36 = vsel %vm2714_vm13, %v1389_v0, %v1385_v6  ;;  %v1419_v49 = vor.u32 1.1754944e-38, %v1418_v24 }
 0x1be   : > { %v1463_v25 = vmul.f32 %v1390_v36, %v2431_v42  ;;  %v1400_v39 = vsel %vm2758_vm5, %v2062_v61, %v1396_v34  ;;  %v1434_v38 = vor.u32 1.1754944e-38, %v1433_v5  ;;  %vm1432_vm11 = vcmp.eq.f32.partialorder %v1431_v29, 8.507059e+37 }
 0x1bf   : > { %v1411_v31 = vadd.f32 %v2064_v18, %v1410_v35  ;;  %v1425_v43 = vmul.f32 %v2066_v4, %v1424_v17  ;;  %v1405_v11 = vsel %vm2721_vm15, %v1404_v62, %v1400_v39  ;;  %vm1442_vm12 = vweird.f32 %v1211_v37 }
 0x1c0   : > { %1479 = vst [vmem:[%s2823_s4 + $0x58] sm:$0xff] %v1463_v25  ;;  %v1464_v45 = vmul.f32 %v1405_v11, %v2598_v27  ;;  %v1448_v8 = vand.u32 2147483648, %v1211_v37  ;;  %v1446_v10 = vand.u32 2147483647, %v1211_v37 }
 0x1c1   : > { %v1415_v42 = vsel %vm2771_vm8, %v2064_v18, %v1411_v31  ;;  %v1426_v54 = vadd.f32 %v2066_v4, %v1425_v43 }
 0x1c2   : > { %v2068_v33 = vpop.eup %2067  ;;  %v1420_v57 = vsel %vm1417_vm9, %v1419_v49, %v1415_v42  ;;  %1480 = vst [vmem:[%s2823_s4 + $0x60] sm:$0xff] %v1464_v45  ;;  %vm1447_vm15 = vcmp.eq.f32.partialorder %v1446_v10, 8.507059e+37 }
 0x1c3   : > { %v1465_v40 = vmul.f32 %v1420_v57, %v2623_v44  ;;  %v1430_v41 = vsel %vm1429_vm10, %v2066_v4, %v1426_v54  ;;  %v1438_v58 = vmul.f32 %v2068_v33, %v1211_v37  ;;  %vm1443_vm13 = vweird.f32 %v2068_v33 }
 0x1c4   : > { %v1435_v3 = vsel %vm1432_vm11, %v1434_v38, %v1430_v41  ;;  %vm1444_vm14 = vmor %vm1442_vm12, %vm1443_vm13  ;;  %v1449_v44 = vor.u32 1.1754944e-38, %v1448_v8 }
 0x1c5   : > { %1481 = vst [vmem:[%s2823_s4 + $0x68] sm:$0xff] %v1465_v40  ;;  %v1466_v27 = vmul.f32 %v1435_v3, %v2643_v56  ;;  %v1439_v9 = vsub.f32 1.0, %v1438_v58 }
 0x1c7   : > { %1482 = vst [vmem:[%s2823_s4 + $0x70] sm:$0xff] %v1466_v27  ;;  %v1440_v60 = vmul.f32 %v2068_v33, %v1439_v9 }
 0x1c9   : > { %v1441_v52 = vadd.f32 %v2068_v33, %v1440_v60 }
 0x1cb   : > { %v1445_v13 = vsel %vm1444_vm14, %v2068_v33, %v1441_v52 }
 0x1cc   : > { %v1450_v53 = vsel %vm1447_vm15, %v1449_v44, %v1445_v13 }
 0x1cd   : > { %v1467_v46 = vmul.f32 %v1450_v53, %v2662_v15 }
 0x1cf   : > { %1483 = vst [vmem:[%s2823_s4 + $0x78] sm:$0xff] %v1467_v46 }
 0x1d0 PF: > { %s14_s19 = sadd.s32 1, %s2107_s19   ;;  %s2875_s15 = smov %s2095_s16 }
 0x1d1   : > { %p11_p12 = scmp.ge.s32.totalorder %s14_s19, 4   ;;  %s2876_s16 = smov %s2170_s23 }
 0x1d2   : > { %s2877_s17 = smov %s2103_s18  ;;  %s2878_s18 = smov %s2880_s20 }
 0x1d3   :  { %13 = sbr.rel (!%p11_p12) target bundleno = 3 (0x3), region = 111 }

</bundles_post_ra>
